<compile_context>
chip_gen: v7x
topology: tpu7x:2x2x1
jax: 0.10.0
libtpu: 0.0.40
codegen_flags: <defaults>
</compile_context>

<pallas_src>
import jax
import jax.numpy as jnp
from jax.experimental import pallas as pl
from jax.experimental.pallas import tpu as pltpu

# ----------------------------- configuration -------------------------------
INPUT_DIM = 8           # input_dim
HIDDEN_DIM = 128        # hidden_dim (module default 512; small lane-aligned example)
OUT_SET_SIZE = 10       # out_set_size, num_multiclass=None
OUT_PAD = 128           # lane-dense padded head output width
BATCH = 2
BATCH_PAD = 8           # batch padded to one full sublane group
SEQ_LEN = 16


# ------------------------------ Pallas kernel ------------------------------
def _sigmoid(x):
    return 1.0 / (1.0 + jnp.exp(-x))


def lstm_classifier_kernel(x_ref, h0_ref, c0_ref, wih_ref, whh_ref, b_ref,
                           wlin_ref, blin_ref, out_ref, xg_ref, hs_ref):
    """x_ref: (T*Bp, D) time-major rows (row t*Bp + b); out_ref: (T*Bp, OUT_PAD)."""
    B, H = h0_ref.shape                      # B == BATCH_PAD (sublane aligned)
    T = x_ref.shape[0] // B

    # (1) Input projection for every (timestep, batch) row in ONE MXU matmul,
    #     with the (b_ih + b_hh) bias fused in.
    xg_ref[...] = jnp.dot(x_ref[...], wih_ref[...],
                          preferred_element_type=jnp.float32) + b_ref[...]

    # (2) Inherently sequential recurrence over time; batch stays fused and
    #     every slice starts on an 8-row (sublane) boundary -> dense ld/st.
    h = h0_ref[...]
    c = c0_ref[...]
    for t in range(T):                       # small static trip count, unrolled
        gates = xg_ref[t * B:(t + 1) * B, :] + jnp.dot(
            h, whh_ref[...], preferred_element_type=jnp.float32)
        i_g = _sigmoid(gates[:, 0:H])        # PyTorch gate order: i, f, g, o
        f_g = _sigmoid(gates[:, H:2 * H])
        g_g = jnp.tanh(gates[:, 2 * H:3 * H])
        o_g = _sigmoid(gates[:, 3 * H:4 * H])
        c = f_g * c + i_g * g_g
        h = o_g * jnp.tanh(c)
        hs_ref[t * B:(t + 1) * B, :] = h

    # (3) Linear head over the fused (T*Bp, H) slab; lane-dense padded store.
    out_ref[...] = (jnp.dot(hs_ref[...], wlin_ref[...],
                            preferred_element_type=jnp.float32)
                    + blin_ref[...]).astype(out_ref.dtype)


# ------------------------------- wrapper ------------------------------------
@jax.jit
def lstm_classifier_forward(input_seq, h0, c0, params):
    """input_seq: (B, T, D); h0, c0: (B, H). Returns (B, T, OUT_SET_SIZE)."""
    B, T, D = input_seq.shape
    H = h0.shape[1]
    out_dim = params["w_lin"].shape[1]

    # Time-major fused-batch layout, batch padded to the 8-sublane granule:
    # row t*BATCH_PAD + b <-> (time t, batch b); padded rows carry zeros.
    x_tm = jnp.zeros((T, BATCH_PAD, D), jnp.float32).at[:, :B, :].set(
        jnp.transpose(input_seq, (1, 0, 2)).astype(jnp.float32)
    ).reshape(T * BATCH_PAD, D)
    h0_p = jnp.zeros((BATCH_PAD, H), jnp.float32).at[:B, :].set(h0.astype(jnp.float32))
    c0_p = jnp.zeros((BATCH_PAD, H), jnp.float32).at[:B, :].set(c0.astype(jnp.float32))
    b_gates = (params["b_ih"] + params["b_hh"]).reshape(1, 4 * H)
    w_lin_pad = jnp.zeros((H, OUT_PAD), jnp.float32).at[:, :out_dim].set(params["w_lin"])
    b_lin_pad = jnp.zeros((1, OUT_PAD), jnp.float32).at[:, :out_dim].set(
        params["b_lin"].reshape(1, out_dim))

    vmem = pl.BlockSpec(memory_space=pltpu.MemorySpace.VMEM)
    out = pl.pallas_call(
        lstm_classifier_kernel,
        out_shape=jax.ShapeDtypeStruct((T * BATCH_PAD, OUT_PAD), jnp.float32),
        in_specs=[vmem] * 8,
        out_specs=vmem,
        scratch_shapes=[
            pltpu.VMEM((T * BATCH_PAD, 4 * H), jnp.float32),   # precomputed input gates
            pltpu.VMEM((T * BATCH_PAD, H), jnp.float32),       # all hidden states
        ],
    )(x_tm, h0_p, c0_p, params["w_ih"], params["w_hh"], b_gates,
      w_lin_pad, b_lin_pad)

    # (T*Bp, OUT_PAD) -> (B, T, out_dim); drop batch and lane padding.
    return out.reshape(T, BATCH_PAD, OUT_PAD)[:, :B, :out_dim].transpose(1, 0, 2)


# --------------------- deterministic parameter init -------------------------
def init_params(key):
    keys = jax.random.split(key, 6)
    s = HIDDEN_DIM ** -0.5
    return {
        "w_ih": s * jax.random.normal(keys[0], (INPUT_DIM, 4 * HIDDEN_DIM), jnp.float32),
        "w_hh": s * jax.random.normal(keys[1], (HIDDEN_DIM, 4 * HIDDEN_DIM), jnp.float32),
        "b_ih": s * jax.random.normal(keys[2], (4 * HIDDEN_DIM,), jnp.float32),
        "b_hh": s * jax.random.normal(keys[3], (4 * HIDDEN_DIM,), jnp.float32),
        "w_lin": s * jax.random.normal(keys[4], (HIDDEN_DIM, OUT_SET_SIZE), jnp.float32),
        "b_lin": s * jax.random.normal(keys[5], (OUT_SET_SIZE,), jnp.float32),
    }


# --------------------------- pure-JAX reference -----------------------------
def reference_forward(input_seq, h0, c0, params):
    H = h0.shape[1]
    b = params["b_ih"] + params["b_hh"]
    h, c = h0, c0
    outs = []
    for t in range(input_seq.shape[1]):
        gates = input_seq[:, t, :] @ params["w_ih"] + h @ params["w_hh"] + b
        i_g = jax.nn.sigmoid(gates[:, 0:H])
        f_g = jax.nn.sigmoid(gates[:, H:2 * H])
        g_g = jnp.tanh(gates[:, 2 * H:3 * H])
        o_g = jax.nn.sigmoid(gates[:, 3 * H:4 * H])
        c = f_g * c + i_g * g_g
        h = o_g * jnp.tanh(c)
        outs.append(h)
    lstm_out = jnp.stack(outs, axis=1)            # (B, T, H)
    return lstm_out @ params["w_lin"] + params["b_lin"]


# ------------------------------------ main -----------------------------------
if __name__ == "__main__":
    key = jax.random.PRNGKey(0)
    k_x, k_h, k_c, k_p = jax.random.split(key, 4)
    # batch-first layout: (batch, seq_len, input_dim)
    input_seq = jax.random.normal(k_x, (BATCH, SEQ_LEN, INPUT_DIM), jnp.float32)
    # The PyTorch forward draws h0/c0 with torch.randn; deterministic here.
    h0 = jax.random.normal(k_h, (BATCH, HIDDEN_DIM), jnp.float32)
    c0 = jax.random.normal(k_c, (BATCH, HIDDEN_DIM), jnp.float32)
    params = init_params(k_p)

    out = lstm_classifier_forward(input_seq, h0, c0, params)
    out = jax.block_until_ready(out)
    assert out.shape == (BATCH, SEQ_LEN, OUT_SET_SIZE), out.shape

    ref = reference_forward(input_seq, h0, c0, params)
    assert jnp.allclose(out, ref, rtol=1e-3, atol=1e-3), \
        float(jnp.max(jnp.abs(out - ref)))

    # TODO(synk): num_multiclass output reshape, bidirectional and num_layers>1
    # LSTM variants are not implemented (module defaults: 1 layer, unidirectional).
    print("KERNEL_OK")
</pallas_src>

<mosaic_0001>
module attributes {stable_mosaic.version = 11 : i64} {
  func.func @lstm_classifier_kernel(%arg0: memref<128x8xf32, #tpu.memory_space<vmem>>, %arg1: memref<8x128xf32, #tpu.memory_space<vmem>>, %arg2: memref<8x128xf32, #tpu.memory_space<vmem>>, %arg3: memref<8x512xf32, #tpu.memory_space<vmem>>, %arg4: memref<128x512xf32, #tpu.memory_space<vmem>>, %arg5: memref<1x512xf32, #tpu.memory_space<vmem>>, %arg6: memref<128x128xf32, #tpu.memory_space<vmem>>, %arg7: memref<1x128xf32, #tpu.memory_space<vmem>>, %arg8: memref<128x128xf32, #tpu.memory_space<vmem>>, %arg9: memref<128x512xf32, #tpu.memory_space<vmem>>, %arg10: memref<128x128xf32, #tpu.memory_space<vmem>>) attributes {dimension_semantics = [], scalar_prefetch = 0 : i64, scratch_operands = 2 : i64, tpu.core_type = #tpu.core_type<tc>} {
    %c0 = arith.constant 0 : index
    %c0_0 = arith.constant 0 : index
    %0 = vector.load %arg0[%c0, %c0_0] : memref<128x8xf32, #tpu.memory_space<vmem>>, vector<128x8xf32>
    %c0_1 = arith.constant 0 : index
    %c0_2 = arith.constant 0 : index
    %1 = vector.load %arg3[%c0_1, %c0_2] : memref<8x512xf32, #tpu.memory_space<vmem>>, vector<8x512xf32>
    %cst = arith.constant dense<0.000000e+00> : vector<128x512xf32>
    %2 = tpu.matmul %0, %1, %cst {dimension_numbers = #tpu.dot_dimension_numbers<[1], [0], [0], [1], [0, 0, 1, 1], [], []>} : vector<128x8xf32>, vector<8x512xf32>, vector<128x512xf32> -> vector<128x512xf32>
    %c0_3 = arith.constant 0 : index
    %c0_4 = arith.constant 0 : index
    %3 = vector.load %arg5[%c0_3, %c0_4] : memref<1x512xf32, #tpu.memory_space<vmem>>, vector<1x512xf32>
    %4 = vector.broadcast %3 : vector<1x512xf32> to vector<128x512xf32>
    %5 = arith.addf %2, %4 : vector<128x512xf32>
    %c0_5 = arith.constant 0 : index
    %c0_6 = arith.constant 0 : index
    %6 = vector.load %arg9[%c0_5, %c0_6] : memref<128x512xf32, #tpu.memory_space<vmem>>, vector<128x512xf32>
    tpu.vector_store %arg9[%c0_5, %c0_6], %5 {strides = array<i32>} : memref<128x512xf32, #tpu.memory_space<vmem>>, vector<128x512xf32>,
    %c0_7 = arith.constant 0 : index
    %c0_8 = arith.constant 0 : index
    %7 = vector.load %arg1[%c0_7, %c0_8] : memref<8x128xf32, #tpu.memory_space<vmem>>, vector<8x128xf32>
    %c0_9 = arith.constant 0 : index
    %c0_10 = arith.constant 0 : index
    %8 = vector.load %arg2[%c0_9, %c0_10] : memref<8x128xf32, #tpu.memory_space<vmem>>, vector<8x128xf32>
    %c0_11 = arith.constant 0 : index
    %c0_12 = arith.constant 0 : index
    %9 = vector.load %arg9[%c0_11, %c0_12] : memref<128x512xf32, #tpu.memory_space<vmem>>, vector<8x512xf32>
    %c0_13 = arith.constant 0 : index
    %c0_14 = arith.constant 0 : index
    %10 = vector.load %arg4[%c0_13, %c0_14] : memref<128x512xf32, #tpu.memory_space<vmem>>, vector<128x512xf32>
    %cst_15 = arith.constant dense<0.000000e+00> : vector<8x512xf32>
    %11 = tpu.matmul %7, %10, %cst_15 {dimension_numbers = #tpu.dot_dimension_numbers<[1], [0], [0], [1], [0, 0, 1, 1], [], []>} : vector<8x128xf32>, vector<128x512xf32>, vector<8x512xf32> -> vector<8x512xf32>
    %12 = arith.addf %9, %11 : vector<8x512xf32>
    %13 = vector.extract_strided_slice %12 {offsets = [0, 0], sizes = [8, 128], strides = [1, 1]} : vector<8x512xf32> to vector<8x128xf32>
    %cst_16 = arith.constant 0.000000e+00 : f32
    %14 = vector.broadcast %cst_16 : f32 to vector<8x128xf32>
    %15 = arith.subf %14, %13 : vector<8x128xf32>
    %16 = math.exp %15 : vector<8x128xf32>
    %cst_17 = arith.constant 1.000000e+00 : f32
    %17 = vector.broadcast %cst_17 : f32 to vector<8x128xf32>
    %18 = arith.addf %17, %16 : vector<8x128xf32>
    %cst_18 = arith.constant 1.000000e+00 : f32
    %19 = vector.broadcast %cst_18 : f32 to vector<8x128xf32>
    %20 = arith.divf %19, %18 : vector<8x128xf32>
    %21 = vector.extract_strided_slice %12 {offsets = [0, 128], sizes = [8, 128], strides = [1, 1]} : vector<8x512xf32> to vector<8x128xf32>
    %cst_19 = arith.constant 0.000000e+00 : f32
    %22 = vector.broadcast %cst_19 : f32 to vector<8x128xf32>
    %23 = arith.subf %22, %21 : vector<8x128xf32>
    %24 = math.exp %23 : vector<8x128xf32>
    %cst_20 = arith.constant 1.000000e+00 : f32
    %25 = vector.broadcast %cst_20 : f32 to vector<8x128xf32>
    %26 = arith.addf %25, %24 : vector<8x128xf32>
    %cst_21 = arith.constant 1.000000e+00 : f32
    %27 = vector.broadcast %cst_21 : f32 to vector<8x128xf32>
    %28 = arith.divf %27, %26 : vector<8x128xf32>
    %29 = vector.extract_strided_slice %12 {offsets = [0, 256], sizes = [8, 128], strides = [1, 1]} : vector<8x512xf32> to vector<8x128xf32>
    %30 = math.tanh %29 : vector<8x128xf32>
    %31 = vector.extract_strided_slice %12 {offsets = [0, 384], sizes = [8, 128], strides = [1, 1]} : vector<8x512xf32> to vector<8x128xf32>
    %cst_22 = arith.constant 0.000000e+00 : f32
    %32 = vector.broadcast %cst_22 : f32 to vector<8x128xf32>
    %33 = arith.subf %32, %31 : vector<8x128xf32>
    %34 = math.exp %33 : vector<8x128xf32>
    %cst_23 = arith.constant 1.000000e+00 : f32
    %35 = vector.broadcast %cst_23 : f32 to vector<8x128xf32>
    %36 = arith.addf %35, %34 : vector<8x128xf32>
    %cst_24 = arith.constant 1.000000e+00 : f32
    %37 = vector.broadcast %cst_24 : f32 to vector<8x128xf32>
    %38 = arith.divf %37, %36 : vector<8x128xf32>
    %39 = arith.mulf %28, %8 : vector<8x128xf32>
    %40 = arith.mulf %20, %30 : vector<8x128xf32>
    %41 = arith.addf %39, %40 : vector<8x128xf32>
    %42 = math.tanh %41 : vector<8x128xf32>
    %43 = arith.mulf %38, %42 : vector<8x128xf32>
    %c0_25 = arith.constant 0 : index
    %c0_26 = arith.constant 0 : index
    %44 = vector.load %arg10[%c0_25, %c0_26] : memref<128x128xf32, #tpu.memory_space<vmem>>, vector<8x128xf32>
    tpu.vector_store %arg10[%c0_25, %c0_26], %43 {strides = array<i32>} : memref<128x128xf32, #tpu.memory_space<vmem>>, vector<8x128xf32>,
    %c8 = arith.constant 8 : index
    %c0_27 = arith.constant 0 : index
    %45 = vector.load %arg9[%c8, %c0_27] : memref<128x512xf32, #tpu.memory_space<vmem>>, vector<8x512xf32>
    %c0_28 = arith.constant 0 : index
    %c0_29 = arith.constant 0 : index
    %46 = vector.load %arg4[%c0_28, %c0_29] : memref<128x512xf32, #tpu.memory_space<vmem>>, vector<128x512xf32>
    %cst_30 = arith.constant dense<0.000000e+00> : vector<8x512xf32>
    %47 = tpu.matmul %43, %46, %cst_30 {dimension_numbers = #tpu.dot_dimension_numbers<[1], [0], [0], [1], [0, 0, 1, 1], [], []>} : vector<8x128xf32>, vector<128x512xf32>, vector<8x512xf32> -> vector<8x512xf32>
    %48 = arith.addf %45, %47 : vector<8x512xf32>
    %49 = vector.extract_strided_slice %48 {offsets = [0, 0], sizes = [8, 128], strides = [1, 1]} : vector<8x512xf32> to vector<8x128xf32>
    %cst_31 = arith.constant 0.000000e+00 : f32
    %50 = vector.broadcast %cst_31 : f32 to vector<8x128xf32>
    %51 = arith.subf %50, %49 : vector<8x128xf32>
    %52 = math.exp %51 : vector<8x128xf32>
    %cst_32 = arith.constant 1.000000e+00 : f32
    %53 = vector.broadcast %cst_32 : f32 to vector<8x128xf32>
    %54 = arith.addf %53, %52 : vector<8x128xf32>
    %cst_33 = arith.constant 1.000000e+00 : f32
    %55 = vector.broadcast %cst_33 : f32 to vector<8x128xf32>
    %56 = arith.divf %55, %54 : vector<8x128xf32>
    %57 = vector.extract_strided_slice %48 {offsets = [0, 128], sizes = [8, 128], strides = [1, 1]} : vector<8x512xf32> to vector<8x128xf32>
    %cst_34 = arith.constant 0.000000e+00 : f32
    %58 = vector.broadcast %cst_34 : f32 to vector<8x128xf32>
    %59 = arith.subf %58, %57 : vector<8x128xf32>
    %60 = math.exp %59 : vector<8x128xf32>
    %cst_35 = arith.constant 1.000000e+00 : f32
    %61 = vector.broadcast %cst_35 : f32 to vector<8x128xf32>
    %62 = arith.addf %61, %60 : vector<8x128xf32>
    %cst_36 = arith.constant 1.000000e+00 : f32
    %63 = vector.broadcast %cst_36 : f32 to vector<8x128xf32>
    %64 = arith.divf %63, %62 : vector<8x128xf32>
    %65 = vector.extract_strided_slice %48 {offsets = [0, 256], sizes = [8, 128], strides = [1, 1]} : vector<8x512xf32> to vector<8x128xf32>
    %66 = math.tanh %65 : vector<8x128xf32>
    %67 = vector.extract_strided_slice %48 {offsets = [0, 384], sizes = [8, 128], strides = [1, 1]} : vector<8x512xf32> to vector<8x128xf32>
    %cst_37 = arith.constant 0.000000e+00 : f32
    %68 = vector.broadcast %cst_37 : f32 to vector<8x128xf32>
    %69 = arith.subf %68, %67 : vector<8x128xf32>
    %70 = math.exp %69 : vector<8x128xf32>
    %cst_38 = arith.constant 1.000000e+00 : f32
    %71 = vector.broadcast %cst_38 : f32 to vector<8x128xf32>
    %72 = arith.addf %71, %70 : vector<8x128xf32>
    %cst_39 = arith.constant 1.000000e+00 : f32
    %73 = vector.broadcast %cst_39 : f32 to vector<8x128xf32>
    %74 = arith.divf %73, %72 : vector<8x128xf32>
    %75 = arith.mulf %64, %41 : vector<8x128xf32>
    %76 = arith.mulf %56, %66 : vector<8x128xf32>
    %77 = arith.addf %75, %76 : vector<8x128xf32>
    %78 = math.tanh %77 : vector<8x128xf32>
    %79 = arith.mulf %74, %78 : vector<8x128xf32>
    %c8_40 = arith.constant 8 : index
    %c0_41 = arith.constant 0 : index
    %80 = vector.load %arg10[%c8_40, %c0_41] : memref<128x128xf32, #tpu.memory_space<vmem>>, vector<8x128xf32>
    tpu.vector_store %arg10[%c8_40, %c0_41], %79 {strides = array<i32>} : memref<128x128xf32, #tpu.memory_space<vmem>>, vector<8x128xf32>,
    %c16 = arith.constant 16 : index
    %c0_42 = arith.constant 0 : index
    %81 = vector.load %arg9[%c16, %c0_42] : memref<128x512xf32, #tpu.memory_space<vmem>>, vector<8x512xf32>
    %c0_43 = arith.constant 0 : index
    %c0_44 = arith.constant 0 : index
    %82 = vector.load %arg4[%c0_43, %c0_44] : memref<128x512xf32, #tpu.memory_space<vmem>>, vector<128x512xf32>
    %cst_45 = arith.constant dense<0.000000e+00> : vector<8x512xf32>
    %83 = tpu.matmul %79, %82, %cst_45 {dimension_numbers = #tpu.dot_dimension_numbers<[1], [0], [0], [1], [0, 0, 1, 1], [], []>} : vector<8x128xf32>, vector<128x512xf32>, vector<8x512xf32> -> vector<8x512xf32>
    %84 = arith.addf %81, %83 : vector<8x512xf32>
    %85 = vector.extract_strided_slice %84 {offsets = [0, 0], sizes = [8, 128], strides = [1, 1]} : vector<8x512xf32> to vector<8x128xf32>
    %cst_46 = arith.constant 0.000000e+00 : f32
    %86 = vector.broadcast %cst_46 : f32 to vector<8x128xf32>
    %87 = arith.subf %86, %85 : vector<8x128xf32>
    %88 = math.exp %87 : vector<8x128xf32>
    %cst_47 = arith.constant 1.000000e+00 : f32
    %89 = vector.broadcast %cst_47 : f32 to vector<8x128xf32>
    %90 = arith.addf %89, %88 : vector<8x128xf32>
    %cst_48 = arith.constant 1.000000e+00 : f32
    %91 = vector.broadcast %cst_48 : f32 to vector<8x128xf32>
    %92 = arith.divf %91, %90 : vector<8x128xf32>
    %93 = vector.extract_strided_slice %84 {offsets = [0, 128], sizes = [8, 128], strides = [1, 1]} : vector<8x512xf32> to vector<8x128xf32>
    %cst_49 = arith.constant 0.000000e+00 : f32
    %94 = vector.broadcast %cst_49 : f32 to vector<8x128xf32>
    %95 = arith.subf %94, %93 : vector<8x128xf32>
    %96 = math.exp %95 : vector<8x128xf32>
    %cst_50 = arith.constant 1.000000e+00 : f32
    %97 = vector.broadcast %cst_50 : f32 to vector<8x128xf32>
    %98 = arith.addf %97, %96 : vector<8x128xf32>
    %cst_51 = arith.constant 1.000000e+00 : f32
    %99 = vector.broadcast %cst_51 : f32 to vector<8x128xf32>
    %100 = arith.divf %99, %98 : vector<8x128xf32>
    %101 = vector.extract_strided_slice %84 {offsets = [0, 256], sizes = [8, 128], strides = [1, 1]} : vector<8x512xf32> to vector<8x128xf32>
    %102 = math.tanh %101 : vector<8x128xf32>
    %103 = vector.extract_strided_slice %84 {offsets = [0, 384], sizes = [8, 128], strides = [1, 1]} : vector<8x512xf32> to vector<8x128xf32>
    %cst_52 = arith.constant 0.000000e+00 : f32
    %104 = vector.broadcast %cst_52 : f32 to vector<8x128xf32>
    %105 = arith.subf %104, %103 : vector<8x128xf32>
    %106 = math.exp %105 : vector<8x128xf32>
    %cst_53 = arith.constant 1.000000e+00 : f32
    %107 = vector.broadcast %cst_53 : f32 to vector<8x128xf32>
    %108 = arith.addf %107, %106 : vector<8x128xf32>
    %cst_54 = arith.constant 1.000000e+00 : f32
    %109 = vector.broadcast %cst_54 : f32 to vector<8x128xf32>
    %110 = arith.divf %109, %108 : vector<8x128xf32>
    %111 = arith.mulf %100, %77 : vector<8x128xf32>
    %112 = arith.mulf %92, %102 : vector<8x128xf32>
    %113 = arith.addf %111, %112 : vector<8x128xf32>
    %114 = math.tanh %113 : vector<8x128xf32>
    %115 = arith.mulf %110, %114 : vector<8x128xf32>
    %c16_55 = arith.constant 16 : index
    %c0_56 = arith.constant 0 : index
    %116 = vector.load %arg10[%c16_55, %c0_56] : memref<128x128xf32, #tpu.memory_space<vmem>>, vector<8x128xf32>
    tpu.vector_store %arg10[%c16_55, %c0_56], %115 {strides = array<i32>} : memref<128x128xf32, #tpu.memory_space<vmem>>, vector<8x128xf32>,
    %c24 = arith.constant 24 : index
    %c0_57 = arith.constant 0 : index
    %117 = vector.load %arg9[%c24, %c0_57] : memref<128x512xf32, #tpu.memory_space<vmem>>, vector<8x512xf32>
    %c0_58 = arith.constant 0 : index
    %c0_59 = arith.constant 0 : index
    %118 = vector.load %arg4[%c0_58, %c0_59] : memref<128x512xf32, #tpu.memory_space<vmem>>, vector<128x512xf32>
    %cst_60 = arith.constant dense<0.000000e+00> : vector<8x512xf32>
    %119 = tpu.matmul %115, %118, %cst_60 {dimension_numbers = #tpu.dot_dimension_numbers<[1], [0], [0], [1], [0, 0, 1, 1], [], []>} : vector<8x128xf32>, vector<128x512xf32>, vector<8x512xf32> -> vector<8x512xf32>
    %120 = arith.addf %117, %119 : vector<8x512xf32>
    %121 = vector.extract_strided_slice %120 {offsets = [0, 0], sizes = [8, 128], strides = [1, 1]} : vector<8x512xf32> to vector<8x128xf32>
    %cst_61 = arith.constant 0.000000e+00 : f32
    %122 = vector.broadcast %cst_61 : f32 to vector<8x128xf32>
    %123 = arith.subf %122, %121 : vector<8x128xf32>
    %124 = math.exp %123 : vector<8x128xf32>
    %cst_62 = arith.constant 1.000000e+00 : f32
    %125 = vector.broadcast %cst_62 : f32 to vector<8x128xf32>
    %126 = arith.addf %125, %124 : vector<8x128xf32>
    %cst_63 = arith.constant 1.000000e+00 : f32
    %127 = vector.broadcast %cst_63 : f32 to vector<8x128xf32>
    %128 = arith.divf %127, %126 : vector<8x128xf32>
    %129 = vector.extract_strided_slice %120 {offsets = [0, 128], sizes = [8, 128], strides = [1, 1]} : vector<8x512xf32> to vector<8x128xf32>
    %cst_64 = arith.constant 0.000000e+00 : f32
    %130 = vector.broadcast %cst_64 : f32 to vector<8x128xf32>
    %131 = arith.subf %130, %129 : vector<8x128xf32>
    %132 = math.exp %131 : vector<8x128xf32>
    %cst_65 = arith.constant 1.000000e+00 : f32
    %133 = vector.broadcast %cst_65 : f32 to vector<8x128xf32>
    %134 = arith.addf %133, %132 : vector<8x128xf32>
    %cst_66 = arith.constant 1.000000e+00 : f32
    %135 = vector.broadcast %cst_66 : f32 to vector<8x128xf32>
    %136 = arith.divf %135, %134 : vector<8x128xf32>
    %137 = vector.extract_strided_slice %120 {offsets = [0, 256], sizes = [8, 128], strides = [1, 1]} : vector<8x512xf32> to vector<8x128xf32>
    %138 = math.tanh %137 : vector<8x128xf32>
    %139 = vector.extract_strided_slice %120 {offsets = [0, 384], sizes = [8, 128], strides = [1, 1]} : vector<8x512xf32> to vector<8x128xf32>
    %cst_67 = arith.constant 0.000000e+00 : f32
    %140 = vector.broadcast %cst_67 : f32 to vector<8x128xf32>
    %141 = arith.subf %140, %139 : vector<8x128xf32>
    %142 = math.exp %141 : vector<8x128xf32>
    %cst_68 = arith.constant 1.000000e+00 : f32
    %143 = vector.broadcast %cst_68 : f32 to vector<8x128xf32>
    %144 = arith.addf %143, %142 : vector<8x128xf32>
    %cst_69 = arith.constant 1.000000e+00 : f32
    %145 = vector.broadcast %cst_69 : f32 to vector<8x128xf32>
    %146 = arith.divf %145, %144 : vector<8x128xf32>
    %147 = arith.mulf %136, %113 : vector<8x128xf32>
    %148 = arith.mulf %128, %138 : vector<8x128xf32>
    %149 = arith.addf %147, %148 : vector<8x128xf32>
    %150 = math.tanh %149 : vector<8x128xf32>
    %151 = arith.mulf %146, %150 : vector<8x128xf32>
    %c24_70 = arith.constant 24 : index
    %c0_71 = arith.constant 0 : index
    %152 = vector.load %arg10[%c24_70, %c0_71] : memref<128x128xf32, #tpu.memory_space<vmem>>, vector<8x128xf32>
    tpu.vector_store %arg10[%c24_70, %c0_71], %151 {strides = array<i32>} : memref<128x128xf32, #tpu.memory_space<vmem>>, vector<8x128xf32>,
    %c32 = arith.constant 32 : index
    %c0_72 = arith.constant 0 : index
    %153 = vector.load %arg9[%c32, %c0_72] : memref<128x512xf32, #tpu.memory_space<vmem>>, vector<8x512xf32>
    %c0_73 = arith.constant 0 : index
    %c0_74 = arith.constant 0 : index
    %154 = vector.load %arg4[%c0_73, %c0_74] : memref<128x512xf32, #tpu.memory_space<vmem>>, vector<128x512xf32>
    %cst_75 = arith.constant dense<0.000000e+00> : vector<8x512xf32>
    %155 = tpu.matmul %151, %154, %cst_75 {dimension_numbers = #tpu.dot_dimension_numbers<[1], [0], [0], [1], [0, 0, 1, 1], [], []>} : vector<8x128xf32>, vector<128x512xf32>, vector<8x512xf32> -> vector<8x512xf32>
    %156 = arith.addf %153, %155 : vector<8x512xf32>
    %157 = vector.extract_strided_slice %156 {offsets = [0, 0], sizes = [8, 128], strides = [1, 1]} : vector<8x512xf32> to vector<8x128xf32>
    %cst_76 = arith.constant 0.000000e+00 : f32
    %158 = vector.broadcast %cst_76 : f32 to vector<8x128xf32>
    %159 = arith.subf %158, %157 : vector<8x128xf32>
    %160 = math.exp %159 : vector<8x128xf32>
    %cst_77 = arith.constant 1.000000e+00 : f32
    %161 = vector.broadcast %cst_77 : f32 to vector<8x128xf32>
    %162 = arith.addf %161, %160 : vector<8x128xf32>
    %cst_78 = arith.constant 1.000000e+00 : f32
    %163 = vector.broadcast %cst_78 : f32 to vector<8x128xf32>
    %164 = arith.divf %163, %162 : vector<8x128xf32>
    %165 = vector.extract_strided_slice %156 {offsets = [0, 128], sizes = [8, 128], strides = [1, 1]} : vector<8x512xf32> to vector<8x128xf32>
    %cst_79 = arith.constant 0.000000e+00 : f32
    %166 = vector.broadcast %cst_79 : f32 to vector<8x128xf32>
    %167 = arith.subf %166, %165 : vector<8x128xf32>
    %168 = math.exp %167 : vector<8x128xf32>
    %cst_80 = arith.constant 1.000000e+00 : f32
    %169 = vector.broadcast %cst_80 : f32 to vector<8x128xf32>
    %170 = arith.addf %169, %168 : vector<8x128xf32>
    %cst_81 = arith.constant 1.000000e+00 : f32
    %171 = vector.broadcast %cst_81 : f32 to vector<8x128xf32>
    %172 = arith.divf %171, %170 : vector<8x128xf32>
    %173 = vector.extract_strided_slice %156 {offsets = [0, 256], sizes = [8, 128], strides = [1, 1]} : vector<8x512xf32> to vector<8x128xf32>
    %174 = math.tanh %173 : vector<8x128xf32>
    %175 = vector.extract_strided_slice %156 {offsets = [0, 384], sizes = [8, 128], strides = [1, 1]} : vector<8x512xf32> to vector<8x128xf32>
    %cst_82 = arith.constant 0.000000e+00 : f32
    %176 = vector.broadcast %cst_82 : f32 to vector<8x128xf32>
    %177 = arith.subf %176, %175 : vector<8x128xf32>
    %178 = math.exp %177 : vector<8x128xf32>
    %cst_83 = arith.constant 1.000000e+00 : f32
    %179 = vector.broadcast %cst_83 : f32 to vector<8x128xf32>
    %180 = arith.addf %179, %178 : vector<8x128xf32>
    %cst_84 = arith.constant 1.000000e+00 : f32
    %181 = vector.broadcast %cst_84 : f32 to vector<8x128xf32>
    %182 = arith.divf %181, %180 : vector<8x128xf32>
    %183 = arith.mulf %172, %149 : vector<8x128xf32>
    %184 = arith.mulf %164, %174 : vector<8x128xf32>
    %185 = arith.addf %183, %184 : vector<8x128xf32>
    %186 = math.tanh %185 : vector<8x128xf32>
    %187 = arith.mulf %182, %186 : vector<8x128xf32>
    %c32_85 = arith.constant 32 : index
    %c0_86 = arith.constant 0 : index
    %188 = vector.load %arg10[%c32_85, %c0_86] : memref<128x128xf32, #tpu.memory_space<vmem>>, vector<8x128xf32>
    tpu.vector_store %arg10[%c32_85, %c0_86], %187 {strides = array<i32>} : memref<128x128xf32, #tpu.memory_space<vmem>>, vector<8x128xf32>,
    %c40 = arith.constant 40 : index
    %c0_87 = arith.constant 0 : index
    %189 = vector.load %arg9[%c40, %c0_87] : memref<128x512xf32, #tpu.memory_space<vmem>>, vector<8x512xf32>
    %c0_88 = arith.constant 0 : index
    %c0_89 = arith.constant 0 : index
    %190 = vector.load %arg4[%c0_88, %c0_89] : memref<128x512xf32, #tpu.memory_space<vmem>>, vector<128x512xf32>
    %cst_90 = arith.constant dense<0.000000e+00> : vector<8x512xf32>
    %191 = tpu.matmul %187, %190, %cst_90 {dimension_numbers = #tpu.dot_dimension_numbers<[1], [0], [0], [1], [0, 0, 1, 1], [], []>} : vector<8x128xf32>, vector<128x512xf32>, vector<8x512xf32> -> vector<8x512xf32>
    %192 = arith.addf %189, %191 : vector<8x512xf32>
    %193 = vector.extract_strided_slice %192 {offsets = [0, 0], sizes = [8, 128], strides = [1, 1]} : vector<8x512xf32> to vector<8x128xf32>
    %cst_91 = arith.constant 0.000000e+00 : f32
    %194 = vector.broadcast %cst_91 : f32 to vector<8x128xf32>
    %195 = arith.subf %194, %193 : vector<8x128xf32>
    %196 = math.exp %195 : vector<8x128xf32>
    %cst_92 = arith.constant 1.000000e+00 : f32
    %197 = vector.broadcast %cst_92 : f32 to vector<8x128xf32>
    %198 = arith.addf %197, %196 : vector<8x128xf32>
    %cst_93 = arith.constant 1.000000e+00 : f32
    %199 = vector.broadcast %cst_93 : f32 to vector<8x128xf32>
    %200 = arith.divf %199, %198 : vector<8x128xf32>
    %201 = vector.extract_strided_slice %192 {offsets = [0, 128], sizes = [8, 128], strides = [1, 1]} : vector<8x512xf32> to vector<8x128xf32>
    %cst_94 = arith.constant 0.000000e+00 : f32
    %202 = vector.broadcast %cst_94 : f32 to vector<8x128xf32>
    %203 = arith.subf %202, %201 : vector<8x128xf32>
    %204 = math.exp %203 : vector<8x128xf32>
    %cst_95 = arith.constant 1.000000e+00 : f32
    %205 = vector.broadcast %cst_95 : f32 to vector<8x128xf32>
    %206 = arith.addf %205, %204 : vector<8x128xf32>
    %cst_96 = arith.constant 1.000000e+00 : f32
    %207 = vector.broadcast %cst_96 : f32 to vector<8x128xf32>
    %208 = arith.divf %207, %206 : vector<8x128xf32>
    %209 = vector.extract_strided_slice %192 {offsets = [0, 256], sizes = [8, 128], strides = [1, 1]} : vector<8x512xf32> to vector<8x128xf32>
    %210 = math.tanh %209 : vector<8x128xf32>
    %211 = vector.extract_strided_slice %192 {offsets = [0, 384], sizes = [8, 128], strides = [1, 1]} : vector<8x512xf32> to vector<8x128xf32>
    %cst_97 = arith.constant 0.000000e+00 : f32
    %212 = vector.broadcast %cst_97 : f32 to vector<8x128xf32>
    %213 = arith.subf %212, %211 : vector<8x128xf32>
    %214 = math.exp %213 : vector<8x128xf32>
    %cst_98 = arith.constant 1.000000e+00 : f32
    %215 = vector.broadcast %cst_98 : f32 to vector<8x128xf32>
    %216 = arith.addf %215, %214 : vector<8x128xf32>
    %cst_99 = arith.constant 1.000000e+00 : f32
    %217 = vector.broadcast %cst_99 : f32 to vector<8x128xf32>
    %218 = arith.divf %217, %216 : vector<8x128xf32>
    %219 = arith.mulf %208, %185 : vector<8x128xf32>
    %220 = arith.mulf %200, %210 : vector<8x128xf32>
    %221 = arith.addf %219, %220 : vector<8x128xf32>
    %222 = math.tanh %221 : vector<8x128xf32>
    %223 = arith.mulf %218, %222 : vector<8x128xf32>
    %c40_100 = arith.constant 40 : index
    %c0_101 = arith.constant 0 : index
    %224 = vector.load %arg10[%c40_100, %c0_101] : memref<128x128xf32, #tpu.memory_space<vmem>>, vector<8x128xf32>
    tpu.vector_store %arg10[%c40_100, %c0_101], %223 {strides = array<i32>} : memref<128x128xf32, #tpu.memory_space<vmem>>, vector<8x128xf32>,
    %c48 = arith.constant 48 : index
    %c0_102 = arith.constant 0 : index
    %225 = vector.load %arg9[%c48, %c0_102] : memref<128x512xf32, #tpu.memory_space<vmem>>, vector<8x512xf32>
    %c0_103 = arith.constant 0 : index
    %c0_104 = arith.constant 0 : index
    %226 = vector.load %arg4[%c0_103, %c0_104] : memref<128x512xf32, #tpu.memory_space<vmem>>, vector<128x512xf32>
    %cst_105 = arith.constant dense<0.000000e+00> : vector<8x512xf32>
    %227 = tpu.matmul %223, %226, %cst_105 {dimension_numbers = #tpu.dot_dimension_numbers<[1], [0], [0], [1], [0, 0, 1, 1], [], []>} : vector<8x128xf32>, vector<128x512xf32>, vector<8x512xf32> -> vector<8x512xf32>
    %228 = arith.addf %225, %227 : vector<8x512xf32>
    %229 = vector.extract_strided_slice %228 {offsets = [0, 0], sizes = [8, 128], strides = [1, 1]} : vector<8x512xf32> to vector<8x128xf32>
    %cst_106 = arith.constant 0.000000e+00 : f32
    %230 = vector.broadcast %cst_106 : f32 to vector<8x128xf32>
    %231 = arith.subf %230, %229 : vector<8x128xf32>
    %232 = math.exp %231 : vector<8x128xf32>
    %cst_107 = arith.constant 1.000000e+00 : f32
    %233 = vector.broadcast %cst_107 : f32 to vector<8x128xf32>
    %234 = arith.addf %233, %232 : vector<8x128xf32>
    %cst_108 = arith.constant 1.000000e+00 : f32
    %235 = vector.broadcast %cst_108 : f32 to vector<8x128xf32>
    %236 = arith.divf %235, %234 : vector<8x128xf32>
    %237 = vector.extract_strided_slice %228 {offsets = [0, 128], sizes = [8, 128], strides = [1, 1]} : vector<8x512xf32> to vector<8x128xf32>
    %cst_109 = arith.constant 0.000000e+00 : f32
    %238 = vector.broadcast %cst_109 : f32 to vector<8x128xf32>
    %239 = arith.subf %238, %237 : vector<8x128xf32>
    %240 = math.exp %239 : vector<8x128xf32>
    %cst_110 = arith.constant 1.000000e+00 : f32
    %241 = vector.broadcast %cst_110 : f32 to vector<8x128xf32>
    %242 = arith.addf %241, %240 : vector<8x128xf32>
    %cst_111 = arith.constant 1.000000e+00 : f32
    %243 = vector.broadcast %cst_111 : f32 to vector<8x128xf32>
    %244 = arith.divf %243, %242 : vector<8x128xf32>
    %245 = vector.extract_strided_slice %228 {offsets = [0, 256], sizes = [8, 128], strides = [1, 1]} : vector<8x512xf32> to vector<8x128xf32>
    %246 = math.tanh %245 : vector<8x128xf32>
    %247 = vector.extract_strided_slice %228 {offsets = [0, 384], sizes = [8, 128], strides = [1, 1]} : vector<8x512xf32> to vector<8x128xf32>
    %cst_112 = arith.constant 0.000000e+00 : f32
    %248 = vector.broadcast %cst_112 : f32 to vector<8x128xf32>
    %249 = arith.subf %248, %247 : vector<8x128xf32>
    %250 = math.exp %249 : vector<8x128xf32>
    %cst_113 = arith.constant 1.000000e+00 : f32
    %251 = vector.broadcast %cst_113 : f32 to vector<8x128xf32>
    %252 = arith.addf %251, %250 : vector<8x128xf32>
    %cst_114 = arith.constant 1.000000e+00 : f32
    %253 = vector.broadcast %cst_114 : f32 to vector<8x128xf32>
    %254 = arith.divf %253, %252 : vector<8x128xf32>
    %255 = arith.mulf %244, %221 : vector<8x128xf32>
    %256 = arith.mulf %236, %246 : vector<8x128xf32>
    %257 = arith.addf %255, %256 : vector<8x128xf32>
    %258 = math.tanh %257 : vector<8x128xf32>
    %259 = arith.mulf %254, %258 : vector<8x128xf32>
    %c48_115 = arith.constant 48 : index
    %c0_116 = arith.constant 0 : index
    %260 = vector.load %arg10[%c48_115, %c0_116] : memref<128x128xf32, #tpu.memory_space<vmem>>, vector<8x128xf32>
    tpu.vector_store %arg10[%c48_115, %c0_116], %259 {strides = array<i32>} : memref<128x128xf32, #tpu.memory_space<vmem>>, vector<8x128xf32>,
    %c56 = arith.constant 56 : index
    %c0_117 = arith.constant 0 : index
    %261 = vector.load %arg9[%c56, %c0_117] : memref<128x512xf32, #tpu.memory_space<vmem>>, vector<8x512xf32>
    %c0_118 = arith.constant 0 : index
    %c0_119 = arith.constant 0 : index
    %262 = vector.load %arg4[%c0_118, %c0_119] : memref<128x512xf32, #tpu.memory_space<vmem>>, vector<128x512xf32>
    %cst_120 = arith.constant dense<0.000000e+00> : vector<8x512xf32>
    %263 = tpu.matmul %259, %262, %cst_120 {dimension_numbers = #tpu.dot_dimension_numbers<[1], [0], [0], [1], [0, 0, 1, 1], [], []>} : vector<8x128xf32>, vector<128x512xf32>, vector<8x512xf32> -> vector<8x512xf32>
    %264 = arith.addf %261, %263 : vector<8x512xf32>
    %265 = vector.extract_strided_slice %264 {offsets = [0, 0], sizes = [8, 128], strides = [1, 1]} : vector<8x512xf32> to vector<8x128xf32>
    %cst_121 = arith.constant 0.000000e+00 : f32
    %266 = vector.broadcast %cst_121 : f32 to vector<8x128xf32>
    %267 = arith.subf %266, %265 : vector<8x128xf32>
    %268 = math.exp %267 : vector<8x128xf32>
    %cst_122 = arith.constant 1.000000e+00 : f32
    %269 = vector.broadcast %cst_122 : f32 to vector<8x128xf32>
    %270 = arith.addf %269, %268 : vector<8x128xf32>
    %cst_123 = arith.constant 1.000000e+00 : f32
    %271 = vector.broadcast %cst_123 : f32 to vector<8x128xf32>
    %272 = arith.divf %271, %270 : vector<8x128xf32>
    %273 = vector.extract_strided_slice %264 {offsets = [0, 128], sizes = [8, 128], strides = [1, 1]} : vector<8x512xf32> to vector<8x128xf32>
    %cst_124 = arith.constant 0.000000e+00 : f32
    %274 = vector.broadcast %cst_124 : f32 to vector<8x128xf32>
    %275 = arith.subf %274, %273 : vector<8x128xf32>
    %276 = math.exp %275 : vector<8x128xf32>
    %cst_125 = arith.constant 1.000000e+00 : f32
    %277 = vector.broadcast %cst_125 : f32 to vector<8x128xf32>
    %278 = arith.addf %277, %276 : vector<8x128xf32>
    %cst_126 = arith.constant 1.000000e+00 : f32
    %279 = vector.broadcast %cst_126 : f32 to vector<8x128xf32>
    %280 = arith.divf %279, %278 : vector<8x128xf32>
    %281 = vector.extract_strided_slice %264 {offsets = [0, 256], sizes = [8, 128], strides = [1, 1]} : vector<8x512xf32> to vector<8x128xf32>
    %282 = math.tanh %281 : vector<8x128xf32>
    %283 = vector.extract_strided_slice %264 {offsets = [0, 384], sizes = [8, 128], strides = [1, 1]} : vector<8x512xf32> to vector<8x128xf32>
    %cst_127 = arith.constant 0.000000e+00 : f32
    %284 = vector.broadcast %cst_127 : f32 to vector<8x128xf32>
    %285 = arith.subf %284, %283 : vector<8x128xf32>
    %286 = math.exp %285 : vector<8x128xf32>
    %cst_128 = arith.constant 1.000000e+00 : f32
    %287 = vector.broadcast %cst_128 : f32 to vector<8x128xf32>
    %288 = arith.addf %287, %286 : vector<8x128xf32>
    %cst_129 = arith.constant 1.000000e+00 : f32
    %289 = vector.broadcast %cst_129 : f32 to vector<8x128xf32>
    %290 = arith.divf %289, %288 : vector<8x128xf32>
    %291 = arith.mulf %280, %257 : vector<8x128xf32>
    %292 = arith.mulf %272, %282 : vector<8x128xf32>
    %293 = arith.addf %291, %292 : vector<8x128xf32>
    %294 = math.tanh %293 : vector<8x128xf32>
    %295 = arith.mulf %290, %294 : vector<8x128xf32>
    %c56_130 = arith.constant 56 : index
    %c0_131 = arith.constant 0 : index
    %296 = vector.load %arg10[%c56_130, %c0_131] : memref<128x128xf32, #tpu.memory_space<vmem>>, vector<8x128xf32>
    tpu.vector_store %arg10[%c56_130, %c0_131], %295 {strides = array<i32>} : memref<128x128xf32, #tpu.memory_space<vmem>>, vector<8x128xf32>,
    %c64 = arith.constant 64 : index
    %c0_132 = arith.constant 0 : index
    %297 = vector.load %arg9[%c64, %c0_132] : memref<128x512xf32, #tpu.memory_space<vmem>>, vector<8x512xf32>
    %c0_133 = arith.constant 0 : index
    %c0_134 = arith.constant 0 : index
    %298 = vector.load %arg4[%c0_133, %c0_134] : memref<128x512xf32, #tpu.memory_space<vmem>>, vector<128x512xf32>
    %cst_135 = arith.constant dense<0.000000e+00> : vector<8x512xf32>
    %299 = tpu.matmul %295, %298, %cst_135 {dimension_numbers = #tpu.dot_dimension_numbers<[1], [0], [0], [1], [0, 0, 1, 1], [], []>} : vector<8x128xf32>, vector<128x512xf32>, vector<8x512xf32> -> vector<8x512xf32>
    %300 = arith.addf %297, %299 : vector<8x512xf32>
    %301 = vector.extract_strided_slice %300 {offsets = [0, 0], sizes = [8, 128], strides = [1, 1]} : vector<8x512xf32> to vector<8x128xf32>
    %cst_136 = arith.constant 0.000000e+00 : f32
    %302 = vector.broadcast %cst_136 : f32 to vector<8x128xf32>
    %303 = arith.subf %302, %301 : vector<8x128xf32>
    %304 = math.exp %303 : vector<8x128xf32>
    %cst_137 = arith.constant 1.000000e+00 : f32
    %305 = vector.broadcast %cst_137 : f32 to vector<8x128xf32>
    %306 = arith.addf %305, %304 : vector<8x128xf32>
    %cst_138 = arith.constant 1.000000e+00 : f32
    %307 = vector.broadcast %cst_138 : f32 to vector<8x128xf32>
    %308 = arith.divf %307, %306 : vector<8x128xf32>
    %309 = vector.extract_strided_slice %300 {offsets = [0, 128], sizes = [8, 128], strides = [1, 1]} : vector<8x512xf32> to vector<8x128xf32>
    %cst_139 = arith.constant 0.000000e+00 : f32
    %310 = vector.broadcast %cst_139 : f32 to vector<8x128xf32>
    %311 = arith.subf %310, %309 : vector<8x128xf32>
    %312 = math.exp %311 : vector<8x128xf32>
    %cst_140 = arith.constant 1.000000e+00 : f32
    %313 = vector.broadcast %cst_140 : f32 to vector<8x128xf32>
    %314 = arith.addf %313, %312 : vector<8x128xf32>
    %cst_141 = arith.constant 1.000000e+00 : f32
    %315 = vector.broadcast %cst_141 : f32 to vector<8x128xf32>
    %316 = arith.divf %315, %314 : vector<8x128xf32>
    %317 = vector.extract_strided_slice %300 {offsets = [0, 256], sizes = [8, 128], strides = [1, 1]} : vector<8x512xf32> to vector<8x128xf32>
    %318 = math.tanh %317 : vector<8x128xf32>
    %319 = vector.extract_strided_slice %300 {offsets = [0, 384], sizes = [8, 128], strides = [1, 1]} : vector<8x512xf32> to vector<8x128xf32>
    %cst_142 = arith.constant 0.000000e+00 : f32
    %320 = vector.broadcast %cst_142 : f32 to vector<8x128xf32>
    %321 = arith.subf %320, %319 : vector<8x128xf32>
    %322 = math.exp %321 : vector<8x128xf32>
    %cst_143 = arith.constant 1.000000e+00 : f32
    %323 = vector.broadcast %cst_143 : f32 to vector<8x128xf32>
    %324 = arith.addf %323, %322 : vector<8x128xf32>
    %cst_144 = arith.constant 1.000000e+00 : f32
    %325 = vector.broadcast %cst_144 : f32 to vector<8x128xf32>
    %326 = arith.divf %325, %324 : vector<8x128xf32>
    %327 = arith.mulf %316, %293 : vector<8x128xf32>
    %328 = arith.mulf %308, %318 : vector<8x128xf32>
    %329 = arith.addf %327, %328 : vector<8x128xf32>
    %330 = math.tanh %329 : vector<8x128xf32>
    %331 = arith.mulf %326, %330 : vector<8x128xf32>
    %c64_145 = arith.constant 64 : index
    %c0_146 = arith.constant 0 : index
    %332 = vector.load %arg10[%c64_145, %c0_146] : memref<128x128xf32, #tpu.memory_space<vmem>>, vector<8x128xf32>
    tpu.vector_store %arg10[%c64_145, %c0_146], %331 {strides = array<i32>} : memref<128x128xf32, #tpu.memory_space<vmem>>, vector<8x128xf32>,
    %c72 = arith.constant 72 : index
    %c0_147 = arith.constant 0 : index
    %333 = vector.load %arg9[%c72, %c0_147] : memref<128x512xf32, #tpu.memory_space<vmem>>, vector<8x512xf32>
    %c0_148 = arith.constant 0 : index
    %c0_149 = arith.constant 0 : index
    %334 = vector.load %arg4[%c0_148, %c0_149] : memref<128x512xf32, #tpu.memory_space<vmem>>, vector<128x512xf32>
    %cst_150 = arith.constant dense<0.000000e+00> : vector<8x512xf32>
    %335 = tpu.matmul %331, %334, %cst_150 {dimension_numbers = #tpu.dot_dimension_numbers<[1], [0], [0], [1], [0, 0, 1, 1], [], []>} : vector<8x128xf32>, vector<128x512xf32>, vector<8x512xf32> -> vector<8x512xf32>
    %336 = arith.addf %333, %335 : vector<8x512xf32>
    %337 = vector.extract_strided_slice %336 {offsets = [0, 0], sizes = [8, 128], strides = [1, 1]} : vector<8x512xf32> to vector<8x128xf32>
    %cst_151 = arith.constant 0.000000e+00 : f32
    %338 = vector.broadcast %cst_151 : f32 to vector<8x128xf32>
    %339 = arith.subf %338, %337 : vector<8x128xf32>
    %340 = math.exp %339 : vector<8x128xf32>
    %cst_152 = arith.constant 1.000000e+00 : f32
    %341 = vector.broadcast %cst_152 : f32 to vector<8x128xf32>
    %342 = arith.addf %341, %340 : vector<8x128xf32>
    %cst_153 = arith.constant 1.000000e+00 : f32
    %343 = vector.broadcast %cst_153 : f32 to vector<8x128xf32>
    %344 = arith.divf %343, %342 : vector<8x128xf32>
    %345 = vector.extract_strided_slice %336 {offsets = [0, 128], sizes = [8, 128], strides = [1, 1]} : vector<8x512xf32> to vector<8x128xf32>
    %cst_154 = arith.constant 0.000000e+00 : f32
    %346 = vector.broadcast %cst_154 : f32 to vector<8x128xf32>
    %347 = arith.subf %346, %345 : vector<8x128xf32>
    %348 = math.exp %347 : vector<8x128xf32>
    %cst_155 = arith.constant 1.000000e+00 : f32
    %349 = vector.broadcast %cst_155 : f32 to vector<8x128xf32>
    %350 = arith.addf %349, %348 : vector<8x128xf32>
    %cst_156 = arith.constant 1.000000e+00 : f32
    %351 = vector.broadcast %cst_156 : f32 to vector<8x128xf32>
    %352 = arith.divf %351, %350 : vector<8x128xf32>
    %353 = vector.extract_strided_slice %336 {offsets = [0, 256], sizes = [8, 128], strides = [1, 1]} : vector<8x512xf32> to vector<8x128xf32>
    %354 = math.tanh %353 : vector<8x128xf32>
    %355 = vector.extract_strided_slice %336 {offsets = [0, 384], sizes = [8, 128], strides = [1, 1]} : vector<8x512xf32> to vector<8x128xf32>
    %cst_157 = arith.constant 0.000000e+00 : f32
    %356 = vector.broadcast %cst_157 : f32 to vector<8x128xf32>
    %357 = arith.subf %356, %355 : vector<8x128xf32>
    %358 = math.exp %357 : vector<8x128xf32>
    %cst_158 = arith.constant 1.000000e+00 : f32
    %359 = vector.broadcast %cst_158 : f32 to vector<8x128xf32>
    %360 = arith.addf %359, %358 : vector<8x128xf32>
    %cst_159 = arith.constant 1.000000e+00 : f32
    %361 = vector.broadcast %cst_159 : f32 to vector<8x128xf32>
    %362 = arith.divf %361, %360 : vector<8x128xf32>
    %363 = arith.mulf %352, %329 : vector<8x128xf32>
    %364 = arith.mulf %344, %354 : vector<8x128xf32>
    %365 = arith.addf %363, %364 : vector<8x128xf32>
    %366 = math.tanh %365 : vector<8x128xf32>
    %367 = arith.mulf %362, %366 : vector<8x128xf32>
    %c72_160 = arith.constant 72 : index
    %c0_161 = arith.constant 0 : index
    %368 = vector.load %arg10[%c72_160, %c0_161] : memref<128x128xf32, #tpu.memory_space<vmem>>, vector<8x128xf32>
    tpu.vector_store %arg10[%c72_160, %c0_161], %367 {strides = array<i32>} : memref<128x128xf32, #tpu.memory_space<vmem>>, vector<8x128xf32>,
    %c80 = arith.constant 80 : index
    %c0_162 = arith.constant 0 : index
    %369 = vector.load %arg9[%c80, %c0_162] : memref<128x512xf32, #tpu.memory_space<vmem>>, vector<8x512xf32>
    %c0_163 = arith.constant 0 : index
    %c0_164 = arith.constant 0 : index
    %370 = vector.load %arg4[%c0_163, %c0_164] : memref<128x512xf32, #tpu.memory_space<vmem>>, vector<128x512xf32>
    %cst_165 = arith.constant dense<0.000000e+00> : vector<8x512xf32>
    %371 = tpu.matmul %367, %370, %cst_165 {dimension_numbers = #tpu.dot_dimension_numbers<[1], [0], [0], [1], [0, 0, 1, 1], [], []>} : vector<8x128xf32>, vector<128x512xf32>, vector<8x512xf32> -> vector<8x512xf32>
    %372 = arith.addf %369, %371 : vector<8x512xf32>
    %373 = vector.extract_strided_slice %372 {offsets = [0, 0], sizes = [8, 128], strides = [1, 1]} : vector<8x512xf32> to vector<8x128xf32>
    %cst_166 = arith.constant 0.000000e+00 : f32
    %374 = vector.broadcast %cst_166 : f32 to vector<8x128xf32>
    %375 = arith.subf %374, %373 : vector<8x128xf32>
    %376 = math.exp %375 : vector<8x128xf32>
    %cst_167 = arith.constant 1.000000e+00 : f32
    %377 = vector.broadcast %cst_167 : f32 to vector<8x128xf32>
    %378 = arith.addf %377, %376 : vector<8x128xf32>
    %cst_168 = arith.constant 1.000000e+00 : f32
    %379 = vector.broadcast %cst_168 : f32 to vector<8x128xf32>
    %380 = arith.divf %379, %378 : vector<8x128xf32>
    %381 = vector.extract_strided_slice %372 {offsets = [0, 128], sizes = [8, 128], strides = [1, 1]} : vector<8x512xf32> to vector<8x128xf32>
    %cst_169 = arith.constant 0.000000e+00 : f32
    %382 = vector.broadcast %cst_169 : f32 to vector<8x128xf32>
    %383 = arith.subf %382, %381 : vector<8x128xf32>
    %384 = math.exp %383 : vector<8x128xf32>
    %cst_170 = arith.constant 1.000000e+00 : f32
    %385 = vector.broadcast %cst_170 : f32 to vector<8x128xf32>
    %386 = arith.addf %385, %384 : vector<8x128xf32>
    %cst_171 = arith.constant 1.000000e+00 : f32
    %387 = vector.broadcast %cst_171 : f32 to vector<8x128xf32>
    %388 = arith.divf %387, %386 : vector<8x128xf32>
    %389 = vector.extract_strided_slice %372 {offsets = [0, 256], sizes = [8, 128], strides = [1, 1]} : vector<8x512xf32> to vector<8x128xf32>
    %390 = math.tanh %389 : vector<8x128xf32>
    %391 = vector.extract_strided_slice %372 {offsets = [0, 384], sizes = [8, 128], strides = [1, 1]} : vector<8x512xf32> to vector<8x128xf32>
    %cst_172 = arith.constant 0.000000e+00 : f32
    %392 = vector.broadcast %cst_172 : f32 to vector<8x128xf32>
    %393 = arith.subf %392, %391 : vector<8x128xf32>
    %394 = math.exp %393 : vector<8x128xf32>
    %cst_173 = arith.constant 1.000000e+00 : f32
    %395 = vector.broadcast %cst_173 : f32 to vector<8x128xf32>
    %396 = arith.addf %395, %394 : vector<8x128xf32>
    %cst_174 = arith.constant 1.000000e+00 : f32
    %397 = vector.broadcast %cst_174 : f32 to vector<8x128xf32>
    %398 = arith.divf %397, %396 : vector<8x128xf32>
    %399 = arith.mulf %388, %365 : vector<8x128xf32>
    %400 = arith.mulf %380, %390 : vector<8x128xf32>
    %401 = arith.addf %399, %400 : vector<8x128xf32>
    %402 = math.tanh %401 : vector<8x128xf32>
    %403 = arith.mulf %398, %402 : vector<8x128xf32>
    %c80_175 = arith.constant 80 : index
    %c0_176 = arith.constant 0 : index
    %404 = vector.load %arg10[%c80_175, %c0_176] : memref<128x128xf32, #tpu.memory_space<vmem>>, vector<8x128xf32>
    tpu.vector_store %arg10[%c80_175, %c0_176], %403 {strides = array<i32>} : memref<128x128xf32, #tpu.memory_space<vmem>>, vector<8x128xf32>,
    %c88 = arith.constant 88 : index
    %c0_177 = arith.constant 0 : index
    %405 = vector.load %arg9[%c88, %c0_177] : memref<128x512xf32, #tpu.memory_space<vmem>>, vector<8x512xf32>
    %c0_178 = arith.constant 0 : index
    %c0_179 = arith.constant 0 : index
    %406 = vector.load %arg4[%c0_178, %c0_179] : memref<128x512xf32, #tpu.memory_space<vmem>>, vector<128x512xf32>
    %cst_180 = arith.constant dense<0.000000e+00> : vector<8x512xf32>
    %407 = tpu.matmul %403, %406, %cst_180 {dimension_numbers = #tpu.dot_dimension_numbers<[1], [0], [0], [1], [0, 0, 1, 1], [], []>} : vector<8x128xf32>, vector<128x512xf32>, vector<8x512xf32> -> vector<8x512xf32>
    %408 = arith.addf %405, %407 : vector<8x512xf32>
    %409 = vector.extract_strided_slice %408 {offsets = [0, 0], sizes = [8, 128], strides = [1, 1]} : vector<8x512xf32> to vector<8x128xf32>
    %cst_181 = arith.constant 0.000000e+00 : f32
    %410 = vector.broadcast %cst_181 : f32 to vector<8x128xf32>
    %411 = arith.subf %410, %409 : vector<8x128xf32>
    %412 = math.exp %411 : vector<8x128xf32>
    %cst_182 = arith.constant 1.000000e+00 : f32
    %413 = vector.broadcast %cst_182 : f32 to vector<8x128xf32>
    %414 = arith.addf %413, %412 : vector<8x128xf32>
    %cst_183 = arith.constant 1.000000e+00 : f32
    %415 = vector.broadcast %cst_183 : f32 to vector<8x128xf32>
    %416 = arith.divf %415, %414 : vector<8x128xf32>
    %417 = vector.extract_strided_slice %408 {offsets = [0, 128], sizes = [8, 128], strides = [1, 1]} : vector<8x512xf32> to vector<8x128xf32>
    %cst_184 = arith.constant 0.000000e+00 : f32
    %418 = vector.broadcast %cst_184 : f32 to vector<8x128xf32>
    %419 = arith.subf %418, %417 : vector<8x128xf32>
    %420 = math.exp %419 : vector<8x128xf32>
    %cst_185 = arith.constant 1.000000e+00 : f32
    %421 = vector.broadcast %cst_185 : f32 to vector<8x128xf32>
    %422 = arith.addf %421, %420 : vector<8x128xf32>
    %cst_186 = arith.constant 1.000000e+00 : f32
    %423 = vector.broadcast %cst_186 : f32 to vector<8x128xf32>
    %424 = arith.divf %423, %422 : vector<8x128xf32>
    %425 = vector.extract_strided_slice %408 {offsets = [0, 256], sizes = [8, 128], strides = [1, 1]} : vector<8x512xf32> to vector<8x128xf32>
    %426 = math.tanh %425 : vector<8x128xf32>
    %427 = vector.extract_strided_slice %408 {offsets = [0, 384], sizes = [8, 128], strides = [1, 1]} : vector<8x512xf32> to vector<8x128xf32>
    %cst_187 = arith.constant 0.000000e+00 : f32
    %428 = vector.broadcast %cst_187 : f32 to vector<8x128xf32>
    %429 = arith.subf %428, %427 : vector<8x128xf32>
    %430 = math.exp %429 : vector<8x128xf32>
    %cst_188 = arith.constant 1.000000e+00 : f32
    %431 = vector.broadcast %cst_188 : f32 to vector<8x128xf32>
    %432 = arith.addf %431, %430 : vector<8x128xf32>
    %cst_189 = arith.constant 1.000000e+00 : f32
    %433 = vector.broadcast %cst_189 : f32 to vector<8x128xf32>
    %434 = arith.divf %433, %432 : vector<8x128xf32>
    %435 = arith.mulf %424, %401 : vector<8x128xf32>
    %436 = arith.mulf %416, %426 : vector<8x128xf32>
    %437 = arith.addf %435, %436 : vector<8x128xf32>
    %438 = math.tanh %437 : vector<8x128xf32>
    %439 = arith.mulf %434, %438 : vector<8x128xf32>
    %c88_190 = arith.constant 88 : index
    %c0_191 = arith.constant 0 : index
    %440 = vector.load %arg10[%c88_190, %c0_191] : memref<128x128xf32, #tpu.memory_space<vmem>>, vector<8x128xf32>
    tpu.vector_store %arg10[%c88_190, %c0_191], %439 {strides = array<i32>} : memref<128x128xf32, #tpu.memory_space<vmem>>, vector<8x128xf32>,
    %c96 = arith.constant 96 : index
    %c0_192 = arith.constant 0 : index
    %441 = vector.load %arg9[%c96, %c0_192] : memref<128x512xf32, #tpu.memory_space<vmem>>, vector<8x512xf32>
    %c0_193 = arith.constant 0 : index
    %c0_194 = arith.constant 0 : index
    %442 = vector.load %arg4[%c0_193, %c0_194] : memref<128x512xf32, #tpu.memory_space<vmem>>, vector<128x512xf32>
    %cst_195 = arith.constant dense<0.000000e+00> : vector<8x512xf32>
    %443 = tpu.matmul %439, %442, %cst_195 {dimension_numbers = #tpu.dot_dimension_numbers<[1], [0], [0], [1], [0, 0, 1, 1], [], []>} : vector<8x128xf32>, vector<128x512xf32>, vector<8x512xf32> -> vector<8x512xf32>
    %444 = arith.addf %441, %443 : vector<8x512xf32>
    %445 = vector.extract_strided_slice %444 {offsets = [0, 0], sizes = [8, 128], strides = [1, 1]} : vector<8x512xf32> to vector<8x128xf32>
    %cst_196 = arith.constant 0.000000e+00 : f32
    %446 = vector.broadcast %cst_196 : f32 to vector<8x128xf32>
    %447 = arith.subf %446, %445 : vector<8x128xf32>
    %448 = math.exp %447 : vector<8x128xf32>
    %cst_197 = arith.constant 1.000000e+00 : f32
    %449 = vector.broadcast %cst_197 : f32 to vector<8x128xf32>
    %450 = arith.addf %449, %448 : vector<8x128xf32>
    %cst_198 = arith.constant 1.000000e+00 : f32
    %451 = vector.broadcast %cst_198 : f32 to vector<8x128xf32>
    %452 = arith.divf %451, %450 : vector<8x128xf32>
    %453 = vector.extract_strided_slice %444 {offsets = [0, 128], sizes = [8, 128], strides = [1, 1]} : vector<8x512xf32> to vector<8x128xf32>
    %cst_199 = arith.constant 0.000000e+00 : f32
    %454 = vector.broadcast %cst_199 : f32 to vector<8x128xf32>
    %455 = arith.subf %454, %453 : vector<8x128xf32>
    %456 = math.exp %455 : vector<8x128xf32>
    %cst_200 = arith.constant 1.000000e+00 : f32
    %457 = vector.broadcast %cst_200 : f32 to vector<8x128xf32>
    %458 = arith.addf %457, %456 : vector<8x128xf32>
    %cst_201 = arith.constant 1.000000e+00 : f32
    %459 = vector.broadcast %cst_201 : f32 to vector<8x128xf32>
    %460 = arith.divf %459, %458 : vector<8x128xf32>
    %461 = vector.extract_strided_slice %444 {offsets = [0, 256], sizes = [8, 128], strides = [1, 1]} : vector<8x512xf32> to vector<8x128xf32>
    %462 = math.tanh %461 : vector<8x128xf32>
    %463 = vector.extract_strided_slice %444 {offsets = [0, 384], sizes = [8, 128], strides = [1, 1]} : vector<8x512xf32> to vector<8x128xf32>
    %cst_202 = arith.constant 0.000000e+00 : f32
    %464 = vector.broadcast %cst_202 : f32 to vector<8x128xf32>
    %465 = arith.subf %464, %463 : vector<8x128xf32>
    %466 = math.exp %465 : vector<8x128xf32>
    %cst_203 = arith.constant 1.000000e+00 : f32
    %467 = vector.broadcast %cst_203 : f32 to vector<8x128xf32>
    %468 = arith.addf %467, %466 : vector<8x128xf32>
    %cst_204 = arith.constant 1.000000e+00 : f32
    %469 = vector.broadcast %cst_204 : f32 to vector<8x128xf32>
    %470 = arith.divf %469, %468 : vector<8x128xf32>
    %471 = arith.mulf %460, %437 : vector<8x128xf32>
    %472 = arith.mulf %452, %462 : vector<8x128xf32>
    %473 = arith.addf %471, %472 : vector<8x128xf32>
    %474 = math.tanh %473 : vector<8x128xf32>
    %475 = arith.mulf %470, %474 : vector<8x128xf32>
    %c96_205 = arith.constant 96 : index
    %c0_206 = arith.constant 0 : index
    %476 = vector.load %arg10[%c96_205, %c0_206] : memref<128x128xf32, #tpu.memory_space<vmem>>, vector<8x128xf32>
    tpu.vector_store %arg10[%c96_205, %c0_206], %475 {strides = array<i32>} : memref<128x128xf32, #tpu.memory_space<vmem>>, vector<8x128xf32>,
    %c104 = arith.constant 104 : index
    %c0_207 = arith.constant 0 : index
    %477 = vector.load %arg9[%c104, %c0_207] : memref<128x512xf32, #tpu.memory_space<vmem>>, vector<8x512xf32>
    %c0_208 = arith.constant 0 : index
    %c0_209 = arith.constant 0 : index
    %478 = vector.load %arg4[%c0_208, %c0_209] : memref<128x512xf32, #tpu.memory_space<vmem>>, vector<128x512xf32>
    %cst_210 = arith.constant dense<0.000000e+00> : vector<8x512xf32>
    %479 = tpu.matmul %475, %478, %cst_210 {dimension_numbers = #tpu.dot_dimension_numbers<[1], [0], [0], [1], [0, 0, 1, 1], [], []>} : vector<8x128xf32>, vector<128x512xf32>, vector<8x512xf32> -> vector<8x512xf32>
    %480 = arith.addf %477, %479 : vector<8x512xf32>
    %481 = vector.extract_strided_slice %480 {offsets = [0, 0], sizes = [8, 128], strides = [1, 1]} : vector<8x512xf32> to vector<8x128xf32>
    %cst_211 = arith.constant 0.000000e+00 : f32
    %482 = vector.broadcast %cst_211 : f32 to vector<8x128xf32>
    %483 = arith.subf %482, %481 : vector<8x128xf32>
    %484 = math.exp %483 : vector<8x128xf32>
    %cst_212 = arith.constant 1.000000e+00 : f32
    %485 = vector.broadcast %cst_212 : f32 to vector<8x128xf32>
    %486 = arith.addf %485, %484 : vector<8x128xf32>
    %cst_213 = arith.constant 1.000000e+00 : f32
    %487 = vector.broadcast %cst_213 : f32 to vector<8x128xf32>
    %488 = arith.divf %487, %486 : vector<8x128xf32>
    %489 = vector.extract_strided_slice %480 {offsets = [0, 128], sizes = [8, 128], strides = [1, 1]} : vector<8x512xf32> to vector<8x128xf32>
    %cst_214 = arith.constant 0.000000e+00 : f32
    %490 = vector.broadcast %cst_214 : f32 to vector<8x128xf32>
    %491 = arith.subf %490, %489 : vector<8x128xf32>
    %492 = math.exp %491 : vector<8x128xf32>
    %cst_215 = arith.constant 1.000000e+00 : f32
    %493 = vector.broadcast %cst_215 : f32 to vector<8x128xf32>
    %494 = arith.addf %493, %492 : vector<8x128xf32>
    %cst_216 = arith.constant 1.000000e+00 : f32
    %495 = vector.broadcast %cst_216 : f32 to vector<8x128xf32>
    %496 = arith.divf %495, %494 : vector<8x128xf32>
    %497 = vector.extract_strided_slice %480 {offsets = [0, 256], sizes = [8, 128], strides = [1, 1]} : vector<8x512xf32> to vector<8x128xf32>
    %498 = math.tanh %497 : vector<8x128xf32>
    %499 = vector.extract_strided_slice %480 {offsets = [0, 384], sizes = [8, 128], strides = [1, 1]} : vector<8x512xf32> to vector<8x128xf32>
    %cst_217 = arith.constant 0.000000e+00 : f32
    %500 = vector.broadcast %cst_217 : f32 to vector<8x128xf32>
    %501 = arith.subf %500, %499 : vector<8x128xf32>
    %502 = math.exp %501 : vector<8x128xf32>
    %cst_218 = arith.constant 1.000000e+00 : f32
    %503 = vector.broadcast %cst_218 : f32 to vector<8x128xf32>
    %504 = arith.addf %503, %502 : vector<8x128xf32>
    %cst_219 = arith.constant 1.000000e+00 : f32
    %505 = vector.broadcast %cst_219 : f32 to vector<8x128xf32>
    %506 = arith.divf %505, %504 : vector<8x128xf32>
    %507 = arith.mulf %496, %473 : vector<8x128xf32>
    %508 = arith.mulf %488, %498 : vector<8x128xf32>
    %509 = arith.addf %507, %508 : vector<8x128xf32>
    %510 = math.tanh %509 : vector<8x128xf32>
    %511 = arith.mulf %506, %510 : vector<8x128xf32>
    %c104_220 = arith.constant 104 : index
    %c0_221 = arith.constant 0 : index
    %512 = vector.load %arg10[%c104_220, %c0_221] : memref<128x128xf32, #tpu.memory_space<vmem>>, vector<8x128xf32>
    tpu.vector_store %arg10[%c104_220, %c0_221], %511 {strides = array<i32>} : memref<128x128xf32, #tpu.memory_space<vmem>>, vector<8x128xf32>,
    %c112 = arith.constant 112 : index
    %c0_222 = arith.constant 0 : index
    %513 = vector.load %arg9[%c112, %c0_222] : memref<128x512xf32, #tpu.memory_space<vmem>>, vector<8x512xf32>
    %c0_223 = arith.constant 0 : index
    %c0_224 = arith.constant 0 : index
    %514 = vector.load %arg4[%c0_223, %c0_224] : memref<128x512xf32, #tpu.memory_space<vmem>>, vector<128x512xf32>
    %cst_225 = arith.constant dense<0.000000e+00> : vector<8x512xf32>
    %515 = tpu.matmul %511, %514, %cst_225 {dimension_numbers = #tpu.dot_dimension_numbers<[1], [0], [0], [1], [0, 0, 1, 1], [], []>} : vector<8x128xf32>, vector<128x512xf32>, vector<8x512xf32> -> vector<8x512xf32>
    %516 = arith.addf %513, %515 : vector<8x512xf32>
    %517 = vector.extract_strided_slice %516 {offsets = [0, 0], sizes = [8, 128], strides = [1, 1]} : vector<8x512xf32> to vector<8x128xf32>
    %cst_226 = arith.constant 0.000000e+00 : f32
    %518 = vector.broadcast %cst_226 : f32 to vector<8x128xf32>
    %519 = arith.subf %518, %517 : vector<8x128xf32>
    %520 = math.exp %519 : vector<8x128xf32>
    %cst_227 = arith.constant 1.000000e+00 : f32
    %521 = vector.broadcast %cst_227 : f32 to vector<8x128xf32>
    %522 = arith.addf %521, %520 : vector<8x128xf32>
    %cst_228 = arith.constant 1.000000e+00 : f32
    %523 = vector.broadcast %cst_228 : f32 to vector<8x128xf32>
    %524 = arith.divf %523, %522 : vector<8x128xf32>
    %525 = vector.extract_strided_slice %516 {offsets = [0, 128], sizes = [8, 128], strides = [1, 1]} : vector<8x512xf32> to vector<8x128xf32>
    %cst_229 = arith.constant 0.000000e+00 : f32
    %526 = vector.broadcast %cst_229 : f32 to vector<8x128xf32>
    %527 = arith.subf %526, %525 : vector<8x128xf32>
    %528 = math.exp %527 : vector<8x128xf32>
    %cst_230 = arith.constant 1.000000e+00 : f32
    %529 = vector.broadcast %cst_230 : f32 to vector<8x128xf32>
    %530 = arith.addf %529, %528 : vector<8x128xf32>
    %cst_231 = arith.constant 1.000000e+00 : f32
    %531 = vector.broadcast %cst_231 : f32 to vector<8x128xf32>
    %532 = arith.divf %531, %530 : vector<8x128xf32>
    %533 = vector.extract_strided_slice %516 {offsets = [0, 256], sizes = [8, 128], strides = [1, 1]} : vector<8x512xf32> to vector<8x128xf32>
    %534 = math.tanh %533 : vector<8x128xf32>
    %535 = vector.extract_strided_slice %516 {offsets = [0, 384], sizes = [8, 128], strides = [1, 1]} : vector<8x512xf32> to vector<8x128xf32>
    %cst_232 = arith.constant 0.000000e+00 : f32
    %536 = vector.broadcast %cst_232 : f32 to vector<8x128xf32>
    %537 = arith.subf %536, %535 : vector<8x128xf32>
    %538 = math.exp %537 : vector<8x128xf32>
    %cst_233 = arith.constant 1.000000e+00 : f32
    %539 = vector.broadcast %cst_233 : f32 to vector<8x128xf32>
    %540 = arith.addf %539, %538 : vector<8x128xf32>
    %cst_234 = arith.constant 1.000000e+00 : f32
    %541 = vector.broadcast %cst_234 : f32 to vector<8x128xf32>
    %542 = arith.divf %541, %540 : vector<8x128xf32>
    %543 = arith.mulf %532, %509 : vector<8x128xf32>
    %544 = arith.mulf %524, %534 : vector<8x128xf32>
    %545 = arith.addf %543, %544 : vector<8x128xf32>
    %546 = math.tanh %545 : vector<8x128xf32>
    %547 = arith.mulf %542, %546 : vector<8x128xf32>
    %c112_235 = arith.constant 112 : index
    %c0_236 = arith.constant 0 : index
    %548 = vector.load %arg10[%c112_235, %c0_236] : memref<128x128xf32, #tpu.memory_space<vmem>>, vector<8x128xf32>
    tpu.vector_store %arg10[%c112_235, %c0_236], %547 {strides = array<i32>} : memref<128x128xf32, #tpu.memory_space<vmem>>, vector<8x128xf32>,
    %c120 = arith.constant 120 : index
    %c0_237 = arith.constant 0 : index
    %549 = vector.load %arg9[%c120, %c0_237] : memref<128x512xf32, #tpu.memory_space<vmem>>, vector<8x512xf32>
    %c0_238 = arith.constant 0 : index
    %c0_239 = arith.constant 0 : index
    %550 = vector.load %arg4[%c0_238, %c0_239] : memref<128x512xf32, #tpu.memory_space<vmem>>, vector<128x512xf32>
    %cst_240 = arith.constant dense<0.000000e+00> : vector<8x512xf32>
    %551 = tpu.matmul %547, %550, %cst_240 {dimension_numbers = #tpu.dot_dimension_numbers<[1], [0], [0], [1], [0, 0, 1, 1], [], []>} : vector<8x128xf32>, vector<128x512xf32>, vector<8x512xf32> -> vector<8x512xf32>
    %552 = arith.addf %549, %551 : vector<8x512xf32>
    %553 = vector.extract_strided_slice %552 {offsets = [0, 0], sizes = [8, 128], strides = [1, 1]} : vector<8x512xf32> to vector<8x128xf32>
    %cst_241 = arith.constant 0.000000e+00 : f32
    %554 = vector.broadcast %cst_241 : f32 to vector<8x128xf32>
    %555 = arith.subf %554, %553 : vector<8x128xf32>
    %556 = math.exp %555 : vector<8x128xf32>
    %cst_242 = arith.constant 1.000000e+00 : f32
    %557 = vector.broadcast %cst_242 : f32 to vector<8x128xf32>
    %558 = arith.addf %557, %556 : vector<8x128xf32>
    %cst_243 = arith.constant 1.000000e+00 : f32
    %559 = vector.broadcast %cst_243 : f32 to vector<8x128xf32>
    %560 = arith.divf %559, %558 : vector<8x128xf32>
    %561 = vector.extract_strided_slice %552 {offsets = [0, 128], sizes = [8, 128], strides = [1, 1]} : vector<8x512xf32> to vector<8x128xf32>
    %cst_244 = arith.constant 0.000000e+00 : f32
    %562 = vector.broadcast %cst_244 : f32 to vector<8x128xf32>
    %563 = arith.subf %562, %561 : vector<8x128xf32>
    %564 = math.exp %563 : vector<8x128xf32>
    %cst_245 = arith.constant 1.000000e+00 : f32
    %565 = vector.broadcast %cst_245 : f32 to vector<8x128xf32>
    %566 = arith.addf %565, %564 : vector<8x128xf32>
    %cst_246 = arith.constant 1.000000e+00 : f32
    %567 = vector.broadcast %cst_246 : f32 to vector<8x128xf32>
    %568 = arith.divf %567, %566 : vector<8x128xf32>
    %569 = vector.extract_strided_slice %552 {offsets = [0, 256], sizes = [8, 128], strides = [1, 1]} : vector<8x512xf32> to vector<8x128xf32>
    %570 = math.tanh %569 : vector<8x128xf32>
    %571 = vector.extract_strided_slice %552 {offsets = [0, 384], sizes = [8, 128], strides = [1, 1]} : vector<8x512xf32> to vector<8x128xf32>
    %cst_247 = arith.constant 0.000000e+00 : f32
    %572 = vector.broadcast %cst_247 : f32 to vector<8x128xf32>
    %573 = arith.subf %572, %571 : vector<8x128xf32>
    %574 = math.exp %573 : vector<8x128xf32>
    %cst_248 = arith.constant 1.000000e+00 : f32
    %575 = vector.broadcast %cst_248 : f32 to vector<8x128xf32>
    %576 = arith.addf %575, %574 : vector<8x128xf32>
    %cst_249 = arith.constant 1.000000e+00 : f32
    %577 = vector.broadcast %cst_249 : f32 to vector<8x128xf32>
    %578 = arith.divf %577, %576 : vector<8x128xf32>
    %579 = arith.mulf %568, %545 : vector<8x128xf32>
    %580 = arith.mulf %560, %570 : vector<8x128xf32>
    %581 = arith.addf %579, %580 : vector<8x128xf32>
    %582 = math.tanh %581 : vector<8x128xf32>
    %583 = arith.mulf %578, %582 : vector<8x128xf32>
    %c120_250 = arith.constant 120 : index
    %c0_251 = arith.constant 0 : index
    %584 = vector.load %arg10[%c120_250, %c0_251] : memref<128x128xf32, #tpu.memory_space<vmem>>, vector<8x128xf32>
    tpu.vector_store %arg10[%c120_250, %c0_251], %583 {strides = array<i32>} : memref<128x128xf32, #tpu.memory_space<vmem>>, vector<8x128xf32>,
    %c0_252 = arith.constant 0 : index
    %c0_253 = arith.constant 0 : index
    %585 = vector.load %arg10[%c0_252, %c0_253] : memref<128x128xf32, #tpu.memory_space<vmem>>, vector<128x128xf32>
    %c0_254 = arith.constant 0 : index
    %c0_255 = arith.constant 0 : index
    %586 = vector.load %arg6[%c0_254, %c0_255] : memref<128x128xf32, #tpu.memory_space<vmem>>, vector<128x128xf32>
    %cst_256 = arith.constant dense<0.000000e+00> : vector<128x128xf32>
    %587 = tpu.matmul %585, %586, %cst_256 {dimension_numbers = #tpu.dot_dimension_numbers<[1], [0], [0], [1], [0, 0, 1, 1], [], []>} : vector<128x128xf32>, vector<128x128xf32>, vector<128x128xf32> -> vector<128x128xf32>
    %c0_257 = arith.constant 0 : index
    %c0_258 = arith.constant 0 : index
    %588 = vector.load %arg7[%c0_257, %c0_258] : memref<1x128xf32, #tpu.memory_space<vmem>>, vector<1x128xf32>
    %589 = vector.broadcast %588 : vector<1x128xf32> to vector<128x128xf32>
    %590 = arith.addf %587, %589 : vector<128x128xf32>
    %c0_259 = arith.constant 0 : index
    %c0_260 = arith.constant 0 : index
    %591 = vector.load %arg8[%c0_259, %c0_260] : memref<128x128xf32, #tpu.memory_space<vmem>>, vector<128x128xf32>
    tpu.vector_store %arg8[%c0_259, %c0_260], %590 {strides = array<i32>} : memref<128x128xf32, #tpu.memory_space<vmem>>, vector<128x128xf32>,
    return
  }
}

</mosaic_0001>

<bundles_post_ra>
// kernel: lstm_classifier_forward.1
= control target key start
LH: loop header
LB: loop body
LE: loop exit
PB: predicated region body
PF: predicated region fallthrough
CT: control target
= control target key end

     0   :  { %v8408_v2 = vmov 0.0   ;;  %vm71_vm0 = vcmask 64512   ;;  %s8399_s3 = inlined_call_operand.vmem [shape: f32[8,512], index: 3, kind: input, shape index: {}]   ;;  %s8400_s0 = inlined_call_operand.vmem [shape: f32[128,8], index: 0, kind: input, shape index: {}]   ;;  %s8401_s4 = inlined_call_operand.vmem [shape: f32[128,512], index: 4, kind: input, shape index: {}]   ;;  %s8402_s1 = inlined_call_operand.vmem [shape: f32[8,128], index: 1, kind: input, shape index: {}]   ;;  %s8403_s5 = inlined_call_operand.vmem [shape: f32[1,512], index: 5, kind: input, shape index: {}]   ;;  %s8404_s2 = inlined_call_operand.vmem [shape: f32[8,128], index: 2, kind: input, shape index: {}]   ;;  %s8405_s6 = inlined_call_operand.vmem [shape: f32[128,128], index: 6, kind: input, shape index: {}]   ;;  %s8406_s7 = inlined_call_operand.vmem [shape: f32[1,128], index: 7, kind: input, shape index: {}]   ;;  %s8407_s8 = inlined_call_operand.vmem [shape: f32[128,128], index: 8, kind: output, shape index: {}]  }
   0x1   :  { %v46_v0 = vld [vmem:[%s8399_s3 + $0x8] sm:$0xff]  ;;  %v45_v1 = vld [vmem:[%s8399_s3] sm:$0xff]  ;;  %232 = vmatprep.mubr.f32.mxu1 %v8408_v2  ;;  %184 = vmatprep.mubr.f32.mxu0 %v8408_v2  ;;  %v48_v4 = vld [vmem:[%s8399_s3 + $0x18] sm:$0xff] }
   0x2   :  { %v6156_v3 = vld [vmem:[%s8400_s0 + $0x40] sm:$0xff]  ;;  %5713 = vmatprep.subr.mxu1 %v46_v0  ;;  %v47_v5 = vld [vmem:[%s8399_s3 + $0x10] sm:$0xff]  ;;  %120 = vmatprep.subr.mxu0 %v46_v0  ;;  %v513_v7 = vld [vmem:[%s8401_s4 + $0x8] sm:$0xff] }
   0x3   :  { %5714 = vmatpush1.msra.mxu1 %v45_v1  ;;  %121 = vmatpush1.msra.mxu0 %v45_v1  ;;  %v6170_v6 = vld [vmem:[%s8400_s0] sm:$0xff]  ;;  %v517_v8 = vld [vmem:[%s8401_s4 + $0x28] sm:$0xff]  ;;  %v6232_v23 = vld [vmem:[%s8400_s0 + $0x50] sm:$0xff] }
   0x4   :  { %4544 = vmatmul.mubr.msk.f32.vlgmr.msra.gmra.mrb[0].mxu1 %vm71_vm0, %v6156_v3  ;;  %281 = vmatprep.subr.mxu1 %v48_v4  ;;  %v6182_v9 = vld [vmem:[%s8400_s0 + $0x48] sm:$0xff]  ;;  %v6184_v10 = vpack.c.bf16 %v517_v8, %v513_v7  ;;  %v512_v11 = vld [vmem:[%s8401_s4] sm:$0xff]  ;;  %v6255_v29 = vld [vmem:[%s8400_s0 + $0x10] sm:$0xff] }
   0x5   :  { %282 = vmatpush1.msra.mxu1 %v47_v5  ;;  %238 = vmatprep.mubr.f32.mxu1 %v8408_v2  ;;  %v516_v12 = vld [vmem:[%s8401_s4 + $0x20] sm:$0xff]  ;;  %v521_v14 = vld [vmem:[%s8401_s4 + $0x48] sm:$0xff]  ;;  %v515_v30 = vld [vmem:[%s8401_s4 + $0x18] sm:$0xff] }
   0x6   :  { %4536 = vmatmul.mubr.msk.f32.vlgmr.msra.gmra.mrb[0].mxu0 %vm71_vm0, %v6170_v6  ;;  %v6194_v13 = vpack.c.bf16 %v516_v12, %v512_v11  ;;  %v525_v15 = vld [vmem:[%s8401_s4 + $0x68] sm:$0xff]  ;;  %4658 = vmatprep.subr.bf16.mxu0 %v6184_v10  ;;  %v520_v18 = vld [vmem:[%s8401_s4 + $0x40] sm:$0xff]  ;;  %v519_v32 = vld [vmem:[%s8401_s4 + $0x38] sm:$0xff] }
   0x7   :  { %190 = vmatprep.mubr.f32.mxu0 %v8408_v2  ;;  %v6207_v16 = vld [vmem:[%s8400_s0 + $0x8] sm:$0xff]  ;;  %v6209_v17 = vpack.c.bf16 %v525_v15, %v521_v14  ;;  %v524_v19 = vld [vmem:[%s8401_s4 + $0x60] sm:$0xff]  ;;  %v6272_v33 = vld [vmem:[%s8400_s0 + $0x58] sm:$0xff]  ;;  %v6283_v37 = vpack.c.bf16 %v519_v32, %v515_v30 }
   0x8   :  { %4545 = vmatmul.mubr.msk.f32.gmra.mrb[2].mxu1 %vm71_vm0, %v6182_v9  ;;  %4660 = vmatpush1.bf16.msra.mxu0 %v6194_v13  ;;  %v6220_v20 = vpack.c.bf16 %v524_v19, %v520_v18  ;;  %v529_v21 = vld [vmem:[%s8401_s4 + $0x88] sm:$0xff]  ;;  %v528_v25 = vld [vmem:[%s8401_s4 + $0x80] sm:$0xff]  ;;  %v6297_v40 = vld [vmem:[%s8400_s0 + $0x18] sm:$0xff] }
   0x9   :  { %v533_v22 = vld [vmem:[%s8401_s4 + $0xa8] sm:$0xff]  ;;  %244 = vmatprep.mubr.f32.mxu1 %v8408_v2  ;;  %4662 = vmatprep.subr.bf16.mxu0 %v6209_v17  ;;  %v532_v26 = vld [vmem:[%s8401_s4 + $0xa0] sm:$0xff]  ;;  %v6377_v58 = vld [vmem:[%s8400_s0 + $0x70] sm:$0xff] }
   0xa   :  { %v6235_v24 = vpack.c.bf16 %v533_v22, %v529_v21  ;;  %4537 = vmatmul.mubr.msk.f32.gmra.mrb[2].mxu0 %vm71_vm0, %v6207_v16  ;;  %v537_v27 = vld [vmem:[%s8401_s4 + $0xc8] sm:$0xff]  ;;  %v6263_v31 = vpack.c.bf16 %v532_v26, %v528_v25  ;;  %v536_v35 = vld [vmem:[%s8401_s4 + $0xc0] sm:$0xff]  ;;  %4690 = vmatprep.subr.bf16.mxu1 %v6283_v37  ;;  %v6400_v0 = vld [vmem:[%s8400_s0 + $0x30] sm:$0xff] }
   0xb   :  { %v541_v28 = vld [vmem:[%s8401_s4 + $0xe8] sm:$0xff]  ;;  %196 = vmatprep.mubr.f32.mxu0 %v8408_v2  ;;  %v540_v36 = vld [vmem:[%s8401_s4 + $0xe0] sm:$0xff]  ;;  %v6411_v4 = vld [vmem:[%s8400_s0 + $0x78] sm:$0xff] }
   0xc   :  { %4546 = vmatmul.mubr.msk.f32.gmra.mrb[4].mxu1 %vm71_vm0, %v6232_v23  ;;  %4664 = vmatpush1.bf16.msra.mxu0 %v6220_v20  ;;  %v6275_v34 = vpack.c.bf16 %v541_v28, %v537_v27  ;;  %v545_v38 = vld [vmem:[%s8401_s4 + $0x108] sm:$0xff]  ;;  %v6303_v41 = vpack.c.bf16 %v540_v36, %v536_v35  ;;  %v6309_v42 = vld [vmem:[%s8400_s0 + $0x60] sm:$0xff]  ;;  %v514_v11 = vld [vmem:[%s8401_s4 + $0x10] sm:$0xff] }
   0xd   :  { %250 = vmatprep.mubr.f32.mxu1 %v8408_v2  ;;  %4666 = vmatprep.subr.bf16.mxu0 %v6235_v24  ;;  %v549_v39 = vld [vmem:[%s8401_s4 + $0x128] sm:$0xff]  ;;  %v544_v44 = vld [vmem:[%s8401_s4 + $0x100] sm:$0xff]  ;;  %v518_v12 = vld [vmem:[%s8401_s4 + $0x30] sm:$0xff] }
   0xe   :  { %4538 = vmatmul.mubr.msk.f32.gmra.mrb[4].mxu0 %vm71_vm0, %v6255_v29  ;;  %v6312_v43 = vpack.c.bf16 %v549_v39, %v545_v38  ;;  %v548_v45 = vld [vmem:[%s8401_s4 + $0x120] sm:$0xff]  ;;  %v553_v46 = vld [vmem:[%s8401_s4 + $0x148] sm:$0xff]  ;;  %v523_v14 = vld [vmem:[%s8401_s4 + $0x58] sm:$0xff]  ;;  %v6448_v21 = vpack.c.bf16 %v518_v12, %v514_v11 }
   0xf   :  { %202 = vmatprep.mubr.f32.mxu0 %v8408_v2  ;;  %v557_v47 = vld [vmem:[%s8401_s4 + $0x168] sm:$0xff]  ;;  %v6332_v48 = vld [vmem:[%s8400_s0 + $0x20] sm:$0xff]  ;;  %v6337_v49 = vpack.c.bf16 %v548_v45, %v544_v44  ;;  %v527_v15 = vld [vmem:[%s8401_s4 + $0x78] sm:$0xff] }
  0x10   :  { %4547 = vmatmul.mubr.msk.f32.gmra.mrb[6].mxu1 %vm71_vm0, %v6272_v33  ;;  %4668 = vmatpush1.bf16.msra.mxu0 %v6263_v31  ;;  %v6343_v50 = vld [vmem:[%s8400_s0 + $0x68] sm:$0xff]  ;;  %v6346_v51 = vpack.c.bf16 %v557_v47, %v553_v46  ;;  %v552_v52 = vld [vmem:[%s8401_s4 + $0x140] sm:$0xff]  ;;  %v6440_v18 = vld [vmem:[%s8400_s0 + $0x38] sm:$0xff]  ;;  %v6451_v22 = vpack.c.bf16 %v527_v15, %v523_v14 }
  0x11   :  { %256 = vmatprep.mubr.f32.mxu1 %v8408_v2  ;;  %4670 = vmatprep.subr.bf16.mxu0 %v6275_v34  ;;  %v556_v53 = vld [vmem:[%s8401_s4 + $0x160] sm:$0xff]  ;;  %v561_v54 = vld [vmem:[%s8401_s4 + $0x188] sm:$0xff]  ;;  %v522_v25 = vld [vmem:[%s8401_s4 + $0x50] sm:$0xff] }
  0x12   :  { %4539 = vmatmul.mubr.msk.f32.gmra.mrb[6].mxu0 %vm71_vm0, %v6297_v40  ;;  %v565_v55 = vld [vmem:[%s8401_s4 + $0x1a8] sm:$0xff]  ;;  %v6371_v57 = vpack.c.bf16 %v556_v53, %v552_v52  ;;  %v560_v60 = vld [vmem:[%s8401_s4 + $0x180] sm:$0xff]  ;;  %v526_v26 = vld [vmem:[%s8401_s4 + $0x70] sm:$0xff] }
  0x13   :  { %208 = vmatprep.mubr.f32.mxu0 %v8408_v2  ;;  %v6366_v56 = vld [vmem:[%s8400_s0 + $0x28] sm:$0xff]  ;;  %v6380_v59 = vpack.c.bf16 %v565_v55, %v561_v54  ;;  %v564_v61 = vld [vmem:[%s8401_s4 + $0x1a0] sm:$0xff]  ;;  %v531_v27 = vld [vmem:[%s8401_s4 + $0x98] sm:$0xff]  ;;  %v6478_v32 = vpack.c.bf16 %v526_v26, %v522_v25 }
  0x14   :  { %4548 = vmatmul.mubr.msk.f32.gmra.mrb[8].mxu1 %vm71_vm0, %v6309_v42  ;;  %4672 = vmatpush1.bf16.msra.mxu0 %v6303_v41  ;;  %v569_v62 = vld [vmem:[%s8401_s4 + $0x1c8] sm:$0xff]  ;;  %v6405_v1 = vpack.c.bf16 %v564_v61, %v560_v60  ;;  %v568_v7 = vld [vmem:[%s8401_s4 + $0x1c0] sm:$0xff]  ;;  %v535_v28 = vld [vmem:[%s8401_s4 + $0xb8] sm:$0xff] }
  0x15   :  { %262 = vmatprep.mubr.f32.mxu1 %v8408_v2  ;;  %4674 = vmatprep.subr.bf16.mxu0 %v6312_v43  ;;  %v573_v63 = vld [vmem:[%s8401_s4 + $0x1e8] sm:$0xff]  ;;  %v572_v8 = vld [vmem:[%s8401_s4 + $0x1e0] sm:$0xff]  ;;  %v6481_v35 = vpack.c.bf16 %v535_v28, %v531_v27  ;;  %v534_v36 = vld [vmem:[%s8401_s4 + $0xb0] sm:$0xff] }
  0x16   :  { %4540 = vmatmul.mubr.msk.f32.gmra.mrb[8].mxu0 %vm71_vm0, %v6332_v48  ;;  %v6414_v5 = vpack.c.bf16 %v573_v63, %v569_v62  ;;  %v6445_v19 = vpack.c.bf16 %v572_v8, %v568_v7  ;;  %v6474_v30 = vld [vmem:[%s8402_s1] sm:$0xff]  ;;  %v539_v38 = vld [vmem:[%s8401_s4 + $0xd8] sm:$0xff]  ;;  %v538_v46 = vld [vmem:[%s8401_s4 + $0xd0] sm:$0xff] }
  0x17   :  { %214 = vmatprep.mubr.f32.mxu0 %v8408_v2  ;;  %v543_v39 = vld [vmem:[%s8401_s4 + $0xf8] sm:$0xff]  ;;  %v546_v55 = vld [vmem:[%s8401_s4 + $0x110] sm:$0xff] }
  0x18   :  { %4549 = vmatmul.mubr.msk.f32.gmra.mrb[10].mxu1 %vm71_vm0, %v6343_v50  ;;  %4676 = vmatpush1.bf16.msra.mxu0 %v6337_v49  ;;  %v6505_v45 = vpack.c.bf16 %v543_v39, %v539_v38  ;;  %v547_v47 = vld [vmem:[%s8401_s4 + $0x118] sm:$0xff]  ;;  %v554_v7 = vld [vmem:[%s8401_s4 + $0x150] sm:$0xff] }
  0x19   :  { %268 = vmatprep.mubr.f32.mxu1 %v8408_v2  ;;  %4678 = vmatprep.subr.bf16.mxu0 %v6346_v51  ;;  %v551_v52 = vld [vmem:[%s8401_s4 + $0x138] sm:$0xff]  ;;  %v562_v15 = vld [vmem:[%s8401_s4 + $0x190] sm:$0xff] }
  0x1a   :  { %4541 = vmatmul.mubr.msk.f32.gmra.mrb[10].mxu0 %vm71_vm0, %v6366_v56  ;;  %v6529_v54 = vpack.c.bf16 %v551_v52, %v547_v47  ;;  %v555_v60 = vld [vmem:[%s8401_s4 + $0x158] sm:$0xff]  ;;  %v51_v52 = vlaneseq }
  0x1b   :  { %220 = vmatprep.mubr.f32.mxu0 %v8408_v2  ;;  %v559_v61 = vld [vmem:[%s8401_s4 + $0x178] sm:$0xff] }
  0x1c   :  { %4550 = vmatmul.mubr.msk.f32.gmra.mrb[12].mxu1 %vm71_vm0, %v6377_v58  ;;  %4680 = vmatpush1.bf16.msra.mxu0 %v6371_v57  ;;  %v6552_v63 = vpack.c.bf16 %v559_v61, %v555_v60  ;;  %v563_v8 = vld [vmem:[%s8401_s4 + $0x198] sm:$0xff]  ;;  %v49_v60 = vld [vmem:[%s8403_s5] sm:$0xf] }
  0x1d   :  { %274 = vmatprep.mubr.f32.mxu1 %v8408_v2  ;;  %4682 = vmatprep.subr.bf16.mxu0 %v6380_v59  ;;  %v567_v11 = vld [vmem:[%s8401_s4 + $0x1b8] sm:$0xff] }
  0x1e   :  { %4542 = vmatmul.mubr.msk.f32.gmra.mrb[12].mxu0 %vm71_vm0, %v6400_v0  ;;  %v6575_v14 = vpack.c.bf16 %v567_v11, %v563_v8  ;;  %v571_v25 = vld [vmem:[%s8401_s4 + $0x1d8] sm:$0xff] }
  0x1f   :  { %226 = vmatprep.mubr.f32.mxu0 %v8408_v2  ;;  %v575_v26 = vld [vmem:[%s8401_s4 + $0x1f8] sm:$0xff] }
  0x20   :  { %4551 = vmatmul.mubr.msk.f32.gmra.mrb[14].mxu1 %vm71_vm0, %v6411_v4  ;;  %4684 = vmatpush1.bf16.msra.mxu0 %v6405_v1  ;;  %v6598_v28 = vpack.c.bf16 %v575_v26, %v571_v25 }
  0x21   :  { %345 = vmatprep.mubr.f32.mxu1 %v8408_v2  ;;  %4686 = vmatprep.subr.bf16.mxu0 %v6414_v5 }
  0x22   :  { %4543 = vmatmul.mubr.msk.f32.gmra.mrb[14].mxu0 %vm71_vm0, %v6440_v18 }
  0x23   :  { %640 = vmatprep.mubr.f32.mxu0 %v8408_v2 }
  0x24   :  { %4552 = vmatmul.mubr.msk.f32.vlgmr.msra.gmra.mrb[16].mxu1 %vm71_vm0, %v6170_v6  ;;  %4688 = vmatpush1.bf16.msra.mxu0 %v6445_v19  ;;  %v530_v6 = vld [vmem:[%s8401_s4 + $0x90] sm:$0xff] }
  0x25   :  { %4692 = vmatpush1.bf16.msra.mxu1 %v6448_v21  ;;  %351 = vmatprep.mubr.f32.mxu1 %v8408_v2  ;;  %v6502_v44 = vpack.c.bf16 %v534_v36, %v530_v6  ;;  %v570_v6 = vld [vmem:[%s8401_s4 + $0x1d0] sm:$0xff] }
  0x26   :  { %4694 = vmatprep.subr.bf16.mxu1 %v6451_v22  ;;  %4722 = vmatprep.subr.bf16.mxu0 %v6184_v10 }
  0x27   :  { %641 = vmatmul.mubr.f32.vlgmr.msra.gmra.mrb[0].mxu0 %v6474_v30 }
  0x28   :  { %4553 = vmatmul.mubr.msk.f32.gmra.mrb[18].mxu1 %vm71_vm0, %v6207_v16  ;;  %4724 = vmatpush1.bf16.msra.mxu0 %v6194_v13  ;;  %v542_v16 = vld [vmem:[%s8401_s4 + $0xf0] sm:$0xff] }
  0x29   :  { %357 = vmatprep.mubr.f32.mxu1 %v8408_v2  ;;  %4696 = vmatpush1.bf16.msra.mxu1 %v6478_v32  ;;  %v6526_v53 = vpack.c.bf16 %v542_v16, %v538_v46 }
  0x2a   :  { %4698 = vmatprep.subr.bf16.mxu1 %v6481_v35  ;;  %4726 = vmatprep.subr.bf16.mxu0 %v6209_v17 }
  0x2b   :  { %879 = vmatprep.mubr.f32.mxu0 %v8408_v2 }
  0x2c   :  { %4554 = vmatmul.mubr.msk.f32.gmra.mrb[20].mxu1 %vm71_vm0, %v6255_v29  ;;  %4728 = vmatpush1.bf16.msra.mxu0 %v6220_v20  ;;  %v550_v29 = vld [vmem:[%s8401_s4 + $0x130] sm:$0xff] }
  0x2d   :  { %363 = vmatprep.mubr.f32.mxu1 %v8408_v2  ;;  %4700 = vmatpush1.bf16.msra.mxu1 %v6502_v44  ;;  %v6549_v62 = vpack.c.bf16 %v550_v29, %v546_v55  ;;  %v52_v55 = vshrl.u32 %v51_v52, 7 }
  0x2e   :  { %4702 = vmatprep.subr.bf16.mxu1 %v6505_v45  ;;  %4730 = vmatprep.subr.bf16.mxu0 %v6235_v24 }
  0x2f   :  { %v57_v29 = vsub.s32 1, %v52_v55  ;;  %v53_v61 = vsub.s32 0, %v52_v55  ;;  %v65_v52 = vsub.s32 3, %v52_v55 }
  0x30   :  { %4555 = vmatmul.mubr.msk.f32.gmra.mrb[22].mxu1 %vm71_vm0, %v6297_v40  ;;  %4732 = vmatpush1.bf16.msra.mxu0 %v6263_v31  ;;  %v558_v40 = vld [vmem:[%s8401_s4 + $0x170] sm:$0xff] }
  0x31   :  { %369 = vmatprep.mubr.f32.mxu1 %v8408_v2  ;;  %4704 = vmatpush1.bf16.msra.mxu1 %v6526_v53  ;;  %v6572_v12 = vpack.c.bf16 %v558_v40, %v554_v7  ;;  %v6702_v7 = vrot.slane %v49_v60, %v57_v29  ;;  %v6704_v40 = vrot.slane %v49_v60, %v53_v61 }
  0x32   :  { %4706 = vmatprep.subr.bf16.mxu1 %v6529_v54  ;;  %4734 = vmatprep.subr.bf16.mxu0 %v6275_v34  ;;  %v6710_v61 = vrot.slane %v49_v60, %v65_v52 }
  0x34   :  { %4556 = vmatmul.mubr.msk.f32.gmra.mrb[24].mxu1 %vm71_vm0, %v6332_v48  ;;  %4736 = vmatpush1.bf16.msra.mxu0 %v6303_v41  ;;  %v566_v48 = vld [vmem:[%s8401_s4 + $0x1b0] sm:$0xff] }
  0x35   :  { %375 = vmatprep.mubr.f32.mxu1 %v8408_v2  ;;  %4708 = vmatpush1.bf16.msra.mxu1 %v6549_v62  ;;  %v6595_v27 = vpack.c.bf16 %v566_v48, %v562_v15 }
  0x36   :  { %4710 = vmatprep.subr.bf16.mxu1 %v6552_v63  ;;  %4738 = vmatprep.subr.bf16.mxu0 %v6312_v43 }
  0x38   :  { %4557 = vmatmul.mubr.msk.f32.gmra.mrb[26].mxu1 %vm71_vm0, %v6366_v56  ;;  %4740 = vmatpush1.bf16.msra.mxu0 %v6337_v49  ;;  %v574_v56 = vld [vmem:[%s8401_s4 + $0x1f0] sm:$0xff] }
  0x39   :  { %381 = vmatprep.mubr.f32.mxu1 %v8408_v2  ;;  %4712 = vmatpush1.bf16.msra.mxu1 %v6572_v12  ;;  %v6612_v36 = vpack.c.bf16 %v574_v56, %v570_v6  ;;  %v61_v6 = vsub.s32 2, %v52_v55 }
  0x3a   :  { %4714 = vmatprep.subr.bf16.mxu1 %v6575_v14  ;;  %4742 = vmatprep.subr.bf16.mxu0 %v6346_v51 }
  0x3c   :  { %4558 = vmatmul.mubr.msk.f32.gmra.mrb[28].mxu1 %vm71_vm0, %v6400_v0  ;;  %4744 = vmatpush1.bf16.msra.mxu0 %v6371_v57 }
  0x3d   :  { %387 = vmatprep.mubr.f32.mxu1 %v8408_v2  ;;  %4716 = vmatpush1.bf16.msra.mxu1 %v6595_v27 }
  0x3e   :  { %4718 = vmatprep.subr.bf16.mxu1 %v6598_v28  ;;  %4746 = vmatprep.subr.bf16.mxu0 %v6380_v59 }
  0x40   :  { %4559 = vmatmul.mubr.msk.f32.gmra.mrb[30].mxu1 %vm71_vm0, %v6440_v18  ;;  %4748 = vmatpush1.bf16.msra.mxu0 %v6405_v1 }
  0x41   :  { %393 = vmatprep.mubr.f32.mxu1 %v8408_v2  ;;  %4720 = vmatpush1.bf16.msra.mxu1 %v6612_v36 }
  0x42   :  { %4754 = vmatprep.subr.bf16.mxu1 %v6283_v37  ;;  %4750 = vmatprep.subr.bf16.mxu0 %v6414_v5 }
  0x44   :  { %4560 = vmatmul.mubr.msk.f32.gmra.mrb[32].mxu1 %vm71_vm0, %v6156_v3  ;;  %4752 = vmatpush1.bf16.msra.mxu0 %v6445_v19 }
  0x45   :  { %399 = vmatprep.mubr.f32.mxu1 %v8408_v2  ;;  %4786 = vmatprep.subr.bf16.mxu0 %v6184_v10 }
  0x48   :  { %4561 = vmatmul.mubr.msk.f32.gmra.mrb[34].mxu1 %vm71_vm0, %v6182_v9 }
  0x49   :  { %405 = vmatprep.mubr.f32.mxu1 %v8408_v2 }
  0x4c   :  { %4562 = vmatmul.mubr.msk.f32.gmra.mrb[36].mxu1 %vm71_vm0, %v6232_v23 }
  0x4d   :  { %411 = vmatprep.mubr.f32.mxu1 %v8408_v2 }
  0x50   :  { %4563 = vmatmul.mubr.msk.f32.gmra.mrb[38].mxu1 %vm71_vm0, %v6272_v33 }
  0x51   :  { %417 = vmatprep.mubr.f32.mxu1 %v8408_v2 }
  0x54   :  { %4564 = vmatmul.mubr.msk.f32.gmra.mrb[40].mxu1 %vm71_vm0, %v6309_v42 }
  0x55   :  { %423 = vmatprep.mubr.f32.mxu1 %v8408_v2 }
  0x58   :  { %4565 = vmatmul.mubr.msk.f32.gmra.mrb[42].mxu1 %vm71_vm0, %v6343_v50 }
  0x59   :  { %429 = vmatprep.mubr.f32.mxu1 %v8408_v2 }
  0x5c   :  { %4566 = vmatmul.mubr.msk.f32.gmra.mrb[44].mxu1 %vm71_vm0, %v6377_v58 }
  0x5d   :  { %435 = vmatprep.mubr.f32.mxu1 %v8408_v2 }
  0x60   :  { %4567 = vmatmul.mubr.msk.f32.gmra.mrb[46].mxu1 %vm71_vm0, %v6411_v4 }
  0x61   :  { %711 = vmatprep.mubr.f32.mxu1 %v8408_v2 }
  0x64   :  { %712 = vmatmul.mubr.f32.vlgmr.msra.gmra.mrb[16].mxu1 %v6474_v30 }
  0x65   :  { %4756 = vmatpush1.bf16.msra.mxu1 %v6448_v21  ;;  %950 = vmatprep.mubr.f32.mxu1 %v8408_v2 }
  0x66   :  { %4758 = vmatprep.subr.bf16.mxu1 %v6451_v22 }
  0x69   :  { %4760 = vmatpush1.bf16.msra.mxu1 %v6478_v32 }
  0x6a   :  { %4762 = vmatprep.subr.bf16.mxu1 %v6481_v35 }
  0x6d   :  { %4764 = vmatpush1.bf16.msra.mxu1 %v6502_v44 }
  0x6e   :  { %4766 = vmatprep.subr.bf16.mxu1 %v6505_v45 }
  0x71   :  { %4768 = vmatpush1.bf16.msra.mxu1 %v6526_v53 }
  0x72   :  { %4770 = vmatprep.subr.bf16.mxu1 %v6529_v54 }
  0x75   :  { %4772 = vmatpush1.bf16.msra.mxu1 %v6549_v62 }
  0x76   :  { %4774 = vmatprep.subr.bf16.mxu1 %v6552_v63 }
  0x79   :  { %4776 = vmatpush1.bf16.msra.mxu1 %v6572_v12 }
  0x7a   :  { %4778 = vmatprep.subr.bf16.mxu1 %v6575_v14 }
  0x7d   :  { %4780 = vmatpush1.bf16.msra.mxu1 %v6595_v27 }
  0x7e   :  { %4782 = vmatprep.subr.bf16.mxu1 %v6598_v28 }
  0x81   :  { %4784 = vmatpush1.bf16.msra.mxu1 %v6612_v36 }
  0x82   :  { %4818 = vmatprep.subr.bf16.mxu1 %v6283_v37 }
  0xd7   :  { %v6667_v3 = vpop.f32.mrb[0].mxu1 }
  0xd8   :  { %v6669_v9 = vpop.f32.mrb[1].mxu1 }
  0xdb   :  { %v6671_v10 = vpop.f32.mrb[2].mxu1 }
  0xdc   :  { %v6673_v23 = vpop.f32.mrb[3].mxu1 }
  0xdf   :  { %v6675_v33 = vpop.f32.mrb[4].mxu1 }
  0xe0   :  { %v6677_v42 = vpop.f32.mrb[5].mxu1 }
  0xe3   :  { %v6679_v50 = vpop.f32.mrb[6].mxu1 }
  0xe4   :  { %v6681_v58 = vpop.f32.mrb[7].mxu1 }
  0xe7   :  { %v6683_v0 = vpop.f32.mrb[8].mxu1 }
  0xe8   :  { %v6685_v4 = vpop.f32.mrb[9].mxu1 }
  0xe9   :  { %8417 = vst [vmem:[#allocation4_spill] sm:$0xff] %v6685_v4 }
  0xeb   :  { %v6687_v37 = vpop.f32.mrb[10].mxu1 }
  0xec   :  { %8418 = vst [vmem:[#allocation5_spill] sm:$0xff] %v6687_v37  ;;  %v6689_v18 = vpop.f32.mrb[11].mxu1 }
  0xed   :  { %8419 = vst [vmem:[#allocation6_spill] sm:$0xff] %v6689_v18 }
  0xef   :  { %v6691_v30 = vpop.f32.mrb[12].mxu1 }
  0xf0   :  { %8420 = vst [vmem:[#allocation7_spill] sm:$0xff] %v6691_v30  ;;  %v6693_v38 = vpop.f32.mrb[13].mxu1 }
  0xf1   :  { %8421 = vst [vmem:[#allocation8_spill] sm:$0xff] %v6693_v38 }
  0xf3   :  { %v6695_v39 = vpop.f32.mrb[14].mxu1 }
  0xf4   :  { %8422 = vst [vmem:[#allocation9_spill] sm:$0xff] %v6695_v39  ;;  %v6697_v46 = vpop.f32.mrb[15].mxu1  ;;  %v6708_v39 = vrot.slane %v49_v60, %v61_v6 }
  0xf5   :  { %8423 = vst [vmem:[#allocation10_spill] sm:$0xff] %v6697_v46 }
  0xfa   :  { %v642_v16 = vpop.f32.mrb[0].mxu0 }
  0xfb   :  { %v644_v47 = vpop.f32.mrb[1].mxu0  ;;  %v5715_v11 = vadd.f32 %v642_v16, %v6704_v40 }
  0xfc   :  { %v5716_v8 = vadd.f32 %v644_v47, %v6702_v7 }
  0xfd   :  { %v722_v48 = vsub.f32 0.0, %v5715_v11 }
  0xfe   :  { %v728_v15 = vsub.f32 0.0, %v5716_v8 }
  0xff   :  { %v723_v26 = vmul.f32 1.442695, %v722_v48  ;;  %v507_v48 = vld [vmem:[%s8404_s2] sm:$0xff] }
 0x100   :  { %v729_v25 = vmul.f32 1.442695, %v728_v15 }
 0x102   :  { %5844 = vpow2.f32 %v729_v25 }
 0x103   :  { %5846 = vpow2.f32 %v723_v26 }
 0x10c   :  { %v5845_v56 = vpop.eup %5844 }
 0x10d   :  { %v5847_v2 = vpop.eup %5846  ;;  %v731_v46 = vadd.f32 1.0, %v5845_v56 }
 0x10e   :  { %v725_v29 = vadd.f32 1.0, %v5847_v2 }
 0x10f   :  { %5848 = vrcp.f32 %v731_v46 }
 0x110   :  { %5850 = vrcp.f32 %v725_v29 }
 0x119   :  { %v5849_v55 = vpop.eup %5848 }
 0x11a   :  { %v5851_v2 = vpop.eup %5850  ;;  %v741_v25 = vmul.f32 %v5849_v55, %v507_v48  ;;  %v1230_v55 = vld [vmem:[%s8401_s4 + $0x8] sm:$0xff] }
 0x11b   :  { %v1234_v48 = vld [vmem:[%s8401_s4 + $0x28] sm:$0xff] }
 0x137   :  { %v713_v38 = vpop.f32.mrb[16].mxu1 }
 0x138   :  { %v5763_v16 = vadd.f32 %v713_v38, %v6708_v39  ;;  %v715_v47 = vpop.f32.mrb[17].mxu1 }
 0x139   :  { %v5764_v8 = vadd.f32 %v715_v47, %v6710_v61 }
 0x13a   :  { %5852 = vtanh.f32 %v5763_v16  ;;  %v8425_v16 = vmov 0.0  }
 0x13b   :  { %v735_v11 = vsub.f32 0.0, %v5764_v8 }
 0x13d   :  { %v736_v15 = vmul.f32 1.442695, %v735_v11 }
 0x13f   :  { %5854 = vpow2.f32 %v736_v15 }
 0x144   :  { %v5853_v60 = vpop.eup %5852 }
 0x145   :  { %v742_v26 = vmul.f32 %v5853_v60, %v5851_v2  ;;  %v1232_v2 = vld [vmem:[%s8401_s4 + $0x18] sm:$0xff]  ;;  %v6779_v60 = vpack.c.bf16 %v1234_v48, %v1230_v55  ;;  %v1263_v55 = vld [vmem:[%s8401_s4 + $0x110] sm:$0xff] }
 0x147   :  { %v6717_v46 = vadd.f32 %v742_v26, %v741_v25  ;;  %v1236_v25 = vld [vmem:[%s8401_s4 + $0x38] sm:$0xff]  ;;  %v1229_v26 = vld [vmem:[%s8401_s4] sm:$0xff] }
 0x149   :  { %v5855_v38 = vpop.eup %5854  ;;  %5856 = vtanh.f32 %v6717_v46 }
 0x14a   :  { %v738_v6 = vadd.f32 1.0, %v5855_v38  ;;  %v6790_v38 = vpack.c.bf16 %v1236_v25, %v1232_v2  ;;  %v1270_v25 = vld [vmem:[%s8401_s4 + $0x148] sm:$0xff] }
 0x14c   :  { %5858 = vrcp.f32 %v738_v6 }
 0x153   :  { %v5857_v56 = vpop.eup %5856 }
 0x156   :  { %v5859_v52 = vpop.eup %5858 }
 0x157   :  { %v6720_v29 = vmul.f32 %v5859_v52, %v5857_v56  ;;  %v1231_v56 = vld [vmem:[%s8401_s4 + $0x10] sm:$0xff] }
 0x158   :  { %v1235_v52 = vld [vmem:[%s8401_s4 + $0x30] sm:$0xff] }
 0x159   :  { %8424 = vst [vmem:[#allocation11_spill] sm:$0xff] %v6720_v29  ;;  %880 = vmatmul.mubr.f32.vlgmr.msra.gmra.mrb[2].mxu0 %v6720_v29  ;;  %951 = vmatmul.mubr.f32.vlgmr.msra.gmra.mrb[18].mxu1 %v6720_v29 }
 0x15a   :  { %4788 = vmatpush1.bf16.msra.mxu0 %v6194_v13  ;;  %4820 = vmatpush1.bf16.msra.mxu1 %v6448_v21 }
 0x15b   :  { %4790 = vmatprep.subr.bf16.mxu0 %v6209_v17  ;;  %4822 = vmatprep.subr.bf16.mxu1 %v6451_v22 }
 0x15c   :  { %1118 = vmatprep.mubr.f32.mxu0 %v8425_v16  ;;  %1189 = vmatprep.mubr.f32.mxu1 %v8425_v16 }
 0x15e   :  { %4792 = vmatpush1.bf16.msra.mxu0 %v6220_v20  ;;  %4824 = vmatpush1.bf16.msra.mxu1 %v6478_v32 }
 0x15f   :  { %4794 = vmatprep.subr.bf16.mxu0 %v6235_v24  ;;  %4826 = vmatprep.subr.bf16.mxu1 %v6481_v35 }
 0x162   :  { %4796 = vmatpush1.bf16.msra.mxu0 %v6263_v31  ;;  %4828 = vmatpush1.bf16.msra.mxu1 %v6502_v44 }
 0x163   :  { %4798 = vmatprep.subr.bf16.mxu0 %v6275_v34  ;;  %4830 = vmatprep.subr.bf16.mxu1 %v6505_v45 }
 0x166   :  { %4800 = vmatpush1.bf16.msra.mxu0 %v6303_v41  ;;  %4832 = vmatpush1.bf16.msra.mxu1 %v6526_v53 }
 0x167   :  { %4802 = vmatprep.subr.bf16.mxu0 %v6312_v43  ;;  %4834 = vmatprep.subr.bf16.mxu1 %v6529_v54 }
 0x16a   :  { %4804 = vmatpush1.bf16.msra.mxu0 %v6337_v49  ;;  %4836 = vmatpush1.bf16.msra.mxu1 %v6549_v62 }
 0x16b   :  { %4806 = vmatprep.subr.bf16.mxu0 %v6346_v51  ;;  %4838 = vmatprep.subr.bf16.mxu1 %v6552_v63 }
 0x16e   :  { %4808 = vmatpush1.bf16.msra.mxu0 %v6371_v57  ;;  %4840 = vmatpush1.bf16.msra.mxu1 %v6572_v12 }
 0x16f   :  { %4810 = vmatprep.subr.bf16.mxu0 %v6380_v59  ;;  %4842 = vmatprep.subr.bf16.mxu1 %v6575_v14 }
 0x172   :  { %4812 = vmatpush1.bf16.msra.mxu0 %v6405_v1  ;;  %4844 = vmatpush1.bf16.msra.mxu1 %v6595_v27 }
 0x173   :  { %4814 = vmatprep.subr.bf16.mxu0 %v6414_v5  ;;  %4846 = vmatprep.subr.bf16.mxu1 %v6598_v28 }
 0x176   :  { %4816 = vmatpush1.bf16.msra.mxu0 %v6445_v19  ;;  %4848 = vmatpush1.bf16.msra.mxu1 %v6612_v36 }
 0x177   :  { %4850 = vmatprep.subr.bf16.mxu0 %v6779_v60  ;;  %4882 = vmatprep.subr.bf16.mxu1 %v6790_v38 }
 0x22c   :  { %v881_v13 = vpop.f32.mrb[2].mxu0  ;;  %v952_v17 = vpop.f32.mrb[18].mxu1 }
 0x22d   :  { %v5717_v20 = vadd.f32 %v881_v13, %v6704_v40  ;;  %v883_v24 = vpop.f32.mrb[3].mxu0  ;;  %v954_v31 = vpop.f32.mrb[19].mxu1  ;;  %v5765_v5 = vadd.f32 %v952_v17, %v6708_v39  ;;  %v6801_v13 = vpack.c.bf16 %v1235_v52, %v1231_v56  ;;  %v1238_v17 = vld [vmem:[%s8401_s4 + $0x48] sm:$0xff]  ;;  %v1276_v56 = vld [vmem:[%s8401_s4 + $0x178] sm:$0xff]  ;;  %v1269_v52 = vld [vmem:[%s8401_s4 + $0x140] sm:$0xff] }
 0x22e   :  { %v5718_v34 = vadd.f32 %v883_v24, %v6702_v7  ;;  %v5766_v57 = vadd.f32 %v954_v31, %v6710_v61  ;;  %v1240_v24 = vld [vmem:[%s8401_s4 + $0x58] sm:$0xff] }
 0x22f   :  { %v961_v41 = vsub.f32 0.0, %v5717_v20  ;;  %v1242_v20 = vld [vmem:[%s8401_s4 + $0x68] sm:$0xff] }
 0x230   :  { %v967_v43 = vsub.f32 0.0, %v5718_v34  ;;  %v974_v59 = vsub.f32 0.0, %v5766_v57  ;;  %v6815_v31 = vpack.c.bf16 %v1242_v20, %v1238_v17  ;;  %v1244_v34 = vld [vmem:[%s8401_s4 + $0x78] sm:$0xff]  ;;  %v1239_v57 = vld [vmem:[%s8401_s4 + $0x50] sm:$0xff]  ;;  %v1273_v17 = vld [vmem:[%s8401_s4 + $0x160] sm:$0xff] }
 0x231   :  { %v962_v49 = vmul.f32 1.442695, %v961_v41  ;;  %v1237_v41 = vld [vmem:[%s8401_s4 + $0x40] sm:$0xff] }
 0x232   :  { %v968_v51 = vmul.f32 1.442695, %v967_v43  ;;  %v975_v1 = vmul.f32 1.442695, %v974_v59  ;;  %v1241_v43 = vld [vmem:[%s8401_s4 + $0x60] sm:$0xff]  ;;  %v1243_v59 = vld [vmem:[%s8401_s4 + $0x70] sm:$0xff] }
 0x233   :  { %5860 = vpow2.f32 %v962_v49  ;;  %v6826_v49 = vpack.c.bf16 %v1244_v34, %v1240_v24  ;;  %v6932_v24 = vpack.c.bf16 %v1273_v17, %v1269_v52  ;;  %v1271_v34 = vld [vmem:[%s8401_s4 + $0x150] sm:$0xff] }
 0x234   :  { %5862 = vpow2.f32 %v968_v51  ;;  %v6828_v51 = vpack.c.bf16 %v1241_v43, %v1237_v41  ;;  %v1275_v41 = vld [vmem:[%s8401_s4 + $0x170] sm:$0xff]  ;;  %v1278_v43 = vld [vmem:[%s8401_s4 + $0x188] sm:$0xff] }
 0x235   :  { %5864 = vpow2.f32 %v975_v1  ;;  %v6837_v1 = vpack.c.bf16 %v1243_v59, %v1239_v57  ;;  %v6944_v57 = vpack.c.bf16 %v1275_v41, %v1271_v34  ;;  %v1282_v59 = vld [vmem:[%s8401_s4 + $0x1a8] sm:$0xff]  ;;  %v1287_v52 = vld [vmem:[%s8401_s4 + $0x1d0] sm:$0xff] }
 0x236   :  { %5866 = vtanh.f32 %v5765_v5  ;;  %v1246_v5 = vld [vmem:[%s8401_s4 + $0x88] sm:$0xff]  ;;  %v1291_v17 = vld [vmem:[%s8401_s4 + $0x1f0] sm:$0xff] }
 0x237   :  { %v7013_v41 = vpack.c.bf16 %v1291_v17, %v1287_v52 }
 0x23d   :  { %v5861_v19 = vpop.eup %5860 }
 0x23e   :  { %v5863_v21 = vpop.eup %5862  ;;  %v964_v22 = vadd.f32 1.0, %v5861_v19  ;;  %v1250_v19 = vld [vmem:[%s8401_s4 + $0xa8] sm:$0xff] }
 0x23f   :  { %v970_v32 = vadd.f32 1.0, %v5863_v21  ;;  %v5865_v62 = vpop.eup %5864  ;;  %v6848_v21 = vpack.c.bf16 %v1250_v19, %v1246_v5  ;;  %v1280_v5 = vld [vmem:[%s8401_s4 + $0x198] sm:$0xff] }
 0x240   :  { %5868 = vrcp.f32 %v964_v22  ;;  %v5867_v63 = vpop.eup %5866  ;;  %v977_v28 = vadd.f32 1.0, %v5865_v62  ;;  %v1245_v22 = vld [vmem:[%s8401_s4 + $0x80] sm:$0xff]  ;;  %v1284_v19 = vld [vmem:[%s8401_s4 + $0x1b8] sm:$0xff] }
 0x241   :  { %5870 = vrcp.f32 %v970_v32  ;;  %v1249_v32 = vld [vmem:[%s8401_s4 + $0xa0] sm:$0xff] }
 0x242   :  { %5872 = vrcp.f32 %v977_v28  ;;  %v6857_v62 = vpack.c.bf16 %v1249_v32, %v1245_v22  ;;  %v6956_v22 = vpack.c.bf16 %v1282_v59, %v1278_v43  ;;  %v6958_v32 = vpack.c.bf16 %v1284_v19, %v1280_v5 }
 0x24a   :  { %v5869_v12 = vpop.eup %5868 }
 0x24b   :  { %v5871_v14 = vpop.eup %5870  ;;  %v981_v27 = vmul.f32 %v5869_v12, %v5867_v63  ;;  %v1254_v63 = vld [vmem:[%s8401_s4 + $0xc8] sm:$0xff] }
 0x24c   :  { %v980_v36 = vmul.f32 %v5871_v14, %v6717_v46  ;;  %v5873_v8 = vpop.eup %5872  ;;  %v1233_v46 = vld [vmem:[%s8401_s4 + $0x20] sm:$0xff]  ;;  %v1258_v12 = vld [vmem:[%s8401_s4 + $0xe8] sm:$0xff] }
 0x24d   :  { %v6792_v6 = vpack.c.bf16 %v1233_v46, %v1229_v26  ;;  %v6868_v14 = vpack.c.bf16 %v1258_v12, %v1254_v63  ;;  %v1274_v26 = vld [vmem:[%s8401_s4 + $0x168] sm:$0xff]  ;;  %v1277_v63 = vld [vmem:[%s8401_s4 + $0x180] sm:$0xff] }
 0x24e   :  { %v6761_v47 = vadd.f32 %v981_v27, %v980_v36  ;;  %v1257_v27 = vld [vmem:[%s8401_s4 + $0xe0] sm:$0xff]  ;;  %v1266_v36 = vld [vmem:[%s8401_s4 + $0x128] sm:$0xff]  ;;  %v6918_v46 = vpack.c.bf16 %v1274_v26, %v1270_v25  ;;  %v1292_v25 = vld [vmem:[%s8401_s4 + $0x1f8] sm:$0xff] }
 0x24f   :  { %v1281_v12 = vld [vmem:[%s8401_s4 + $0x1a0] sm:$0xff] }
 0x250   :  { %5874 = vtanh.f32 %v6761_v47  ;;  %v1285_v26 = vld [vmem:[%s8401_s4 + $0x1c0] sm:$0xff] }
 0x25a   :  { %v5875_v11 = vpop.eup %5874 }
 0x25b   :  { %v6764_v15 = vmul.f32 %v5875_v11, %v5873_v8  ;;  %v1265_v11 = vld [vmem:[%s8401_s4 + $0x120] sm:$0xff] }
 0x25d   :  { %8426 = vst [vmem:[#allocation12_spill] sm:$0xff] %v6764_v15  ;;  %1119 = vmatmul.mubr.f32.vlgmr.msra.gmra.mrb[4].mxu0 %v6764_v15  ;;  %1190 = vmatmul.mubr.f32.vlgmr.msra.gmra.mrb[20].mxu1 %v6764_v15 }
 0x25e   :  { %1357 = vmatprep.mubr.f32.mxu0 %v8425_v16  ;;  %1428 = vmatprep.mubr.f32.mxu1 %v8425_v16 }
 0x25f   :  { %4852 = vmatpush1.bf16.msra.mxu0 %v6792_v6  ;;  %4884 = vmatpush1.bf16.msra.mxu1 %v6801_v13 }
 0x260   :  { %4854 = vmatprep.subr.bf16.mxu0 %v6815_v31  ;;  %4886 = vmatprep.subr.bf16.mxu1 %v6826_v49 }
 0x263   :  { %4856 = vmatpush1.bf16.msra.mxu0 %v6828_v51  ;;  %4888 = vmatpush1.bf16.msra.mxu1 %v6837_v1 }
 0x264   :  { %4890 = vmatprep.subr.bf16.mxu1 %v6481_v35  ;;  %4858 = vmatprep.subr.bf16.mxu0 %v6848_v21  ;;  %v1253_v35 = vld [vmem:[%s8401_s4 + $0xc0] sm:$0xff] }
 0x265   :  { %v6877_v28 = vpack.c.bf16 %v1257_v27, %v1253_v35  ;;  %v1279_v35 = vld [vmem:[%s8401_s4 + $0x190] sm:$0xff]  ;;  %v6970_v27 = vpack.c.bf16 %v1281_v12, %v1277_v63 }
 0x267   :  { %4860 = vmatpush1.bf16.msra.mxu0 %v6857_v62  ;;  %4892 = vmatpush1.bf16.msra.mxu1 %v6502_v44  ;;  %v1262_v44 = vld [vmem:[%s8401_s4 + $0x108] sm:$0xff] }
 0x268   :  { %4894 = vmatprep.subr.bf16.mxu1 %v6505_v45  ;;  %4862 = vmatprep.subr.bf16.mxu0 %v6868_v14  ;;  %v6888_v8 = vpack.c.bf16 %v1266_v36, %v1262_v44  ;;  %v1261_v45 = vld [vmem:[%s8401_s4 + $0x100] sm:$0xff]  ;;  %v1283_v44 = vld [vmem:[%s8401_s4 + $0x1b0] sm:$0xff]  ;;  %v1286_v36 = vld [vmem:[%s8401_s4 + $0x1c8] sm:$0xff] }
 0x269   :  { %v6900_v48 = vpack.c.bf16 %v1265_v11, %v1261_v45  ;;  %v1290_v45 = vld [vmem:[%s8401_s4 + $0x1e8] sm:$0xff]  ;;  %v6983_v11 = vpack.c.bf16 %v1283_v44, %v1279_v35 }
 0x26b   :  { %4864 = vmatpush1.bf16.msra.mxu0 %v6877_v28  ;;  %4896 = vmatpush1.bf16.msra.mxu1 %v6526_v53  ;;  %v1267_v53 = vld [vmem:[%s8401_s4 + $0x130] sm:$0xff] }
 0x26c   :  { %4898 = vmatprep.subr.bf16.mxu1 %v6529_v54  ;;  %4866 = vmatprep.subr.bf16.mxu0 %v6888_v8  ;;  %v6906_v2 = vpack.c.bf16 %v1267_v53, %v1263_v55  ;;  %v1272_v54 = vld [vmem:[%s8401_s4 + $0x158] sm:$0xff]  ;;  %v6985_v55 = vpack.c.bf16 %v1290_v45, %v1286_v36 }
 0x26d   :  { %v6930_v20 = vpack.c.bf16 %v1276_v56, %v1272_v54  ;;  %v1288_v53 = vld [vmem:[%s8401_s4 + $0x1d8] sm:$0xff]  ;;  %v1289_v56 = vld [vmem:[%s8401_s4 + $0x1e0] sm:$0xff] }
 0x26e   :  { %v6997_v54 = vpack.c.bf16 %v1292_v25, %v1288_v53  ;;  %v7009_v34 = vpack.c.bf16 %v1289_v56, %v1285_v26 }
 0x26f   :  { %4868 = vmatpush1.bf16.msra.mxu0 %v6900_v48  ;;  %4900 = vmatpush1.bf16.msra.mxu1 %v6906_v2 }
 0x270   :  { %4870 = vmatprep.subr.bf16.mxu0 %v6918_v46  ;;  %4902 = vmatprep.subr.bf16.mxu1 %v6930_v20 }
 0x273   :  { %4872 = vmatpush1.bf16.msra.mxu0 %v6932_v24  ;;  %4904 = vmatpush1.bf16.msra.mxu1 %v6944_v57 }
 0x274   :  { %4874 = vmatprep.subr.bf16.mxu0 %v6956_v22  ;;  %4906 = vmatprep.subr.bf16.mxu1 %v6958_v32 }
 0x277   :  { %4876 = vmatpush1.bf16.msra.mxu0 %v6970_v27  ;;  %4908 = vmatpush1.bf16.msra.mxu1 %v6983_v11 }
 0x278   :  { %4878 = vmatprep.subr.bf16.mxu0 %v6985_v55  ;;  %4910 = vmatprep.subr.bf16.mxu1 %v6997_v54 }
 0x27b   :  { %4880 = vmatpush1.bf16.msra.mxu0 %v7009_v34  ;;  %4912 = vmatpush1.bf16.msra.mxu1 %v7013_v41 }
 0x27c   :  { %4914 = vmatprep.subr.bf16.mxu0 %v6779_v60  ;;  %4946 = vmatprep.subr.bf16.mxu1 %v6790_v38 }
 0x330   :  { %v1120_v43 = vpop.f32.mrb[4].mxu0  ;;  %v1191_v59 = vpop.f32.mrb[20].mxu1 }
 0x331   :  { %v5719_v5 = vadd.f32 %v1120_v43, %v6704_v40  ;;  %v1122_v19 = vpop.f32.mrb[5].mxu0  ;;  %v1193_v63 = vpop.f32.mrb[21].mxu1  ;;  %v5767_v56 = vadd.f32 %v1191_v59, %v6708_v39 }
 0x332   :  { %v5720_v12 = vadd.f32 %v1122_v19, %v6702_v7  ;;  %v5768_v53 = vadd.f32 %v1193_v63, %v6710_v61 }
 0x333   :  { %v1200_v35 = vsub.f32 0.0, %v5719_v5 }
 0x334   :  { %v1206_v44 = vsub.f32 0.0, %v5720_v12  ;;  %v1213_v25 = vsub.f32 0.0, %v5768_v53 }
 0x335   :  { %v1201_v36 = vmul.f32 1.442695, %v1200_v35 }
 0x336   :  { %v1207_v45 = vmul.f32 1.442695, %v1206_v44  ;;  %v1214_v26 = vmul.f32 1.442695, %v1213_v25 }
 0x337   :  { %5876 = vpow2.f32 %v1201_v36 }
 0x338   :  { %5878 = vpow2.f32 %v1207_v45 }
 0x339   :  { %5880 = vpow2.f32 %v1214_v26 }
 0x33a   :  { %5882 = vtanh.f32 %v5767_v56  ;;  %v1486_v56 = vld [vmem:[%s8401_s4 + $0x90] sm:$0xff] }
 0x341   :  { %v5877_v52 = vpop.eup %5876 }
 0x342   :  { %v5879_v17 = vpop.eup %5878  ;;  %v1203_v15 = vadd.f32 1.0, %v5877_v52  ;;  %v1490_v52 = vld [vmem:[%s8401_s4 + $0xb0] sm:$0xff] }
 0x343   :  { %v1209_v43 = vadd.f32 1.0, %v5879_v17  ;;  %v5881_v5 = vpop.eup %5880  ;;  %v7067_v17 = vpack.c.bf16 %v1490_v52, %v1486_v56 }
 0x344   :  { %5884 = vrcp.f32 %v1203_v15  ;;  %v5883_v19 = vpop.eup %5882  ;;  %v1216_v63 = vadd.f32 1.0, %v5881_v5  ;;  %v1491_v15 = vld [vmem:[%s8401_s4 + $0xb8] sm:$0xff] }
 0x345   :  { %5886 = vrcp.f32 %v1209_v43  ;;  %v1495_v43 = vld [vmem:[%s8401_s4 + $0xd8] sm:$0xff] }
 0x346   :  { %5888 = vrcp.f32 %v1216_v63  ;;  %v1499_v5 = vld [vmem:[%s8401_s4 + $0xf8] sm:$0xff] }
 0x347   :  { %v1503_v63 = vld [vmem:[%s8401_s4 + $0x118] sm:$0xff] }
 0x34e   :  { %v5885_v12 = vpop.eup %5884 }
 0x34f   :  { %v5887_v35 = vpop.eup %5886  ;;  %v1220_v44 = vmul.f32 %v5885_v12, %v5883_v19  ;;  %v7077_v19 = vpack.c.bf16 %v1499_v5, %v1495_v43  ;;  %v1494_v12 = vld [vmem:[%s8401_s4 + $0xd0] sm:$0xff] }
 0x350   :  { %v1219_v36 = vmul.f32 %v5887_v35, %v6761_v47  ;;  %v5889_v59 = vpop.eup %5888  ;;  %v1487_v47 = vld [vmem:[%s8401_s4 + $0x98] sm:$0xff]  ;;  %v1498_v35 = vld [vmem:[%s8401_s4 + $0xf0] sm:$0xff] }
 0x351   :  { %v7059_v26 = vpack.c.bf16 %v1491_v15, %v1487_v47 }
 0x352   :  { %v7025_v45 = vadd.f32 %v1220_v44, %v1219_v36  ;;  %v7085_v44 = vpack.c.bf16 %v1498_v35, %v1494_v12  ;;  %v1507_v36 = vld [vmem:[%s8401_s4 + $0x138] sm:$0xff] }
 0x354   :  { %5890 = vtanh.f32 %v7025_v45 }
 0x35e   :  { %v5891_v53 = vpop.eup %5890 }
 0x35f   :  { %v7028_v25 = vmul.f32 %v5891_v53, %v5889_v59  ;;  %v7095_v59 = vpack.c.bf16 %v1507_v36, %v1503_v63 }
 0x361   :  { %8427 = vst [vmem:[#allocation13_spill] sm:$0xff] %v7028_v25  ;;  %1358 = vmatmul.mubr.f32.vlgmr.msra.gmra.mrb[6].mxu0 %v7028_v25  ;;  %1429 = vmatmul.mubr.f32.vlgmr.msra.gmra.mrb[22].mxu1 %v7028_v25 }
 0x362   :  { %4916 = vmatpush1.bf16.msra.mxu0 %v6792_v6  ;;  %4948 = vmatpush1.bf16.msra.mxu1 %v6801_v13 }
 0x363   :  { %4918 = vmatprep.subr.bf16.mxu0 %v6815_v31  ;;  %4950 = vmatprep.subr.bf16.mxu1 %v6826_v49 }
 0x364   :  { %1596 = vmatprep.mubr.f32.mxu0 %v8425_v16  ;;  %1667 = vmatprep.mubr.f32.mxu1 %v8425_v16 }
 0x366   :  { %4920 = vmatpush1.bf16.msra.mxu0 %v6828_v51  ;;  %4952 = vmatpush1.bf16.msra.mxu1 %v6837_v1 }
 0x367   :  { %4922 = vmatprep.subr.bf16.mxu0 %v6848_v21  ;;  %4954 = vmatprep.subr.bf16.mxu1 %v7059_v26 }
 0x36a   :  { %4924 = vmatpush1.bf16.msra.mxu0 %v6857_v62  ;;  %4956 = vmatpush1.bf16.msra.mxu1 %v7067_v17 }
 0x36b   :  { %4926 = vmatprep.subr.bf16.mxu0 %v6868_v14  ;;  %4958 = vmatprep.subr.bf16.mxu1 %v7077_v19 }
 0x36e   :  { %4928 = vmatpush1.bf16.msra.mxu0 %v6877_v28  ;;  %4960 = vmatpush1.bf16.msra.mxu1 %v7085_v44 }
 0x36f   :  { %4930 = vmatprep.subr.bf16.mxu0 %v6888_v8  ;;  %4962 = vmatprep.subr.bf16.mxu1 %v7095_v59 }
 0x372   :  { %4932 = vmatpush1.bf16.msra.mxu0 %v6900_v48  ;;  %4964 = vmatpush1.bf16.msra.mxu1 %v6906_v2 }
 0x373   :  { %4934 = vmatprep.subr.bf16.mxu0 %v6918_v46  ;;  %4966 = vmatprep.subr.bf16.mxu1 %v6930_v20 }
 0x376   :  { %4936 = vmatpush1.bf16.msra.mxu0 %v6932_v24  ;;  %4968 = vmatpush1.bf16.msra.mxu1 %v6944_v57 }
 0x377   :  { %4938 = vmatprep.subr.bf16.mxu0 %v6956_v22  ;;  %4970 = vmatprep.subr.bf16.mxu1 %v6958_v32 }
 0x37a   :  { %4940 = vmatpush1.bf16.msra.mxu0 %v6970_v27  ;;  %4972 = vmatpush1.bf16.msra.mxu1 %v6983_v11 }
 0x37b   :  { %4942 = vmatprep.subr.bf16.mxu0 %v6985_v55  ;;  %4974 = vmatprep.subr.bf16.mxu1 %v6997_v54 }
 0x37e   :  { %4944 = vmatpush1.bf16.msra.mxu0 %v7009_v34  ;;  %4976 = vmatpush1.bf16.msra.mxu1 %v7013_v41 }
 0x37f   :  { %4978 = vmatprep.subr.bf16.mxu0 %v6779_v60  ;;  %5010 = vmatprep.subr.bf16.mxu1 %v6790_v38 }
 0x434   :  { %v1359_v53 = vpop.f32.mrb[6].mxu0  ;;  %v1430_v47 = vpop.f32.mrb[22].mxu1 }
 0x435   :  { %v5721_v15 = vadd.f32 %v1359_v53, %v6704_v40  ;;  %v1361_v56 = vpop.f32.mrb[7].mxu0  ;;  %v1432_v52 = vpop.f32.mrb[23].mxu1  ;;  %v5769_v30 = vadd.f32 %v1430_v47, %v6708_v39 }
 0x436   :  { %v5722_v43 = vadd.f32 %v1361_v56, %v6702_v7  ;;  %v5770_v36 = vadd.f32 %v1432_v52, %v6710_v61 }
 0x437   :  { %v1439_v5 = vsub.f32 0.0, %v5721_v15 }
 0x438   :  { %v1445_v12 = vsub.f32 0.0, %v5722_v43  ;;  %v1452_v25 = vsub.f32 0.0, %v5770_v36 }
 0x439   :  { %v1440_v35 = vmul.f32 1.442695, %v1439_v5 }
 0x43a   :  { %v1446_v63 = vmul.f32 1.442695, %v1445_v12  ;;  %v1453_v29 = vmul.f32 1.442695, %v1452_v25 }
 0x43b   :  { %5892 = vpow2.f32 %v1440_v35 }
 0x43c   :  { %5894 = vpow2.f32 %v1446_v63 }
 0x43d   :  { %5896 = vpow2.f32 %v1453_v29 }
 0x43e   :  { %5898 = vtanh.f32 %v5769_v30 }
 0x445   :  { %v5893_v18 = vpop.eup %5892 }
 0x446   :  { %v5895_v37 = vpop.eup %5894  ;;  %v1442_v4 = vadd.f32 1.0, %v5893_v18 }
 0x447   :  { %v1448_v53 = vadd.f32 1.0, %v5895_v37  ;;  %v5897_v15 = vpop.eup %5896 }
 0x448   :  { %5900 = vrcp.f32 %v1442_v4  ;;  %v5899_v56 = vpop.eup %5898  ;;  %v1455_v52 = vadd.f32 1.0, %v5897_v15 }
 0x449   :  { %5902 = vrcp.f32 %v1448_v53 }
 0x44a   :  { %5904 = vrcp.f32 %v1455_v52 }
 0x452   :  { %v5901_v43 = vpop.eup %5900 }
 0x453   :  { %v5903_v5 = vpop.eup %5902  ;;  %v1459_v12 = vmul.f32 %v5901_v43, %v5899_v56 }
 0x454   :  { %v1458_v35 = vmul.f32 %v5903_v5, %v7025_v45  ;;  %v5905_v25 = vpop.eup %5904 }
 0x456   :  { %v7111_v63 = vadd.f32 %v1459_v12, %v1458_v35 }
 0x458   :  { %5906 = vtanh.f32 %v7111_v63 }
 0x462   :  { %v5907_v18 = vpop.eup %5906 }
 0x463   :  { %v7114_v29 = vmul.f32 %v5907_v18, %v5905_v25 }
 0x465   :  { %8428 = vst [vmem:[#allocation14_spill] sm:$0xff] %v7114_v29  ;;  %1597 = vmatmul.mubr.f32.vlgmr.msra.gmra.mrb[8].mxu0 %v7114_v29  ;;  %1668 = vmatmul.mubr.f32.vlgmr.msra.gmra.mrb[24].mxu1 %v7114_v29 }
 0x466   :  { %4980 = vmatpush1.bf16.msra.mxu0 %v6792_v6  ;;  %5012 = vmatpush1.bf16.msra.mxu1 %v6801_v13 }
 0x467   :  { %4982 = vmatprep.subr.bf16.mxu0 %v6815_v31  ;;  %5014 = vmatprep.subr.bf16.mxu1 %v6826_v49 }
 0x468   :  { %1835 = vmatprep.mubr.f32.mxu0 %v8425_v16  ;;  %1906 = vmatprep.mubr.f32.mxu1 %v8425_v16 }
 0x46a   :  { %4984 = vmatpush1.bf16.msra.mxu0 %v6828_v51  ;;  %5016 = vmatpush1.bf16.msra.mxu1 %v6837_v1 }
 0x46b   :  { %4986 = vmatprep.subr.bf16.mxu0 %v6848_v21  ;;  %5018 = vmatprep.subr.bf16.mxu1 %v7059_v26 }
 0x46e   :  { %4988 = vmatpush1.bf16.msra.mxu0 %v6857_v62  ;;  %5020 = vmatpush1.bf16.msra.mxu1 %v7067_v17 }
 0x46f   :  { %4990 = vmatprep.subr.bf16.mxu0 %v6868_v14  ;;  %5022 = vmatprep.subr.bf16.mxu1 %v7077_v19 }
 0x472   :  { %4992 = vmatpush1.bf16.msra.mxu0 %v6877_v28  ;;  %5024 = vmatpush1.bf16.msra.mxu1 %v7085_v44 }
 0x473   :  { %4994 = vmatprep.subr.bf16.mxu0 %v6888_v8  ;;  %5026 = vmatprep.subr.bf16.mxu1 %v7095_v59 }
 0x476   :  { %4996 = vmatpush1.bf16.msra.mxu0 %v6900_v48  ;;  %5028 = vmatpush1.bf16.msra.mxu1 %v6906_v2 }
 0x477   :  { %4998 = vmatprep.subr.bf16.mxu0 %v6918_v46  ;;  %5030 = vmatprep.subr.bf16.mxu1 %v6930_v20 }
 0x47a   :  { %5000 = vmatpush1.bf16.msra.mxu0 %v6932_v24  ;;  %5032 = vmatpush1.bf16.msra.mxu1 %v6944_v57 }
 0x47b   :  { %5002 = vmatprep.subr.bf16.mxu0 %v6956_v22  ;;  %5034 = vmatprep.subr.bf16.mxu1 %v6958_v32 }
 0x47e   :  { %5004 = vmatpush1.bf16.msra.mxu0 %v6970_v27  ;;  %5036 = vmatpush1.bf16.msra.mxu1 %v6983_v11 }
 0x47f   :  { %5006 = vmatprep.subr.bf16.mxu0 %v6985_v55  ;;  %5038 = vmatprep.subr.bf16.mxu1 %v6997_v54 }
 0x482   :  { %5008 = vmatpush1.bf16.msra.mxu0 %v7009_v34  ;;  %5040 = vmatpush1.bf16.msra.mxu1 %v7013_v41 }
 0x483   :  { %5042 = vmatprep.subr.bf16.mxu0 %v6779_v60  ;;  %5074 = vmatprep.subr.bf16.mxu1 %v6790_v38 }
 0x538   :  { %v1598_v4 = vpop.f32.mrb[8].mxu0  ;;  %v1669_v37 = vpop.f32.mrb[24].mxu1 }
 0x539   :  { %v5723_v30 = vadd.f32 %v1598_v4, %v6704_v40  ;;  %v1600_v45 = vpop.f32.mrb[9].mxu0  ;;  %v1671_v47 = vpop.f32.mrb[25].mxu1  ;;  %v5771_v38 = vadd.f32 %v1669_v37, %v6708_v39 }
 0x53a   :  { %v5724_v36 = vadd.f32 %v1600_v45, %v6702_v7  ;;  %v5772_v5 = vadd.f32 %v1671_v47, %v6710_v61 }
 0x53b   :  { %v1678_v53 = vsub.f32 0.0, %v5723_v30 }
 0x53c   :  { %v1684_v15 = vsub.f32 0.0, %v5724_v36  ;;  %v1691_v12 = vsub.f32 0.0, %v5772_v5 }
 0x53d   :  { %v1679_v56 = vmul.f32 1.442695, %v1678_v53 }
 0x53e   :  { %v1685_v43 = vmul.f32 1.442695, %v1684_v15  ;;  %v1692_v60 = vmul.f32 1.442695, %v1691_v12 }
 0x53f   :  { %5908 = vpow2.f32 %v1679_v56 }
 0x540   :  { %5910 = vpow2.f32 %v1685_v43 }
 0x541   :  { %5912 = vpow2.f32 %v1692_v60 }
 0x542   :  { %5914 = vtanh.f32 %v5771_v38 }
 0x549   :  { %v5909_v52 = vpop.eup %5908 }
 0x54a   :  { %v5911_v35 = vpop.eup %5910  ;;  %v1681_v25 = vadd.f32 1.0, %v5909_v52  ;;  %v2186_v52 = vld [vmem:[%s8401_s4 + $0x8] sm:$0xff] }
 0x54b   :  { %v1687_v18 = vadd.f32 1.0, %v5911_v35  ;;  %v5913_v4 = vpop.eup %5912  ;;  %v2190_v35 = vld [vmem:[%s8401_s4 + $0x28] sm:$0xff] }
 0x54c   :  { %5916 = vrcp.f32 %v1681_v25  ;;  %v5915_v30 = vpop.eup %5914  ;;  %v1694_v47 = vadd.f32 1.0, %v5913_v4  ;;  %v2188_v25 = vld [vmem:[%s8401_s4 + $0x18] sm:$0xff] }
 0x54d   :  { %5918 = vrcp.f32 %v1687_v18  ;;  %v7219_v18 = vpack.c.bf16 %v2190_v35, %v2186_v52  ;;  %v2192_v4 = vld [vmem:[%s8401_s4 + $0x38] sm:$0xff]  ;;  %v2226_v52 = vld [vmem:[%s8401_s4 + $0x148] sm:$0xff] }
 0x54e   :  { %5920 = vrcp.f32 %v1694_v47  ;;  %v2187_v47 = vld [vmem:[%s8401_s4 + $0x10] sm:$0xff]  ;;  %v2230_v35 = vld [vmem:[%s8401_s4 + $0x168] sm:$0xff] }
 0x556   :  { %v5917_v45 = vpop.eup %5916 }
 0x557   :  { %v5919_v36 = vpop.eup %5918  ;;  %v1698_v53 = vmul.f32 %v5917_v45, %v5915_v30  ;;  %v2185_v30 = vld [vmem:[%s8401_s4] sm:$0xff] }
 0x558   :  { %v1697_v15 = vmul.f32 %v5919_v36, %v7111_v63  ;;  %v5921_v37 = vpop.eup %5920  ;;  %v2189_v45 = vld [vmem:[%s8401_s4 + $0x20] sm:$0xff]  ;;  %v7230_v36 = vpack.c.bf16 %v2192_v4, %v2188_v25  ;;  %v7358_v25 = vpack.c.bf16 %v2230_v35, %v2226_v52  ;;  %v2232_v4 = vld [vmem:[%s8401_s4 + $0x178] sm:$0xff]  ;;  %v2243_v35 = vld [vmem:[%s8401_s4 + $0x1d0] sm:$0xff] }
 0x559   :  { %v2245_v52 = vld [vmem:[%s8401_s4 + $0x1e0] sm:$0xff] }
 0x55a   :  { %v7157_v56 = vadd.f32 %v1698_v53, %v1697_v15  ;;  %v7232_v53 = vpack.c.bf16 %v2189_v45, %v2185_v30  ;;  %v2191_v15 = vld [vmem:[%s8401_s4 + $0x30] sm:$0xff]  ;;  %v2225_v30 = vld [vmem:[%s8401_s4 + $0x140] sm:$0xff] }
 0x55b   :  { %v2229_v45 = vld [vmem:[%s8401_s4 + $0x160] sm:$0xff] }
 0x55c   :  { %5922 = vtanh.f32 %v7157_v56 }
 0x566   :  { %v5923_v43 = vpop.eup %5922 }
 0x567   :  { %v7160_v5 = vmul.f32 %v5923_v43, %v5921_v37  ;;  %v2194_v37 = vld [vmem:[%s8401_s4 + $0x48] sm:$0xff] }
 0x568   :  { %v2198_v43 = vld [vmem:[%s8401_s4 + $0x68] sm:$0xff] }
 0x569   :  { %8429 = vst [vmem:[#allocation15_spill] sm:$0xff] %v7160_v5  ;;  %1836 = vmatmul.mubr.f32.vlgmr.msra.gmra.mrb[10].mxu0 %v7160_v5  ;;  %1907 = vmatmul.mubr.f32.vlgmr.msra.gmra.mrb[26].mxu1 %v7160_v5 }
 0x56a   :  { %5044 = vmatpush1.bf16.msra.mxu0 %v6792_v6  ;;  %5076 = vmatpush1.bf16.msra.mxu1 %v6801_v13 }
 0x56b   :  { %5046 = vmatprep.subr.bf16.mxu0 %v6815_v31  ;;  %5078 = vmatprep.subr.bf16.mxu1 %v6826_v49 }
 0x56c   :  { %2074 = vmatprep.mubr.f32.mxu0 %v8425_v16  ;;  %2145 = vmatprep.mubr.f32.mxu1 %v8425_v16 }
 0x56e   :  { %5048 = vmatpush1.bf16.msra.mxu0 %v6828_v51  ;;  %5080 = vmatpush1.bf16.msra.mxu1 %v6837_v1 }
 0x56f   :  { %5050 = vmatprep.subr.bf16.mxu0 %v6848_v21  ;;  %5082 = vmatprep.subr.bf16.mxu1 %v7059_v26 }
 0x572   :  { %5052 = vmatpush1.bf16.msra.mxu0 %v6857_v62  ;;  %5084 = vmatpush1.bf16.msra.mxu1 %v7067_v17 }
 0x573   :  { %5054 = vmatprep.subr.bf16.mxu0 %v6868_v14  ;;  %5086 = vmatprep.subr.bf16.mxu1 %v7077_v19 }
 0x576   :  { %5056 = vmatpush1.bf16.msra.mxu0 %v6877_v28  ;;  %5088 = vmatpush1.bf16.msra.mxu1 %v7085_v44 }
 0x577   :  { %5058 = vmatprep.subr.bf16.mxu0 %v6888_v8  ;;  %5090 = vmatprep.subr.bf16.mxu1 %v7095_v59 }
 0x57a   :  { %5060 = vmatpush1.bf16.msra.mxu0 %v6900_v48  ;;  %5092 = vmatpush1.bf16.msra.mxu1 %v6906_v2 }
 0x57b   :  { %5062 = vmatprep.subr.bf16.mxu0 %v6918_v46  ;;  %5094 = vmatprep.subr.bf16.mxu1 %v6930_v20 }
 0x57e   :  { %5064 = vmatpush1.bf16.msra.mxu0 %v6932_v24  ;;  %5096 = vmatpush1.bf16.msra.mxu1 %v6944_v57 }
 0x57f   :  { %5066 = vmatprep.subr.bf16.mxu0 %v6956_v22  ;;  %5098 = vmatprep.subr.bf16.mxu1 %v6958_v32 }
 0x582   :  { %5068 = vmatpush1.bf16.msra.mxu0 %v6970_v27  ;;  %5100 = vmatpush1.bf16.msra.mxu1 %v6983_v11 }
 0x583   :  { %5070 = vmatprep.subr.bf16.mxu0 %v6985_v55  ;;  %5102 = vmatprep.subr.bf16.mxu1 %v6997_v54 }
 0x586   :  { %5072 = vmatpush1.bf16.msra.mxu0 %v7009_v34  ;;  %5104 = vmatpush1.bf16.msra.mxu1 %v7013_v41 }
 0x587   :  { %5106 = vmatprep.subr.bf16.mxu0 %v7219_v18  ;;  %5138 = vmatprep.subr.bf16.mxu1 %v7230_v36 }
 0x63c   :  { %v1837_v6 = vpop.f32.mrb[10].mxu0  ;;  %v1908_v13 = vpop.f32.mrb[26].mxu1 }
 0x63d   :  { %v5725_v31 = vadd.f32 %v1837_v6, %v6704_v40  ;;  %v1839_v49 = vpop.f32.mrb[11].mxu0  ;;  %v1910_v51 = vpop.f32.mrb[27].mxu1  ;;  %v5773_v46 = vadd.f32 %v1908_v13, %v6708_v39  ;;  %v2196_v6 = vld [vmem:[%s8401_s4 + $0x58] sm:$0xff]  ;;  %v7255_v13 = vpack.c.bf16 %v2198_v43, %v2194_v37  ;;  %v2227_v37 = vld [vmem:[%s8401_s4 + $0x150] sm:$0xff] }
 0x63e   :  { %v5726_v1 = vadd.f32 %v1839_v49, %v6702_v7  ;;  %v5774_v8 = vadd.f32 %v1910_v51, %v6710_v61  ;;  %v2193_v49 = vld [vmem:[%s8401_s4 + $0x40] sm:$0xff]  ;;  %v2231_v43 = vld [vmem:[%s8401_s4 + $0x170] sm:$0xff] }
 0x63f   :  { %v1917_v21 = vsub.f32 0.0, %v5725_v31  ;;  %v2200_v31 = vld [vmem:[%s8401_s4 + $0x78] sm:$0xff]  ;;  %v2197_v51 = vld [vmem:[%s8401_s4 + $0x60] sm:$0xff] }
 0x640   :  { %v1923_v62 = vsub.f32 0.0, %v5726_v1  ;;  %v1930_v48 = vsub.f32 0.0, %v5774_v8  ;;  %v7266_v1 = vpack.c.bf16 %v2200_v31, %v2196_v6  ;;  %v2202_v8 = vld [vmem:[%s8401_s4 + $0x88] sm:$0xff]  ;;  %v7384_v31 = vpack.c.bf16 %v2231_v43, %v2227_v37 }
 0x641   :  { %v1918_v14 = vmul.f32 1.442695, %v1917_v21  ;;  %v7268_v21 = vpack.c.bf16 %v2197_v51, %v2193_v49  ;;  %v2234_v6 = vld [vmem:[%s8401_s4 + $0x188] sm:$0xff]  ;;  %v2236_v51 = vld [vmem:[%s8401_s4 + $0x198] sm:$0xff] }
 0x642   :  { %v1924_v28 = vmul.f32 1.442695, %v1923_v62  ;;  %v1931_v2 = vmul.f32 1.442695, %v1930_v48  ;;  %v2195_v62 = vld [vmem:[%s8401_s4 + $0x50] sm:$0xff]  ;;  %v2206_v48 = vld [vmem:[%s8401_s4 + $0xa8] sm:$0xff] }
 0x643   :  { %5924 = vpow2.f32 %v1918_v14  ;;  %v2199_v14 = vld [vmem:[%s8401_s4 + $0x70] sm:$0xff]  ;;  %v2238_v49 = vld [vmem:[%s8401_s4 + $0x1a8] sm:$0xff] }
 0x644   :  { %5926 = vpow2.f32 %v1924_v28  ;;  %v7277_v28 = vpack.c.bf16 %v2199_v14, %v2195_v62  ;;  %v2240_v62 = vld [vmem:[%s8401_s4 + $0x1b8] sm:$0xff]  ;;  %v7396_v14 = vpack.c.bf16 %v2238_v49, %v2234_v6 }
 0x645   :  { %5928 = vpow2.f32 %v1931_v2  ;;  %v7288_v2 = vpack.c.bf16 %v2206_v48, %v2202_v8  ;;  %v7398_v8 = vpack.c.bf16 %v2240_v62, %v2236_v51  ;;  %v2233_v48 = vld [vmem:[%s8401_s4 + $0x180] sm:$0xff] }
 0x646   :  { %5930 = vtanh.f32 %v5773_v46  ;;  %v2201_v46 = vld [vmem:[%s8401_s4 + $0x80] sm:$0xff] }
 0x64d   :  { %v5925_v20 = vpop.eup %5924 }
 0x64e   :  { %v5927_v24 = vpop.eup %5926  ;;  %v1920_v57 = vadd.f32 1.0, %v5925_v20  ;;  %v2205_v20 = vld [vmem:[%s8401_s4 + $0xa0] sm:$0xff] }
 0x64f   :  { %v1926_v22 = vadd.f32 1.0, %v5927_v24  ;;  %v5929_v32 = vpop.eup %5928  ;;  %v7297_v24 = vpack.c.bf16 %v2205_v20, %v2201_v46  ;;  %v2237_v46 = vld [vmem:[%s8401_s4 + $0x1a0] sm:$0xff]  ;;  %v2235_v20 = vld [vmem:[%s8401_s4 + $0x190] sm:$0xff] }
 0x650   :  { %5932 = vrcp.f32 %v1920_v57  ;;  %v5931_v27 = vpop.eup %5930  ;;  %v1933_v34 = vadd.f32 1.0, %v5929_v32  ;;  %v2210_v57 = vld [vmem:[%s8401_s4 + $0xc8] sm:$0xff] }
 0x651   :  { %5934 = vrcp.f32 %v1926_v22  ;;  %v2214_v22 = vld [vmem:[%s8401_s4 + $0xe8] sm:$0xff] }
 0x652   :  { %5936 = vrcp.f32 %v1933_v34  ;;  %v7308_v32 = vpack.c.bf16 %v2214_v22, %v2210_v57  ;;  %v2221_v34 = vld [vmem:[%s8401_s4 + $0x120] sm:$0xff]  ;;  %v7410_v57 = vpack.c.bf16 %v2237_v46, %v2233_v48  ;;  %v2239_v22 = vld [vmem:[%s8401_s4 + $0x1b0] sm:$0xff] }
 0x65a   :  { %v5933_v11 = vpop.eup %5932 }
 0x65b   :  { %v5935_v55 = vpop.eup %5934  ;;  %v1937_v54 = vmul.f32 %v5933_v11, %v5931_v27  ;;  %v2213_v27 = vld [vmem:[%s8401_s4 + $0xe0] sm:$0xff] }
 0x65c   :  { %v1936_v41 = vmul.f32 %v5935_v55, %v7157_v56  ;;  %v5937_v12 = vpop.eup %5936  ;;  %v7241_v56 = vpack.c.bf16 %v2191_v15, %v2187_v47  ;;  %v2222_v55 = vld [vmem:[%s8401_s4 + $0x128] sm:$0xff]  ;;  %v7372_v15 = vpack.c.bf16 %v2229_v45, %v2225_v30 }
 0x65e   :  { %v7201_v63 = vadd.f32 %v1937_v54, %v1936_v41  ;;  %v2219_v41 = vld [vmem:[%s8401_s4 + $0x110] sm:$0xff] }
 0x660   :  { %5938 = vtanh.f32 %v7201_v63 }
 0x66a   :  { %v5939_v60 = vpop.eup %5938 }
 0x66b   :  { %v7204_v38 = vmul.f32 %v5939_v60, %v5937_v12 }
 0x66d   :  { %8430 = vst [vmem:[#allocation16_spill] sm:$0xff] %v7204_v38  ;;  %2075 = vmatmul.mubr.f32.vlgmr.msra.gmra.mrb[12].mxu0 %v7204_v38  ;;  %2146 = vmatmul.mubr.f32.vlgmr.msra.gmra.mrb[28].mxu1 %v7204_v38 }
 0x66e   :  { %2313 = vmatprep.mubr.f32.mxu0 %v8425_v16  ;;  %2384 = vmatprep.mubr.f32.mxu1 %v8425_v16 }
 0x66f   :  { %5108 = vmatpush1.bf16.msra.mxu0 %v7232_v53  ;;  %5140 = vmatpush1.bf16.msra.mxu1 %v7241_v56 }
 0x670   :  { %5110 = vmatprep.subr.bf16.mxu0 %v7255_v13  ;;  %5142 = vmatprep.subr.bf16.mxu1 %v7266_v1 }
 0x673   :  { %5112 = vmatpush1.bf16.msra.mxu0 %v7268_v21  ;;  %5144 = vmatpush1.bf16.msra.mxu1 %v7277_v28 }
 0x674   :  { %5146 = vmatprep.subr.bf16.mxu1 %v7059_v26  ;;  %5114 = vmatprep.subr.bf16.mxu0 %v7288_v2  ;;  %v2209_v26 = vld [vmem:[%s8401_s4 + $0xc0] sm:$0xff] }
 0x675   :  { %v7317_v11 = vpack.c.bf16 %v2213_v27, %v2209_v26  ;;  %v2242_v26 = vld [vmem:[%s8401_s4 + $0x1c8] sm:$0xff] }
 0x676   :  { %v2246_v27 = vld [vmem:[%s8401_s4 + $0x1e8] sm:$0xff] }
 0x677   :  { %5116 = vmatpush1.bf16.msra.mxu0 %v7297_v24  ;;  %5148 = vmatpush1.bf16.msra.mxu1 %v7067_v17  ;;  %v2218_v17 = vld [vmem:[%s8401_s4 + $0x108] sm:$0xff] }
 0x678   :  { %5150 = vmatprep.subr.bf16.mxu1 %v7077_v19  ;;  %5118 = vmatprep.subr.bf16.mxu0 %v7308_v32  ;;  %v7328_v54 = vpack.c.bf16 %v2222_v55, %v2218_v17  ;;  %v2217_v19 = vld [vmem:[%s8401_s4 + $0x100] sm:$0xff]  ;;  %v7423_v17 = vpack.c.bf16 %v2239_v22, %v2235_v20  ;;  %v7425_v55 = vpack.c.bf16 %v2246_v27, %v2242_v26 }
 0x679   :  { %v7340_v12 = vpack.c.bf16 %v2221_v34, %v2217_v19  ;;  %v2244_v19 = vld [vmem:[%s8401_s4 + $0x1d8] sm:$0xff] }
 0x67a   :  { %v2248_v34 = vld [vmem:[%s8401_s4 + $0x1f8] sm:$0xff] }
 0x67b   :  { %5120 = vmatpush1.bf16.msra.mxu0 %v7317_v11  ;;  %5152 = vmatpush1.bf16.msra.mxu1 %v7085_v44  ;;  %v2223_v44 = vld [vmem:[%s8401_s4 + $0x130] sm:$0xff] }
 0x67c   :  { %5154 = vmatprep.subr.bf16.mxu1 %v7095_v59  ;;  %5122 = vmatprep.subr.bf16.mxu0 %v7328_v54  ;;  %v7346_v60 = vpack.c.bf16 %v2223_v44, %v2219_v41  ;;  %v2228_v59 = vld [vmem:[%s8401_s4 + $0x158] sm:$0xff]  ;;  %v2241_v41 = vld [vmem:[%s8401_s4 + $0x1c0] sm:$0xff]  ;;  %v7437_v44 = vpack.c.bf16 %v2248_v34, %v2244_v19 }
 0x67d   :  { %v7370_v47 = vpack.c.bf16 %v2232_v4, %v2228_v59  ;;  %v2247_v59 = vld [vmem:[%s8401_s4 + $0x1f0] sm:$0xff]  ;;  %v7449_v4 = vpack.c.bf16 %v2245_v52, %v2241_v41 }
 0x67e   :  { %v7453_v30 = vpack.c.bf16 %v2247_v59, %v2243_v35 }
 0x67f   :  { %5124 = vmatpush1.bf16.msra.mxu0 %v7340_v12  ;;  %5156 = vmatpush1.bf16.msra.mxu1 %v7346_v60 }
 0x680   :  { %5126 = vmatprep.subr.bf16.mxu0 %v7358_v25  ;;  %5158 = vmatprep.subr.bf16.mxu1 %v7370_v47 }
 0x683   :  { %5128 = vmatpush1.bf16.msra.mxu0 %v7372_v15  ;;  %5160 = vmatpush1.bf16.msra.mxu1 %v7384_v31 }
 0x684   :  { %5130 = vmatprep.subr.bf16.mxu0 %v7396_v14  ;;  %5162 = vmatprep.subr.bf16.mxu1 %v7398_v8 }
 0x687   :  { %5132 = vmatpush1.bf16.msra.mxu0 %v7410_v57  ;;  %5164 = vmatpush1.bf16.msra.mxu1 %v7423_v17 }
 0x688   :  { %5134 = vmatprep.subr.bf16.mxu0 %v7425_v55  ;;  %5166 = vmatprep.subr.bf16.mxu1 %v7437_v44 }
 0x68b   :  { %5136 = vmatpush1.bf16.msra.mxu0 %v7449_v4  ;;  %5168 = vmatpush1.bf16.msra.mxu1 %v7453_v30 }
 0x68c   :  { %5170 = vmatprep.subr.bf16.mxu0 %v7219_v18  ;;  %5202 = vmatprep.subr.bf16.mxu1 %v7230_v36 }
 0x740   :  { %v2076_v45 = vpop.f32.mrb[12].mxu0  ;;  %v2147_v37 = vpop.f32.mrb[28].mxu1 }
 0x741   :  { %v5727_v43 = vadd.f32 %v2076_v45, %v6704_v40  ;;  %v2078_v6 = vpop.f32.mrb[13].mxu0  ;;  %v2149_v49 = vpop.f32.mrb[29].mxu1  ;;  %v5775_v19 = vadd.f32 %v2147_v37, %v6708_v39 }
 0x742   :  { %v5728_v51 = vadd.f32 %v2078_v6, %v6702_v7  ;;  %v5776_v22 = vadd.f32 %v2149_v49, %v6710_v61 }
 0x743   :  { %v2156_v62 = vsub.f32 0.0, %v5727_v43 }
 0x744   :  { %v2162_v48 = vsub.f32 0.0, %v5728_v51  ;;  %v2169_v26 = vsub.f32 0.0, %v5776_v22  ;;  %v2447_v22 = vld [vmem:[%s8401_s4 + $0xb8] sm:$0xff] }
 0x745   :  { %v2157_v46 = vmul.f32 1.442695, %v2156_v62 }
 0x746   :  { %v2163_v20 = vmul.f32 1.442695, %v2162_v48  ;;  %v2170_v27 = vmul.f32 1.442695, %v2169_v26 }
 0x747   :  { %5940 = vpow2.f32 %v2157_v46 }
 0x748   :  { %5942 = vpow2.f32 %v2163_v20 }
 0x749   :  { %5944 = vpow2.f32 %v2170_v27  ;;  %v2442_v27 = vld [vmem:[%s8401_s4 + $0x90] sm:$0xff] }
 0x74a   :  { %5946 = vtanh.f32 %v5775_v19  ;;  %v2446_v19 = vld [vmem:[%s8401_s4 + $0xb0] sm:$0xff] }
 0x751   :  { %v5941_v34 = vpop.eup %5940 }
 0x752   :  { %v5943_v41 = vpop.eup %5942  ;;  %v2159_v52 = vadd.f32 1.0, %v5941_v34  ;;  %v7507_v34 = vpack.c.bf16 %v2446_v19, %v2442_v27 }
 0x753   :  { %v2165_v35 = vadd.f32 1.0, %v5943_v41  ;;  %v5945_v59 = vpop.eup %5944  ;;  %v2451_v41 = vld [vmem:[%s8401_s4 + $0xd8] sm:$0xff] }
 0x754   :  { %5948 = vrcp.f32 %v2159_v52  ;;  %v5947_v45 = vpop.eup %5946  ;;  %v2172_v49 = vadd.f32 1.0, %v5945_v59  ;;  %v2455_v52 = vld [vmem:[%s8401_s4 + $0xf8] sm:$0xff]  ;;  %v2450_v59 = vld [vmem:[%s8401_s4 + $0xd0] sm:$0xff] }
 0x755   :  { %5950 = vrcp.f32 %v2165_v35  ;;  %v7517_v35 = vpack.c.bf16 %v2455_v52, %v2451_v41 }
 0x756   :  { %5952 = vrcp.f32 %v2172_v49 }
 0x75e   :  { %v5949_v43 = vpop.eup %5948 }
 0x75f   :  { %v5951_v6 = vpop.eup %5950  ;;  %v2176_v51 = vmul.f32 %v5949_v43, %v5947_v45  ;;  %v2454_v45 = vld [vmem:[%s8401_s4 + $0xf0] sm:$0xff] }
 0x760   :  { %v2175_v62 = vmul.f32 %v5951_v6, %v7201_v63  ;;  %v5953_v37 = vpop.eup %5952  ;;  %v2443_v63 = vld [vmem:[%s8401_s4 + $0x98] sm:$0xff]  ;;  %v7525_v43 = vpack.c.bf16 %v2454_v45, %v2450_v59 }
 0x761   :  { %v7499_v26 = vpack.c.bf16 %v2447_v22, %v2443_v63  ;;  %v2459_v6 = vld [vmem:[%s8401_s4 + $0x118] sm:$0xff] }
 0x762   :  { %v7465_v48 = vadd.f32 %v2176_v51, %v2175_v62  ;;  %v2463_v51 = vld [vmem:[%s8401_s4 + $0x138] sm:$0xff] }
 0x763   :  { %v7535_v49 = vpack.c.bf16 %v2463_v51, %v2459_v6 }
 0x764   :  { %5954 = vtanh.f32 %v7465_v48 }
 0x76e   :  { %v5955_v46 = vpop.eup %5954 }
 0x76f   :  { %v7468_v20 = vmul.f32 %v5955_v46, %v5953_v37 }
 0x771   :  { %8431 = vst [vmem:[#allocation17_spill] sm:$0xff] %v7468_v20  ;;  %2314 = vmatmul.mubr.f32.vlgmr.msra.gmra.mrb[14].mxu0 %v7468_v20  ;;  %2385 = vmatmul.mubr.f32.vlgmr.msra.gmra.mrb[30].mxu1 %v7468_v20 }
 0x772   :  { %5172 = vmatpush1.bf16.msra.mxu0 %v7232_v53  ;;  %5204 = vmatpush1.bf16.msra.mxu1 %v7241_v56 }
 0x773   :  { %5174 = vmatprep.subr.bf16.mxu0 %v7255_v13  ;;  %5206 = vmatprep.subr.bf16.mxu1 %v7266_v1 }
 0x774   :  { %2552 = vmatprep.mubr.f32.mxu0 %v8425_v16  ;;  %2623 = vmatprep.mubr.f32.mxu1 %v8425_v16 }
 0x776   :  { %5176 = vmatpush1.bf16.msra.mxu0 %v7268_v21  ;;  %5208 = vmatpush1.bf16.msra.mxu1 %v7277_v28 }
 0x777   :  { %5178 = vmatprep.subr.bf16.mxu0 %v7288_v2  ;;  %5210 = vmatprep.subr.bf16.mxu1 %v7499_v26 }
 0x77a   :  { %5180 = vmatpush1.bf16.msra.mxu0 %v7297_v24  ;;  %5212 = vmatpush1.bf16.msra.mxu1 %v7507_v34 }
 0x77b   :  { %5182 = vmatprep.subr.bf16.mxu0 %v7308_v32  ;;  %5214 = vmatprep.subr.bf16.mxu1 %v7517_v35 }
 0x77e   :  { %5184 = vmatpush1.bf16.msra.mxu0 %v7317_v11  ;;  %5216 = vmatpush1.bf16.msra.mxu1 %v7525_v43 }
 0x77f   :  { %5186 = vmatprep.subr.bf16.mxu0 %v7328_v54  ;;  %5218 = vmatprep.subr.bf16.mxu1 %v7535_v49 }
 0x782   :  { %5188 = vmatpush1.bf16.msra.mxu0 %v7340_v12  ;;  %5220 = vmatpush1.bf16.msra.mxu1 %v7346_v60 }
 0x783   :  { %5190 = vmatprep.subr.bf16.mxu0 %v7358_v25  ;;  %5222 = vmatprep.subr.bf16.mxu1 %v7370_v47 }
 0x786   :  { %5192 = vmatpush1.bf16.msra.mxu0 %v7372_v15  ;;  %5224 = vmatpush1.bf16.msra.mxu1 %v7384_v31 }
 0x787   :  { %5194 = vmatprep.subr.bf16.mxu0 %v7396_v14  ;;  %5226 = vmatprep.subr.bf16.mxu1 %v7398_v8 }
 0x78a   :  { %5196 = vmatpush1.bf16.msra.mxu0 %v7410_v57  ;;  %5228 = vmatpush1.bf16.msra.mxu1 %v7423_v17 }
 0x78b   :  { %5198 = vmatprep.subr.bf16.mxu0 %v7425_v55  ;;  %5230 = vmatprep.subr.bf16.mxu1 %v7437_v44 }
 0x78e   :  { %5200 = vmatpush1.bf16.msra.mxu0 %v7449_v4  ;;  %5232 = vmatpush1.bf16.msra.mxu1 %v7453_v30 }
 0x78f   :  { %5234 = vmatprep.subr.bf16.mxu0 %v7219_v18  ;;  %5266 = vmatprep.subr.bf16.mxu1 %v7230_v36 }
 0x844   :  { %v2315_v62 = vpop.f32.mrb[14].mxu0  ;;  %v2386_v37 = vpop.f32.mrb[30].mxu1 }
 0x845   :  { %v5729_v46 = vadd.f32 %v2315_v62, %v6704_v40  ;;  %v2317_v63 = vpop.f32.mrb[15].mxu0  ;;  %v2388_v22 = vpop.f32.mrb[31].mxu1  ;;  %v5777_v20 = vadd.f32 %v2386_v37, %v6708_v39 }
 0x846   :  { %v5730_v27 = vadd.f32 %v2317_v63, %v6702_v7  ;;  %v5778_v45 = vadd.f32 %v2388_v22, %v6710_v61 }
 0x847   :  { %v2395_v19 = vsub.f32 0.0, %v5729_v46 }
 0x848   :  { %v2401_v41 = vsub.f32 0.0, %v5730_v27  ;;  %v2408_v6 = vsub.f32 0.0, %v5778_v45 }
 0x849   :  { %v2396_v52 = vmul.f32 1.442695, %v2395_v19 }
 0x84a   :  { %v2402_v59 = vmul.f32 1.442695, %v2401_v41  ;;  %v2409_v51 = vmul.f32 1.442695, %v2408_v6 }
 0x84b   :  { %5956 = vpow2.f32 %v2396_v52 }
 0x84c   :  { %5958 = vpow2.f32 %v2402_v59 }
 0x84d   :  { %5960 = vpow2.f32 %v2409_v51 }
 0x84e   :  { %5962 = vtanh.f32 %v5777_v20 }
 0x855   :  { %v5957_v38 = vpop.eup %5956 }
 0x856   :  { %v5959_v5 = vpop.eup %5958  ;;  %v2398_v29 = vadd.f32 1.0, %v5957_v38 }
 0x857   :  { %v2404_v62 = vadd.f32 1.0, %v5959_v5  ;;  %v5961_v46 = vpop.eup %5960  ;;  %v237_v5 = vadd.f32 %v6669_v9, %v6702_v7 }
 0x858   :  { %5964 = vrcp.f32 %v2398_v29  ;;  %v5963_v63 = vpop.eup %5962  ;;  %v2411_v22 = vadd.f32 1.0, %v5961_v46  ;;  %v235_v29 = vadd.f32 %v6667_v3, %v6704_v40 }
 0x859   :  { %5966 = vrcp.f32 %v2404_v62 }
 0x85a   :  { %5968 = vrcp.f32 %v2411_v22 }
 0x862   :  { %v5965_v27 = vpop.eup %5964 }
 0x863   :  { %v5967_v19 = vpop.eup %5966  ;;  %v2415_v41 = vmul.f32 %v5965_v27, %v5963_v63 }
 0x864   :  { %v2414_v52 = vmul.f32 %v5967_v19, %v7465_v48  ;;  %v5969_v37 = vpop.eup %5968 }
 0x866   :  { %v7551_v59 = vadd.f32 %v2415_v41, %v2414_v52 }
 0x868   :  { %5970 = vtanh.f32 %v7551_v59 }
 0x872   :  { %v5971_v38 = vpop.eup %5970 }
 0x873   :  { %v7554_v45 = vmul.f32 %v5971_v38, %v5969_v37 }
 0x875   :  { %2553 = vmatmul.mubr.f32.vlgmr.msra.gmra.mrb[16].mxu0 %v7554_v45  ;;  %2624 = vmatmul.mubr.f32.vlgmr.msra.gmra.mrb[32].mxu1 %v7554_v45 }
 0x876   :  { %5236 = vmatpush1.bf16.msra.mxu0 %v7232_v53  ;;  %5268 = vmatpush1.bf16.msra.mxu1 %v7241_v56 }
 0x877   :  { %5238 = vmatprep.subr.bf16.mxu0 %v7255_v13  ;;  %5270 = vmatprep.subr.bf16.mxu1 %v7266_v1 }
 0x878   :  { %2791 = vmatprep.mubr.f32.mxu0 %v8425_v16  ;;  %2862 = vmatprep.mubr.f32.mxu1 %v8425_v16 }
 0x87a   :  { %5240 = vmatpush1.bf16.msra.mxu0 %v7268_v21  ;;  %5272 = vmatpush1.bf16.msra.mxu1 %v7277_v28 }
 0x87b   :  { %5242 = vmatprep.subr.bf16.mxu0 %v7288_v2  ;;  %5274 = vmatprep.subr.bf16.mxu1 %v7499_v26 }
 0x87e   :  { %5244 = vmatpush1.bf16.msra.mxu0 %v7297_v24  ;;  %5276 = vmatpush1.bf16.msra.mxu1 %v7507_v34 }
 0x87f   :  { %5246 = vmatprep.subr.bf16.mxu0 %v7308_v32  ;;  %5278 = vmatprep.subr.bf16.mxu1 %v7517_v35 }
 0x882   :  { %5248 = vmatpush1.bf16.msra.mxu0 %v7317_v11  ;;  %5280 = vmatpush1.bf16.msra.mxu1 %v7525_v43 }
 0x883   :  { %5250 = vmatprep.subr.bf16.mxu0 %v7328_v54  ;;  %5282 = vmatprep.subr.bf16.mxu1 %v7535_v49 }
 0x886   :  { %5252 = vmatpush1.bf16.msra.mxu0 %v7340_v12  ;;  %5284 = vmatpush1.bf16.msra.mxu1 %v7346_v60 }
 0x887   :  { %5254 = vmatprep.subr.bf16.mxu0 %v7358_v25  ;;  %5286 = vmatprep.subr.bf16.mxu1 %v7370_v47 }
 0x88a   :  { %5256 = vmatpush1.bf16.msra.mxu0 %v7372_v15  ;;  %5288 = vmatpush1.bf16.msra.mxu1 %v7384_v31 }
 0x88b   :  { %5258 = vmatprep.subr.bf16.mxu0 %v7396_v14  ;;  %5290 = vmatprep.subr.bf16.mxu1 %v7398_v8 }
 0x88e   :  { %5260 = vmatpush1.bf16.msra.mxu0 %v7410_v57  ;;  %5292 = vmatpush1.bf16.msra.mxu1 %v7423_v17 }
 0x88f   :  { %5262 = vmatprep.subr.bf16.mxu0 %v7425_v55  ;;  %5294 = vmatprep.subr.bf16.mxu1 %v7437_v44 }
 0x892   :  { %5264 = vmatpush1.bf16.msra.mxu0 %v7449_v4  ;;  %5296 = vmatpush1.bf16.msra.mxu1 %v7453_v30 }
 0x893   :  { %5298 = vmatprep.subr.bf16.mxu0 %v7219_v18  ;;  %5330 = vmatprep.subr.bf16.mxu1 %v7230_v36 }
 0x948   :  { %v2554_v48 = vpop.f32.mrb[16].mxu0  ;;  %v2625_v20 = vpop.f32.mrb[32].mxu1 }
 0x949   :  { %v2630_v6 = vadd.f32 %v2554_v48, %v235_v29  ;;  %v2556_v51 = vpop.f32.mrb[17].mxu0  ;;  %v2627_v62 = vpop.f32.mrb[33].mxu1  ;;  %v5779_v3 = vadd.f32 %v2625_v20, %v6708_v39 }
 0x94a   :  { %v2631_v46 = vadd.f32 %v2556_v51, %v237_v5  ;;  %v5780_v18 = vadd.f32 %v2627_v62, %v6710_v61 }
 0x94b   :  { %v2634_v63 = vsub.f32 0.0, %v2630_v6 }
 0x94c   :  { %v2640_v27 = vsub.f32 0.0, %v2631_v46  ;;  %v2647_v36 = vsub.f32 0.0, %v5780_v18 }
 0x94d   :  { %v2635_v19 = vmul.f32 1.442695, %v2634_v63 }
 0x94e   :  { %v2641_v41 = vmul.f32 1.442695, %v2640_v27  ;;  %v2648_v22 = vmul.f32 1.442695, %v2647_v36 }
 0x94f   :  { %5972 = vpow2.f32 %v2635_v19 }
 0x950   :  { %5974 = vpow2.f32 %v2641_v41 }
 0x951   :  { %5976 = vpow2.f32 %v2648_v22  ;;  %v3142_v22 = vld [vmem:[%s8401_s4 + $0x8] sm:$0xff] }
 0x952   :  { %5978 = vtanh.f32 %v5779_v3  ;;  %v3146_v3 = vld [vmem:[%s8401_s4 + $0x28] sm:$0xff] }
 0x959   :  { %v5973_v52 = vpop.eup %5972 }
 0x95a   :  { %v5975_v9 = vpop.eup %5974  ;;  %v2637_v37 = vadd.f32 1.0, %v5973_v52  ;;  %v3144_v52 = vld [vmem:[%s8401_s4 + $0x18] sm:$0xff] }
 0x95b   :  { %v2643_v38 = vadd.f32 1.0, %v5975_v9  ;;  %v5977_v29 = vpop.eup %5976  ;;  %v7663_v9 = vpack.c.bf16 %v3146_v3, %v3142_v22  ;;  %v3181_v22 = vld [vmem:[%s8401_s4 + $0x140] sm:$0xff] }
 0x95c   :  { %5980 = vrcp.f32 %v2637_v37  ;;  %v5979_v5 = vpop.eup %5978  ;;  %v2650_v62 = vadd.f32 1.0, %v5977_v29  ;;  %v3148_v37 = vld [vmem:[%s8401_s4 + $0x38] sm:$0xff]  ;;  %v3145_v29 = vld [vmem:[%s8401_s4 + $0x20] sm:$0xff] }
 0x95d   :  { %5982 = vrcp.f32 %v2643_v38  ;;  %v3141_v38 = vld [vmem:[%s8401_s4] sm:$0xff] }
 0x95e   :  { %5984 = vrcp.f32 %v2650_v62  ;;  %v3185_v3 = vld [vmem:[%s8401_s4 + $0x160] sm:$0xff] }
 0x966   :  { %v5981_v48 = vpop.eup %5980 }
 0x967   :  { %v5983_v6 = vpop.eup %5982  ;;  %v2654_v51 = vmul.f32 %v5981_v48, %v5979_v5  ;;  %v7674_v5 = vpack.c.bf16 %v3148_v37, %v3144_v52  ;;  %v7676_v48 = vpack.c.bf16 %v3145_v29, %v3141_v38  ;;  %v7816_v37 = vpack.c.bf16 %v3185_v3, %v3181_v22  ;;  %v3183_v38 = vld [vmem:[%s8401_s4 + $0x150] sm:$0xff] }
 0x968   :  { %v2653_v46 = vmul.f32 %v5983_v6, %v7551_v59  ;;  %v5985_v20 = vpop.eup %5984  ;;  %v3143_v6 = vld [vmem:[%s8401_s4 + $0x10] sm:$0xff] }
 0x969   :  { %v3187_v29 = vld [vmem:[%s8401_s4 + $0x170] sm:$0xff] }
 0x96a   :  { %v7599_v63 = vadd.f32 %v2654_v51, %v2653_v46  ;;  %v3147_v51 = vld [vmem:[%s8401_s4 + $0x30] sm:$0xff]  ;;  %v3150_v46 = vld [vmem:[%s8401_s4 + $0x48] sm:$0xff] }
 0x96b   :  { %v7685_v62 = vpack.c.bf16 %v3147_v51, %v3143_v6  ;;  %v3190_v6 = vld [vmem:[%s8401_s4 + $0x188] sm:$0xff]  ;;  %v7828_v51 = vpack.c.bf16 %v3187_v29, %v3183_v38 }
 0x96c   :  { %5986 = vtanh.f32 %v7599_v63 }
 0x976   :  { %v5987_v27 = vpop.eup %5986 }
 0x977   :  { %v7602_v19 = vmul.f32 %v5987_v27, %v5985_v20  ;;  %v3152_v20 = vld [vmem:[%s8401_s4 + $0x58] sm:$0xff] }
 0x979   :  { %2792 = vmatmul.mubr.f32.vlgmr.msra.gmra.mrb[18].mxu0 %v7602_v19  ;;  %2863 = vmatmul.mubr.f32.vlgmr.msra.gmra.mrb[34].mxu1 %v7602_v19 }
 0x97a   :  { %5300 = vmatpush1.bf16.msra.mxu0 %v7232_v53  ;;  %5332 = vmatpush1.bf16.msra.mxu1 %v7241_v56  ;;  %v241_v53 = vadd.f32 %v6671_v10, %v6704_v40  ;;  %v243_v56 = vadd.f32 %v6673_v23, %v6702_v7 }
 0x97b   :  { %5302 = vmatprep.subr.bf16.mxu0 %v7255_v13  ;;  %5334 = vmatprep.subr.bf16.mxu1 %v7266_v1 }
 0x97c   :  { %3030 = vmatprep.mubr.f32.mxu0 %v8425_v16  ;;  %3101 = vmatprep.mubr.f32.mxu1 %v8425_v16 }
 0x97e   :  { %5304 = vmatpush1.bf16.msra.mxu0 %v7268_v21  ;;  %5336 = vmatpush1.bf16.msra.mxu1 %v7277_v28 }
 0x97f   :  { %5306 = vmatprep.subr.bf16.mxu0 %v7288_v2  ;;  %5338 = vmatprep.subr.bf16.mxu1 %v7499_v26 }
 0x982   :  { %5308 = vmatpush1.bf16.msra.mxu0 %v7297_v24  ;;  %5340 = vmatpush1.bf16.msra.mxu1 %v7507_v34 }
 0x983   :  { %5310 = vmatprep.subr.bf16.mxu0 %v7308_v32  ;;  %5342 = vmatprep.subr.bf16.mxu1 %v7517_v35 }
 0x986   :  { %5312 = vmatpush1.bf16.msra.mxu0 %v7317_v11  ;;  %5344 = vmatpush1.bf16.msra.mxu1 %v7525_v43 }
 0x987   :  { %5314 = vmatprep.subr.bf16.mxu0 %v7328_v54  ;;  %5346 = vmatprep.subr.bf16.mxu1 %v7535_v49 }
 0x98a   :  { %5316 = vmatpush1.bf16.msra.mxu0 %v7340_v12  ;;  %5348 = vmatpush1.bf16.msra.mxu1 %v7346_v60 }
 0x98b   :  { %5318 = vmatprep.subr.bf16.mxu0 %v7358_v25  ;;  %5350 = vmatprep.subr.bf16.mxu1 %v7370_v47 }
 0x98e   :  { %5320 = vmatpush1.bf16.msra.mxu0 %v7372_v15  ;;  %5352 = vmatpush1.bf16.msra.mxu1 %v7384_v31 }
 0x98f   :  { %5322 = vmatprep.subr.bf16.mxu0 %v7396_v14  ;;  %5354 = vmatprep.subr.bf16.mxu1 %v7398_v8 }
 0x992   :  { %5324 = vmatpush1.bf16.msra.mxu0 %v7410_v57  ;;  %5356 = vmatpush1.bf16.msra.mxu1 %v7423_v17 }
 0x993   :  { %5326 = vmatprep.subr.bf16.mxu0 %v7425_v55  ;;  %5358 = vmatprep.subr.bf16.mxu1 %v7437_v44 }
 0x996   :  { %5328 = vmatpush1.bf16.msra.mxu0 %v7449_v4  ;;  %5360 = vmatpush1.bf16.msra.mxu1 %v7453_v30 }
 0x997   :  { %5362 = vmatprep.subr.bf16.mxu0 %v7663_v9  ;;  %5394 = vmatprep.subr.bf16.mxu1 %v7674_v5 }
 0xa4c   :  { %v2793_v13 = vpop.f32.mrb[18].mxu0  ;;  %v2864_v1 = vpop.f32.mrb[34].mxu1 }
 0xa4d   :  { %v2869_v21 = vadd.f32 %v2793_v13, %v241_v53  ;;  %v2795_v28 = vpop.f32.mrb[19].mxu0  ;;  %v2866_v2 = vpop.f32.mrb[35].mxu1  ;;  %v5781_v10 = vadd.f32 %v2864_v1, %v6708_v39  ;;  %v3156_v53 = vld [vmem:[%s8401_s4 + $0x78] sm:$0xff]  ;;  %v3153_v13 = vld [vmem:[%s8401_s4 + $0x60] sm:$0xff] }
 0xa4e   :  { %v2870_v24 = vadd.f32 %v2795_v28, %v243_v56  ;;  %v5782_v60 = vadd.f32 %v2866_v2, %v6710_v61  ;;  %v3149_v56 = vld [vmem:[%s8401_s4 + $0x40] sm:$0xff]  ;;  %v7710_v1 = vpack.c.bf16 %v3156_v53, %v3152_v20  ;;  %v3151_v28 = vld [vmem:[%s8401_s4 + $0x50] sm:$0xff]  ;;  %v3196_v20 = vld [vmem:[%s8401_s4 + $0x1b8] sm:$0xff] }
 0xa4f   :  { %v2873_v32 = vsub.f32 0.0, %v2869_v21  ;;  %v7712_v21 = vpack.c.bf16 %v3153_v13, %v3149_v56  ;;  %v3155_v2 = vld [vmem:[%s8401_s4 + $0x70] sm:$0xff]  ;;  %v3189_v13 = vld [vmem:[%s8401_s4 + $0x180] sm:$0xff] }
 0xa50   :  { %v2879_v11 = vsub.f32 0.0, %v2870_v24  ;;  %v2886_v25 = vsub.f32 0.0, %v5782_v60  ;;  %v7721_v24 = vpack.c.bf16 %v3155_v2, %v3151_v28  ;;  %v3161_v60 = vld [vmem:[%s8401_s4 + $0xa0] sm:$0xff]  ;;  %v3191_v2 = vld [vmem:[%s8401_s4 + $0x190] sm:$0xff] }
 0xa51   :  { %v2874_v54 = vmul.f32 1.442695, %v2873_v32  ;;  %v3158_v32 = vld [vmem:[%s8401_s4 + $0x88] sm:$0xff]  ;;  %v3193_v28 = vld [vmem:[%s8401_s4 + $0x1a0] sm:$0xff] }
 0xa52   :  { %v2880_v12 = vmul.f32 1.442695, %v2879_v11  ;;  %v2887_v47 = vmul.f32 1.442695, %v2886_v25  ;;  %v3162_v11 = vld [vmem:[%s8401_s4 + $0xa8] sm:$0xff] }
 0xa53   :  { %5988 = vpow2.f32 %v2874_v54  ;;  %v7732_v54 = vpack.c.bf16 %v3162_v11, %v3158_v32  ;;  %v7854_v32 = vpack.c.bf16 %v3193_v28, %v3189_v13  ;;  %v3195_v11 = vld [vmem:[%s8401_s4 + $0x1b0] sm:$0xff] }
 0xa54   :  { %5990 = vpow2.f32 %v2880_v12  ;;  %v3157_v12 = vld [vmem:[%s8401_s4 + $0x80] sm:$0xff] }
 0xa55   :  { %5992 = vpow2.f32 %v2887_v47  ;;  %v7741_v25 = vpack.c.bf16 %v3161_v60, %v3157_v12  ;;  %v3166_v47 = vld [vmem:[%s8401_s4 + $0xc8] sm:$0xff] }
 0xa56   :  { %5994 = vtanh.f32 %v5781_v10  ;;  %v3170_v10 = vld [vmem:[%s8401_s4 + $0xe8] sm:$0xff] }
 0xa57   :  { %v3198_v12 = vld [vmem:[%s8401_s4 + $0x1c8] sm:$0xff] }
 0xa58   :  { %v3202_v60 = vld [vmem:[%s8401_s4 + $0x1e8] sm:$0xff] }
 0xa5d   :  { %v5989_v15 = vpop.eup %5988 }
 0xa5e   :  { %v5991_v23 = vpop.eup %5990  ;;  %v2876_v31 = vadd.f32 1.0, %v5989_v15  ;;  %v7752_v15 = vpack.c.bf16 %v3170_v10, %v3166_v47  ;;  %v7867_v47 = vpack.c.bf16 %v3195_v11, %v3191_v2  ;;  %v7869_v10 = vpack.c.bf16 %v3202_v60, %v3198_v12 }
 0xa5f   :  { %v2882_v14 = vadd.f32 1.0, %v5991_v23  ;;  %v5993_v8 = vpop.eup %5992  ;;  %v3169_v23 = vld [vmem:[%s8401_s4 + $0xe0] sm:$0xff] }
 0xa60   :  { %5996 = vrcp.f32 %v2876_v31  ;;  %v5995_v57 = vpop.eup %5994  ;;  %v2889_v4 = vadd.f32 1.0, %v5993_v8 }
 0xa61   :  { %5998 = vrcp.f32 %v2882_v14  ;;  %v3178_v14 = vld [vmem:[%s8401_s4 + $0x128] sm:$0xff] }
 0xa62   :  { %6000 = vrcp.f32 %v2889_v4  ;;  %v3182_v4 = vld [vmem:[%s8401_s4 + $0x148] sm:$0xff] }
 0xa6a   :  { %v5997_v17 = vpop.eup %5996 }
 0xa6b   :  { %v5999_v55 = vpop.eup %5998  ;;  %v2893_v44 = vmul.f32 %v5997_v17, %v5995_v57  ;;  %v3177_v57 = vld [vmem:[%s8401_s4 + $0x120] sm:$0xff]  ;;  %v3175_v17 = vld [vmem:[%s8401_s4 + $0x110] sm:$0xff] }
 0xa6c   :  { %v2892_v30 = vmul.f32 %v5999_v55, %v7599_v63  ;;  %v6001_v41 = vpop.eup %6000  ;;  %v3154_v63 = vld [vmem:[%s8401_s4 + $0x68] sm:$0xff] }
 0xa6d   :  { %v7699_v27 = vpack.c.bf16 %v3154_v63, %v3150_v46  ;;  %v3194_v46 = vld [vmem:[%s8401_s4 + $0x1a8] sm:$0xff]  ;;  %v3192_v63 = vld [vmem:[%s8401_s4 + $0x198] sm:$0xff] }
 0xa6e   :  { %v7645_v59 = vadd.f32 %v2893_v44, %v2892_v30  ;;  %v3186_v30 = vld [vmem:[%s8401_s4 + $0x168] sm:$0xff]  ;;  %v7840_v53 = vpack.c.bf16 %v3194_v46, %v3190_v6  ;;  %v7842_v56 = vpack.c.bf16 %v3196_v20, %v3192_v63 }
 0xa70   :  { %6002 = vtanh.f32 %v7645_v59 }
 0xa7a   :  { %v6003_v18 = vpop.eup %6002 }
 0xa7b   :  { %v7648_v36 = vmul.f32 %v6003_v18, %v6001_v41  ;;  %v7802_v41 = vpack.c.bf16 %v3186_v30, %v3182_v4  ;;  %v3188_v18 = vld [vmem:[%s8401_s4 + $0x178] sm:$0xff]  ;;  %v247_v30 = vadd.f32 %v6675_v33, %v6704_v40 }
 0xa7d   :  { %3031 = vmatmul.mubr.f32.vlgmr.msra.gmra.mrb[20].mxu0 %v7648_v36  ;;  %3102 = vmatmul.mubr.f32.vlgmr.msra.gmra.mrb[36].mxu1 %v7648_v36 }
 0xa7e   :  { %3269 = vmatprep.mubr.f32.mxu0 %v8425_v16  ;;  %3340 = vmatprep.mubr.f32.mxu1 %v8425_v16 }
 0xa7f   :  { %5364 = vmatpush1.bf16.msra.mxu0 %v7676_v48  ;;  %5396 = vmatpush1.bf16.msra.mxu1 %v7685_v62 }
 0xa80   :  { %5366 = vmatprep.subr.bf16.mxu0 %v7699_v27  ;;  %5398 = vmatprep.subr.bf16.mxu1 %v7710_v1 }
 0xa83   :  { %5368 = vmatpush1.bf16.msra.mxu0 %v7712_v21  ;;  %5400 = vmatpush1.bf16.msra.mxu1 %v7721_v24 }
 0xa84   :  { %5402 = vmatprep.subr.bf16.mxu1 %v7499_v26  ;;  %5370 = vmatprep.subr.bf16.mxu0 %v7732_v54  ;;  %v3165_v26 = vld [vmem:[%s8401_s4 + $0xc0] sm:$0xff] }
 0xa85   :  { %v7761_v31 = vpack.c.bf16 %v3169_v23, %v3165_v26  ;;  %v3200_v26 = vld [vmem:[%s8401_s4 + $0x1d8] sm:$0xff] }
 0xa86   :  { %v3204_v23 = vld [vmem:[%s8401_s4 + $0x1f8] sm:$0xff] }
 0xa87   :  { %5372 = vmatpush1.bf16.msra.mxu0 %v7741_v25  ;;  %5404 = vmatpush1.bf16.msra.mxu1 %v7507_v34  ;;  %v3174_v34 = vld [vmem:[%s8401_s4 + $0x108] sm:$0xff] }
 0xa88   :  { %5406 = vmatprep.subr.bf16.mxu1 %v7517_v35  ;;  %5374 = vmatprep.subr.bf16.mxu0 %v7752_v15  ;;  %v7772_v8 = vpack.c.bf16 %v3178_v14, %v3174_v34  ;;  %v3173_v35 = vld [vmem:[%s8401_s4 + $0x100] sm:$0xff]  ;;  %v7881_v14 = vpack.c.bf16 %v3204_v23, %v3200_v26 }
 0xa89   :  { %v7784_v55 = vpack.c.bf16 %v3177_v57, %v3173_v35  ;;  %v3197_v34 = vld [vmem:[%s8401_s4 + $0x1c0] sm:$0xff]  ;;  %v3199_v57 = vld [vmem:[%s8401_s4 + $0x1d0] sm:$0xff] }
 0xa8a   :  { %v3201_v35 = vld [vmem:[%s8401_s4 + $0x1e0] sm:$0xff] }
 0xa8b   :  { %5376 = vmatpush1.bf16.msra.mxu0 %v7761_v31  ;;  %5408 = vmatpush1.bf16.msra.mxu1 %v7525_v43  ;;  %v3179_v43 = vld [vmem:[%s8401_s4 + $0x130] sm:$0xff] }
 0xa8c   :  { %5410 = vmatprep.subr.bf16.mxu1 %v7535_v49  ;;  %5378 = vmatprep.subr.bf16.mxu0 %v7772_v8  ;;  %v7790_v44 = vpack.c.bf16 %v3179_v43, %v3175_v17  ;;  %v3184_v49 = vld [vmem:[%s8401_s4 + $0x158] sm:$0xff]  ;;  %v3203_v17 = vld [vmem:[%s8401_s4 + $0x1f0] sm:$0xff]  ;;  %v7893_v43 = vpack.c.bf16 %v3201_v35, %v3197_v34 }
 0xa8d   :  { %v7814_v52 = vpack.c.bf16 %v3188_v18, %v3184_v49  ;;  %v7897_v4 = vpack.c.bf16 %v3203_v17, %v3199_v57  ;;  %v249_v49 = vadd.f32 %v6677_v42, %v6702_v7 }
 0xa8f   :  { %5380 = vmatpush1.bf16.msra.mxu0 %v7784_v55  ;;  %5412 = vmatpush1.bf16.msra.mxu1 %v7790_v44 }
 0xa90   :  { %5382 = vmatprep.subr.bf16.mxu0 %v7802_v41  ;;  %5414 = vmatprep.subr.bf16.mxu1 %v7814_v52 }
 0xa93   :  { %5384 = vmatpush1.bf16.msra.mxu0 %v7816_v37  ;;  %5416 = vmatpush1.bf16.msra.mxu1 %v7828_v51 }
 0xa94   :  { %5386 = vmatprep.subr.bf16.mxu0 %v7840_v53  ;;  %5418 = vmatprep.subr.bf16.mxu1 %v7842_v56 }
 0xa97   :  { %5388 = vmatpush1.bf16.msra.mxu0 %v7854_v32  ;;  %5420 = vmatpush1.bf16.msra.mxu1 %v7867_v47 }
 0xa98   :  { %5390 = vmatprep.subr.bf16.mxu0 %v7869_v10  ;;  %5422 = vmatprep.subr.bf16.mxu1 %v7881_v14 }
 0xa9b   :  { %5392 = vmatpush1.bf16.msra.mxu0 %v7893_v43  ;;  %5424 = vmatpush1.bf16.msra.mxu1 %v7897_v4 }
 0xa9c   :  { %5426 = vmatprep.subr.bf16.mxu0 %v7663_v9  ;;  %5458 = vmatprep.subr.bf16.mxu1 %v7674_v5 }
 0xb50   :  { %v3032_v18 = vpop.f32.mrb[20].mxu0  ;;  %v3103_v22 = vpop.f32.mrb[36].mxu1 }
 0xb51   :  { %v3108_v3 = vadd.f32 %v3032_v18, %v247_v30  ;;  %v3034_v38 = vpop.f32.mrb[21].mxu0  ;;  %v3105_v29 = vpop.f32.mrb[37].mxu1  ;;  %v5783_v33 = vadd.f32 %v3103_v22, %v6708_v39 }
 0xb52   :  { %v3109_v6 = vadd.f32 %v3034_v38, %v249_v49  ;;  %v5784_v28 = vadd.f32 %v3105_v29, %v6710_v61  ;;  %v3403_v29 = vld [vmem:[%s8401_s4 + $0xb8] sm:$0xff] }
 0xb53   :  { %v3112_v46 = vsub.f32 0.0, %v3108_v3 }
 0xb54   :  { %v3118_v63 = vsub.f32 0.0, %v3109_v6  ;;  %v3125_v2 = vsub.f32 0.0, %v5784_v28  ;;  %v3411_v28 = vld [vmem:[%s8401_s4 + $0xf8] sm:$0xff] }
 0xb55   :  { %v3113_v20 = vmul.f32 1.442695, %v3112_v46  ;;  %v3398_v46 = vld [vmem:[%s8401_s4 + $0x90] sm:$0xff] }
 0xb56   :  { %v3119_v13 = vmul.f32 1.442695, %v3118_v63  ;;  %v3126_v11 = vmul.f32 1.442695, %v3125_v2  ;;  %v3402_v63 = vld [vmem:[%s8401_s4 + $0xb0] sm:$0xff] }
 0xb57   :  { %6004 = vpow2.f32 %v3113_v20  ;;  %v7953_v20 = vpack.c.bf16 %v3402_v63, %v3398_v46 }
 0xb58   :  { %6006 = vpow2.f32 %v3119_v13  ;;  %v3407_v13 = vld [vmem:[%s8401_s4 + $0xd8] sm:$0xff] }
 0xb59   :  { %6008 = vpow2.f32 %v3126_v11  ;;  %v7963_v2 = vpack.c.bf16 %v3411_v28, %v3407_v13  ;;  %v3406_v11 = vld [vmem:[%s8401_s4 + $0xd0] sm:$0xff] }
 0xb5a   :  { %6010 = vtanh.f32 %v5783_v33  ;;  %v3410_v33 = vld [vmem:[%s8401_s4 + $0xf0] sm:$0xff] }
 0xb61   :  { %v6005_v12 = vpop.eup %6004 }
 0xb62   :  { %v6007_v42 = vpop.eup %6006  ;;  %v3115_v60 = vadd.f32 1.0, %v6005_v12  ;;  %v7971_v12 = vpack.c.bf16 %v3410_v33, %v3406_v11 }
 0xb63   :  { %v3121_v26 = vadd.f32 1.0, %v6007_v42  ;;  %v6009_v23 = vpop.eup %6008  ;;  %v3415_v42 = vld [vmem:[%s8401_s4 + $0x118] sm:$0xff] }
 0xb64   :  { %6012 = vrcp.f32 %v3115_v60  ;;  %v6011_v34 = vpop.eup %6010  ;;  %v3128_v30 = vadd.f32 1.0, %v6009_v23  ;;  %v3419_v60 = vld [vmem:[%s8401_s4 + $0x138] sm:$0xff]  ;;  %v253_v23 = vadd.f32 %v6679_v50, %v6704_v40 }
 0xb65   :  { %6014 = vrcp.f32 %v3121_v26  ;;  %v7981_v26 = vpack.c.bf16 %v3419_v60, %v3415_v42 }
 0xb66   :  { %6016 = vrcp.f32 %v3128_v30 }
 0xb6e   :  { %v6013_v35 = vpop.eup %6012 }
 0xb6f   :  { %v6015_v57 = vpop.eup %6014  ;;  %v3132_v17 = vmul.f32 %v6013_v35, %v6011_v34  ;;  %v255_v34 = vadd.f32 %v6681_v58, %v6702_v7 }
 0xb70   :  { %v3131_v49 = vmul.f32 %v6015_v57, %v7645_v59  ;;  %v6017_v22 = vpop.eup %6016  ;;  %v3399_v59 = vld [vmem:[%s8401_s4 + $0x98] sm:$0xff] }
 0xb71   :  { %v7945_v6 = vpack.c.bf16 %v3403_v29, %v3399_v59 }
 0xb72   :  { %v7911_v18 = vadd.f32 %v3132_v17, %v3131_v49 }
 0xb74   :  { %6018 = vtanh.f32 %v7911_v18 }
 0xb7e   :  { %v6019_v3 = vpop.eup %6018 }
 0xb7f   :  { %v7914_v38 = vmul.f32 %v6019_v3, %v6017_v22 }
 0xb81   :  { %3270 = vmatmul.mubr.f32.vlgmr.msra.gmra.mrb[22].mxu0 %v7914_v38  ;;  %3341 = vmatmul.mubr.f32.vlgmr.msra.gmra.mrb[38].mxu1 %v7914_v38 }
 0xb82   :  { %5428 = vmatpush1.bf16.msra.mxu0 %v7676_v48  ;;  %5460 = vmatpush1.bf16.msra.mxu1 %v7685_v62 }
 0xb83   :  { %5430 = vmatprep.subr.bf16.mxu0 %v7699_v27  ;;  %5462 = vmatprep.subr.bf16.mxu1 %v7710_v1 }
 0xb84   :  { %3508 = vmatprep.mubr.f32.mxu0 %v8425_v16  ;;  %3579 = vmatprep.mubr.f32.mxu1 %v8425_v16 }
 0xb86   :  { %5432 = vmatpush1.bf16.msra.mxu0 %v7712_v21  ;;  %5464 = vmatpush1.bf16.msra.mxu1 %v7721_v24 }
 0xb87   :  { %5434 = vmatprep.subr.bf16.mxu0 %v7732_v54  ;;  %5466 = vmatprep.subr.bf16.mxu1 %v7945_v6 }
 0xb8a   :  { %5436 = vmatpush1.bf16.msra.mxu0 %v7741_v25  ;;  %5468 = vmatpush1.bf16.msra.mxu1 %v7953_v20 }
 0xb8b   :  { %5438 = vmatprep.subr.bf16.mxu0 %v7752_v15  ;;  %5470 = vmatprep.subr.bf16.mxu1 %v7963_v2 }
 0xb8e   :  { %5440 = vmatpush1.bf16.msra.mxu0 %v7761_v31  ;;  %5472 = vmatpush1.bf16.msra.mxu1 %v7971_v12 }
 0xb8f   :  { %5442 = vmatprep.subr.bf16.mxu0 %v7772_v8  ;;  %5474 = vmatprep.subr.bf16.mxu1 %v7981_v26 }
 0xb92   :  { %5444 = vmatpush1.bf16.msra.mxu0 %v7784_v55  ;;  %5476 = vmatpush1.bf16.msra.mxu1 %v7790_v44 }
 0xb93   :  { %5446 = vmatprep.subr.bf16.mxu0 %v7802_v41  ;;  %5478 = vmatprep.subr.bf16.mxu1 %v7814_v52 }
 0xb96   :  { %5448 = vmatpush1.bf16.msra.mxu0 %v7816_v37  ;;  %5480 = vmatpush1.bf16.msra.mxu1 %v7828_v51 }
 0xb97   :  { %5450 = vmatprep.subr.bf16.mxu0 %v7840_v53  ;;  %5482 = vmatprep.subr.bf16.mxu1 %v7842_v56 }
 0xb9a   :  { %5452 = vmatpush1.bf16.msra.mxu0 %v7854_v32  ;;  %5484 = vmatpush1.bf16.msra.mxu1 %v7867_v47 }
 0xb9b   :  { %5454 = vmatprep.subr.bf16.mxu0 %v7869_v10  ;;  %5486 = vmatprep.subr.bf16.mxu1 %v7881_v14 }
 0xb9e   :  { %5456 = vmatpush1.bf16.msra.mxu0 %v7893_v43  ;;  %5488 = vmatpush1.bf16.msra.mxu1 %v7897_v4 }
 0xb9f   :  { %5490 = vmatprep.subr.bf16.mxu0 %v7663_v9  ;;  %5522 = vmatprep.subr.bf16.mxu1 %v7674_v5 }
 0xc54   :  { %v3271_v35 = vpop.f32.mrb[22].mxu0  ;;  %v3342_v57 = vpop.f32.mrb[38].mxu1 }
 0xc55   :  { %v3347_v17 = vadd.f32 %v3271_v35, %v253_v23  ;;  %v3273_v30 = vpop.f32.mrb[23].mxu0  ;;  %v3344_v49 = vpop.f32.mrb[39].mxu1  ;;  %v5785_v50 = vadd.f32 %v3342_v57, %v6708_v39 }
 0xc56   :  { %v3348_v22 = vadd.f32 %v3273_v30, %v255_v34  ;;  %v5786_v63 = vadd.f32 %v3344_v49, %v6710_v61 }
 0xc57   :  { %v3351_v3 = vsub.f32 0.0, %v3347_v17 }
 0xc58   :  { %v3357_v59 = vsub.f32 0.0, %v3348_v22  ;;  %v3364_v13 = vsub.f32 0.0, %v5786_v63 }
 0xc59   :  { %v3352_v29 = vmul.f32 1.442695, %v3351_v3 }
 0xc5a   :  { %v3358_v46 = vmul.f32 1.442695, %v3357_v59  ;;  %v3365_v28 = vmul.f32 1.442695, %v3364_v13 }
 0xc5b   :  { %6020 = vpow2.f32 %v3352_v29  ;;  %v8432_v29 = vld [vmem:[#allocation4_spill] sm:$0xff] }
 0xc5c   :  { %6022 = vpow2.f32 %v3358_v46  ;;  %v261_v46 = vadd.f32 %v8432_v29, %v6702_v7 }
 0xc5d   :  { %6024 = vpow2.f32 %v3365_v28 }
 0xc5e   :  { %6026 = vtanh.f32 %v5785_v50 }
 0xc65   :  { %v6021_v11 = vpop.eup %6020 }
 0xc66   :  { %v6023_v58 = vpop.eup %6022  ;;  %v3354_v33 = vadd.f32 1.0, %v6021_v11 }
 0xc67   :  { %v3360_v42 = vadd.f32 1.0, %v6023_v58  ;;  %v6025_v60 = vpop.eup %6024 }
 0xc68   :  { %6028 = vrcp.f32 %v3354_v33  ;;  %v6027_v23 = vpop.eup %6026  ;;  %v3367_v30 = vadd.f32 1.0, %v6025_v60 }
 0xc69   :  { %6030 = vrcp.f32 %v3360_v42 }
 0xc6a   :  { %6032 = vrcp.f32 %v3367_v30 }
 0xc72   :  { %v6029_v34 = vpop.eup %6028 }
 0xc73   :  { %v6031_v35 = vpop.eup %6030  ;;  %v3371_v17 = vmul.f32 %v6029_v34, %v6027_v23 }
 0xc74   :  { %v3370_v49 = vmul.f32 %v6031_v35, %v7911_v18  ;;  %v6033_v57 = vpop.eup %6032  ;;  %v259_v18 = vadd.f32 %v6683_v0, %v6704_v40 }
 0xc76   :  { %v7999_v22 = vadd.f32 %v3371_v17, %v3370_v49 }
 0xc78   :  { %6034 = vtanh.f32 %v7999_v22 }
 0xc82   :  { %v6035_v3 = vpop.eup %6034 }
 0xc83   :  { %v8002_v59 = vmul.f32 %v6035_v3, %v6033_v57 }
 0xc85   :  { %3509 = vmatmul.mubr.f32.vlgmr.msra.gmra.mrb[24].mxu0 %v8002_v59  ;;  %3580 = vmatmul.mubr.f32.vlgmr.msra.gmra.mrb[40].mxu1 %v8002_v59 }
 0xc86   :  { %5492 = vmatpush1.bf16.msra.mxu0 %v7676_v48  ;;  %5524 = vmatpush1.bf16.msra.mxu1 %v7685_v62 }
 0xc87   :  { %5494 = vmatprep.subr.bf16.mxu0 %v7699_v27  ;;  %5526 = vmatprep.subr.bf16.mxu1 %v7710_v1 }
 0xc88   :  { %3747 = vmatprep.mubr.f32.mxu0 %v8425_v16  ;;  %3818 = vmatprep.mubr.f32.mxu1 %v8425_v16 }
 0xc8a   :  { %5496 = vmatpush1.bf16.msra.mxu0 %v7712_v21  ;;  %5528 = vmatpush1.bf16.msra.mxu1 %v7721_v24 }
 0xc8b   :  { %5498 = vmatprep.subr.bf16.mxu0 %v7732_v54  ;;  %5530 = vmatprep.subr.bf16.mxu1 %v7945_v6 }
 0xc8e   :  { %5500 = vmatpush1.bf16.msra.mxu0 %v7741_v25  ;;  %5532 = vmatpush1.bf16.msra.mxu1 %v7953_v20 }
 0xc8f   :  { %5502 = vmatprep.subr.bf16.mxu0 %v7752_v15  ;;  %5534 = vmatprep.subr.bf16.mxu1 %v7963_v2 }
 0xc92   :  { %5504 = vmatpush1.bf16.msra.mxu0 %v7761_v31  ;;  %5536 = vmatpush1.bf16.msra.mxu1 %v7971_v12 }
 0xc93   :  { %5506 = vmatprep.subr.bf16.mxu0 %v7772_v8  ;;  %5538 = vmatprep.subr.bf16.mxu1 %v7981_v26 }
 0xc96   :  { %5508 = vmatpush1.bf16.msra.mxu0 %v7784_v55  ;;  %5540 = vmatpush1.bf16.msra.mxu1 %v7790_v44 }
 0xc97   :  { %5510 = vmatprep.subr.bf16.mxu0 %v7802_v41  ;;  %5542 = vmatprep.subr.bf16.mxu1 %v7814_v52 }
 0xc9a   :  { %5512 = vmatpush1.bf16.msra.mxu0 %v7816_v37  ;;  %5544 = vmatpush1.bf16.msra.mxu1 %v7828_v51 }
 0xc9b   :  { %5514 = vmatprep.subr.bf16.mxu0 %v7840_v53  ;;  %5546 = vmatprep.subr.bf16.mxu1 %v7842_v56 }
 0xc9e   :  { %5516 = vmatpush1.bf16.msra.mxu0 %v7854_v32  ;;  %5548 = vmatpush1.bf16.msra.mxu1 %v7867_v47 }
 0xc9f   :  { %5518 = vmatprep.subr.bf16.mxu0 %v7869_v10  ;;  %5550 = vmatprep.subr.bf16.mxu1 %v7881_v14 }
 0xca2   :  { %5520 = vmatpush1.bf16.msra.mxu0 %v7893_v43  ;;  %5552 = vmatpush1.bf16.msra.mxu1 %v7897_v4 }
 0xca3   :  { %5554 = vmatprep.subr.bf16.mxu0 %v7663_v9  ;;  %5586 = vmatprep.subr.bf16.mxu1 %v7674_v5 }
 0xd58   :  { %v3510_v63 = vpop.f32.mrb[24].mxu0  ;;  %v3581_v13 = vpop.f32.mrb[40].mxu1 }
 0xd59   :  { %v3586_v28 = vadd.f32 %v3510_v63, %v259_v18  ;;  %v3512_v50 = vpop.f32.mrb[25].mxu0  ;;  %v3583_v11 = vpop.f32.mrb[41].mxu1  ;;  %v5787_v0 = vadd.f32 %v3581_v13, %v6708_v39 }
 0xd5a   :  { %v3587_v58 = vadd.f32 %v3512_v50, %v261_v46  ;;  %v5788_v9 = vadd.f32 %v3583_v11, %v6710_v61 }
 0xd5b   :  { %v3590_v33 = vsub.f32 0.0, %v3586_v28 }
 0xd5c   :  { %v3596_v42 = vsub.f32 0.0, %v3587_v58  ;;  %v3603_v5 = vsub.f32 0.0, %v5788_v9 }
 0xd5d   :  { %v3591_v60 = vmul.f32 1.442695, %v3590_v33 }
 0xd5e   :  { %v3597_v23 = vmul.f32 1.442695, %v3596_v42  ;;  %v3604_v34 = vmul.f32 1.442695, %v3603_v5 }
 0xd5f   :  { %6036 = vpow2.f32 %v3591_v60 }
 0xd60   :  { %6038 = vpow2.f32 %v3597_v23 }
 0xd61   :  { %6040 = vpow2.f32 %v3604_v34 }
 0xd62   :  { %6042 = vtanh.f32 %v5787_v0  ;;  %v4098_v0 = vld [vmem:[%s8401_s4 + $0x8] sm:$0xff] }
 0xd69   :  { %v6037_v35 = vpop.eup %6036 }
 0xd6a   :  { %v6039_v17 = vpop.eup %6038  ;;  %v3593_v30 = vadd.f32 1.0, %v6037_v35  ;;  %v4102_v35 = vld [vmem:[%s8401_s4 + $0x28] sm:$0xff] }
 0xd6b   :  { %v3599_v49 = vadd.f32 1.0, %v6039_v17  ;;  %v6041_v57 = vpop.eup %6040  ;;  %v5617_v17 = vpack.c.bf16 %v4102_v35, %v4098_v0 }
 0xd6c   :  { %6044 = vrcp.f32 %v3593_v30  ;;  %v6043_v3 = vpop.eup %6042  ;;  %v3606_v63 = vadd.f32 1.0, %v6041_v57  ;;  %v4097_v30 = vld [vmem:[%s8401_s4] sm:$0xff] }
 0xd6d   :  { %6046 = vrcp.f32 %v3599_v49  ;;  %v4101_v49 = vld [vmem:[%s8401_s4 + $0x20] sm:$0xff] }
 0xd6e   :  { %6048 = vrcp.f32 %v3606_v63  ;;  %v5619_v57 = vpack.c.bf16 %v4101_v49, %v4097_v30  ;;  %v4143_v30 = vld [vmem:[%s8401_s4 + $0x170] sm:$0xff]  ;;  %v4146_v49 = vld [vmem:[%s8401_s4 + $0x188] sm:$0xff] }
 0xd76   :  { %v6045_v18 = vpop.eup %6044 }
 0xd77   :  { %v6047_v29 = vpop.eup %6046  ;;  %v3610_v46 = vmul.f32 %v6045_v18, %v6043_v3  ;;  %v4104_v3 = vld [vmem:[%s8401_s4 + $0x38] sm:$0xff]  ;;  %v4099_v18 = vld [vmem:[%s8401_s4 + $0x10] sm:$0xff] }
 0xd78   :  { %v3609_v28 = vmul.f32 %v6047_v29, %v7999_v22  ;;  %v6049_v13 = vpop.eup %6048  ;;  %v4103_v29 = vld [vmem:[%s8401_s4 + $0x30] sm:$0xff] }
 0xd79   :  { %v5651_v63 = vpack.c.bf16 %v4103_v29, %v4099_v18  ;;  %v4149_v18 = vld [vmem:[%s8401_s4 + $0x1a0] sm:$0xff] }
 0xd7a   :  { %v8047_v50 = vadd.f32 %v3610_v46, %v3609_v28  ;;  %v4106_v28 = vld [vmem:[%s8401_s4 + $0x48] sm:$0xff] }
 0xd7c   :  { %6050 = vtanh.f32 %v8047_v50 }
 0xd86   :  { %v6051_v11 = vpop.eup %6050 }
 0xd87   :  { %v8050_v58 = vmul.f32 %v6051_v11, %v6049_v13  ;;  %v4105_v11 = vld [vmem:[%s8401_s4 + $0x40] sm:$0xff] }
 0xd89   :  { %3748 = vmatmul.mubr.f32.vlgmr.msra.gmra.mrb[26].mxu0 %v8050_v58  ;;  %3819 = vmatmul.mubr.f32.vlgmr.msra.gmra.mrb[42].mxu1 %v8050_v58 }
 0xd8a   :  { %5556 = vmatpush1.bf16.msra.mxu0 %v7676_v48  ;;  %5588 = vmatpush1.bf16.msra.mxu1 %v7685_v62  ;;  %v8433_v48 = vld [vmem:[#allocation5_spill] sm:$0xff] }
 0xd8b   :  { %5558 = vmatprep.subr.bf16.mxu0 %v7699_v27  ;;  %5590 = vmatprep.subr.bf16.mxu1 %v7710_v1  ;;  %v265_v62 = vadd.f32 %v8433_v48, %v6704_v40  ;;  %v8434_v27 = vld [vmem:[#allocation6_spill] sm:$0xff]  ;;  %v4109_v48 = vld [vmem:[%s8401_s4 + $0x60] sm:$0xff] }
 0xd8c   :  { %3986 = vmatprep.mubr.f32.mxu0 %v8425_v16  ;;  %4057 = vmatprep.mubr.f32.mxu1 %v8425_v16  ;;  %v267_v1 = vadd.f32 %v8434_v27, %v6702_v7  ;;  %v5623_v27 = vpack.c.bf16 %v4109_v48, %v4105_v11  ;;  %v4151_v11 = vld [vmem:[%s8401_s4 + $0x1b0] sm:$0xff]  ;;  %v4154_v48 = vld [vmem:[%s8401_s4 + $0x1c8] sm:$0xff] }
 0xd8e   :  { %5560 = vmatpush1.bf16.msra.mxu0 %v7712_v21  ;;  %5592 = vmatpush1.bf16.msra.mxu1 %v7721_v24 }
 0xd8f   :  { %5562 = vmatprep.subr.bf16.mxu0 %v7732_v54  ;;  %5594 = vmatprep.subr.bf16.mxu1 %v7945_v6 }
 0xd92   :  { %5564 = vmatpush1.bf16.msra.mxu0 %v7741_v25  ;;  %5596 = vmatpush1.bf16.msra.mxu1 %v7953_v20 }
 0xd93   :  { %5566 = vmatprep.subr.bf16.mxu0 %v7752_v15  ;;  %5598 = vmatprep.subr.bf16.mxu1 %v7963_v2 }
 0xd96   :  { %5568 = vmatpush1.bf16.msra.mxu0 %v7761_v31  ;;  %5600 = vmatpush1.bf16.msra.mxu1 %v7971_v12 }
 0xd97   :  { %5570 = vmatprep.subr.bf16.mxu0 %v7772_v8  ;;  %5602 = vmatprep.subr.bf16.mxu1 %v7981_v26 }
 0xd9a   :  { %5572 = vmatpush1.bf16.msra.mxu0 %v7784_v55  ;;  %5604 = vmatpush1.bf16.msra.mxu1 %v7790_v44 }
 0xd9b   :  { %5574 = vmatprep.subr.bf16.mxu0 %v7802_v41  ;;  %5606 = vmatprep.subr.bf16.mxu1 %v7814_v52 }
 0xd9e   :  { %5576 = vmatpush1.bf16.msra.mxu0 %v7816_v37  ;;  %5608 = vmatpush1.bf16.msra.mxu1 %v7828_v51 }
 0xd9f   :  { %5578 = vmatprep.subr.bf16.mxu0 %v7840_v53  ;;  %5610 = vmatprep.subr.bf16.mxu1 %v7842_v56 }
 0xda2   :  { %5580 = vmatpush1.bf16.msra.mxu0 %v7854_v32  ;;  %5612 = vmatpush1.bf16.msra.mxu1 %v7867_v47 }
 0xda3   :  { %5582 = vmatprep.subr.bf16.mxu0 %v7869_v10  ;;  %5614 = vmatprep.subr.bf16.mxu1 %v7881_v14 }
 0xda6   :  { %5584 = vmatpush1.bf16.msra.mxu0 %v7893_v43  ;;  %5616 = vmatpush1.bf16.msra.mxu1 %v7897_v4 }
 0xda7   :  { %5618 = vmatprep.subr.bf16.mxu0 %v5617_v17  ;;  %v4139_v17 = vld [vmem:[%s8401_s4 + $0x150] sm:$0xff] }
 0xe5c   :  { %v3749_v21 = vpop.f32.mrb[26].mxu0  ;;  %v3820_v24 = vpop.f32.mrb[42].mxu1 }
 0xe5d   :  { %v3825_v54 = vadd.f32 %v3749_v21, %v265_v62  ;;  %v3751_v25 = vpop.f32.mrb[27].mxu0  ;;  %v3822_v15 = vpop.f32.mrb[43].mxu1  ;;  %v5789_v53 = vadd.f32 %v3820_v24, %v6708_v39  ;;  %v4108_v62 = vld [vmem:[%s8401_s4 + $0x58] sm:$0xff]  ;;  %v4107_v21 = vld [vmem:[%s8401_s4 + $0x50] sm:$0xff] }
 0xe5e   :  { %v3826_v31 = vadd.f32 %v3751_v25, %v267_v1  ;;  %v5790_v52 = vadd.f32 %v3822_v15, %v6710_v61  ;;  %v4112_v1 = vld [vmem:[%s8401_s4 + $0x78] sm:$0xff]  ;;  %v4111_v24 = vld [vmem:[%s8401_s4 + $0x70] sm:$0xff]  ;;  %v4114_v15 = vld [vmem:[%s8401_s4 + $0x88] sm:$0xff] }
 0xe5f   :  { %v3829_v8 = vsub.f32 0.0, %v3825_v54  ;;  %v5653_v54 = vpack.c.bf16 %v4112_v1, %v4108_v62  ;;  %v5655_v25 = vpack.c.bf16 %v4111_v24, %v4107_v21  ;;  %v4158_v62 = vld [vmem:[%s8401_s4 + $0x1e8] sm:$0xff]  ;;  %v4153_v21 = vld [vmem:[%s8401_s4 + $0x1c0] sm:$0xff] }
 0xe60   :  { %v3835_v55 = vsub.f32 0.0, %v3826_v31  ;;  %v3842_v37 = vsub.f32 0.0, %v5790_v52  ;;  %v4118_v31 = vld [vmem:[%s8401_s4 + $0xa8] sm:$0xff]  ;;  %v5645_v1 = vpack.c.bf16 %v4158_v62, %v4154_v48  ;;  %v4157_v24 = vld [vmem:[%s8401_s4 + $0x1e0] sm:$0xff]  ;;  %v8437_v62 = vld [vmem:[#allocation11_spill] sm:$0xff] }
 0xe61   :  { %v3830_v44 = vmul.f32 1.442695, %v3829_v8  ;;  %v5625_v8 = vpack.c.bf16 %v4118_v31, %v4114_v15  ;;  %v4122_v52 = vld [vmem:[%s8401_s4 + $0xc8] sm:$0xff]  ;;  %v4155_v15 = vld [vmem:[%s8401_s4 + $0x1d0] sm:$0xff] }
 0xe62   :  { %v3836_v41 = vmul.f32 1.442695, %v3835_v55  ;;  %v3843_v51 = vmul.f32 1.442695, %v3842_v37  ;;  %v4113_v55 = vld [vmem:[%s8401_s4 + $0x80] sm:$0xff]  ;;  %v4126_v37 = vld [vmem:[%s8401_s4 + $0xe8] sm:$0xff] }
 0xe63   :  { %6052 = vpow2.f32 %v3830_v44  ;;  %v4117_v44 = vld [vmem:[%s8401_s4 + $0xa0] sm:$0xff]  ;;  %v4159_v31 = vld [vmem:[%s8401_s4 + $0x1f0] sm:$0xff]  ;;  %v4353_v48 = vld [vmem:[%s8405_s6 + $0x28] sm:$0xff] }
 0xe64   :  { %6054 = vpow2.f32 %v3836_v41  ;;  %v5627_v41 = vpack.c.bf16 %v4117_v44, %v4113_v55  ;;  %v4348_v44 = vld [vmem:[%s8405_s6] sm:$0xff] }
 0xe65   :  { %6056 = vpow2.f32 %v3843_v51  ;;  %v5629_v51 = vpack.c.bf16 %v4126_v37, %v4122_v52  ;;  %v5679_v37 = vpack.c.bf16 %v4159_v31, %v4155_v15  ;;  %v4358_v31 = vld [vmem:[%s8405_s6 + $0x50] sm:$0xff] }
 0xe66   :  { %6058 = vtanh.f32 %v5789_v53  ;;  %v4121_v53 = vld [vmem:[%s8401_s4 + $0xc0] sm:$0xff] }
 0xe6d   :  { %v6053_v56 = vpop.eup %6052 }
 0xe6e   :  { %v6055_v32 = vpop.eup %6054  ;;  %v3832_v47 = vadd.f32 1.0, %v6053_v56  ;;  %v4125_v56 = vld [vmem:[%s8401_s4 + $0xe0] sm:$0xff] }
 0xe6f   :  { %v3838_v10 = vadd.f32 1.0, %v6055_v32  ;;  %v6057_v14 = vpop.eup %6056  ;;  %v4130_v32 = vld [vmem:[%s8401_s4 + $0x108] sm:$0xff] }
 0xe70   :  { %6060 = vrcp.f32 %v3832_v47  ;;  %v6059_v43 = vpop.eup %6058  ;;  %v3845_v42 = vadd.f32 1.0, %v6057_v14  ;;  %v4134_v47 = vld [vmem:[%s8401_s4 + $0x128] sm:$0xff]  ;;  %v4129_v14 = vld [vmem:[%s8401_s4 + $0x100] sm:$0xff] }
 0xe71   :  { %6062 = vrcp.f32 %v3838_v10  ;;  %v5633_v10 = vpack.c.bf16 %v4134_v47, %v4130_v32 }
 0xe72   :  { %6064 = vrcp.f32 %v3845_v42  ;;  %v4137_v42 = vld [vmem:[%s8401_s4 + $0x140] sm:$0xff] }
 0xe7a   :  { %v6061_v4 = vpop.eup %6060 }
 0xe7b   :  { %v6063_v22 = vpop.eup %6062  ;;  %v3849_v33 = vmul.f32 %v6061_v4, %v6059_v43  ;;  %v4131_v43 = vld [vmem:[%s8401_s4 + $0x110] sm:$0xff] }
 0xe7c   :  { %v3848_v60 = vmul.f32 %v6063_v22, %v8047_v50  ;;  %v6065_v9 = vpop.eup %6064  ;;  %v4110_v50 = vld [vmem:[%s8401_s4 + $0x68] sm:$0xff]  ;;  %v4135_v4 = vld [vmem:[%s8401_s4 + $0x130] sm:$0xff] }
 0xe7d   :  { %v5621_v13 = vpack.c.bf16 %v4110_v50, %v4106_v28  ;;  %v5667_v22 = vpack.c.bf16 %v4135_v4, %v4131_v43  ;;  %v4152_v28 = vld [vmem:[%s8401_s4 + $0x1b8] sm:$0xff]  ;;  %v4147_v50 = vld [vmem:[%s8401_s4 + $0x190] sm:$0xff] }
 0xe7e   :  { %v8093_v23 = vadd.f32 %v3849_v33, %v3848_v60  ;;  %v4138_v33 = vld [vmem:[%s8401_s4 + $0x148] sm:$0xff] }
 0xe80   :  { %6066 = vtanh.f32 %v8093_v23 }
 0xe8a   :  { %v6067_v5 = vpop.eup %6066 }
 0xe8b   :  { %v8096_v34 = vmul.f32 %v6067_v5, %v6065_v9  ;;  %v4141_v9 = vld [vmem:[%s8401_s4 + $0x160] sm:$0xff]  ;;  %v4144_v5 = vld [vmem:[%s8401_s4 + $0x178] sm:$0xff] }
 0xe8c   :  { %v5639_v0 = vpack.c.bf16 %v4141_v9, %v4137_v42 }
 0xe8d   :  { %3987 = vmatmul.mubr.f32.vlgmr.msra.gmra.mrb[28].mxu0 %v8096_v34  ;;  %4058 = vmatmul.mubr.f32.vlgmr.msra.gmra.mrb[44].mxu1 %v8096_v34 }
 0xe8e   :  { %4225 = vmatprep.mubr.f32.mxu0 %v8425_v16  ;;  %4296 = vmatprep.mubr.f32.mxu1 %v8425_v16  ;;  %v4100_v16 = vld [vmem:[%s8401_s4 + $0x18] sm:$0xff] }
 0xe8f   :  { %v5649_v46 = vpack.c.bf16 %v4104_v3, %v4100_v16  ;;  %5620 = vmatpush1.bf16.msra.mxu0 %v5619_v57  ;;  %v5671_v16 = vpack.c.bf16 %v4143_v30, %v4139_v17  ;;  %v4150_v57 = vld [vmem:[%s8401_s4 + $0x1a8] sm:$0xff]  ;;  %v4145_v3 = vld [vmem:[%s8401_s4 + $0x180] sm:$0xff] }
 0xe90   :  { %5622 = vmatprep.subr.bf16.mxu0 %v5621_v13  ;;  %v5641_v29 = vpack.c.bf16 %v4150_v57, %v4146_v49 }
 0xe91   :  { %5650 = vmatprep.subr.bf16.mxu1 %v5649_v46  ;;  %v5643_v46 = vpack.c.bf16 %v4149_v18, %v4145_v3 }
 0xe92   :  { %5652 = vmatpush1.bf16.msra.mxu1 %v5651_v63  ;;  %v4148_v63 = vld [vmem:[%s8401_s4 + $0x198] sm:$0xff] }
 0xe93   :  { %5624 = vmatpush1.bf16.msra.mxu0 %v5623_v27  ;;  %5654 = vmatprep.subr.bf16.mxu1 %v5653_v54  ;;  %v5673_v13 = vpack.c.bf16 %v4152_v28, %v4148_v63  ;;  %v5675_v27 = vpack.c.bf16 %v4151_v11, %v4147_v50  ;;  %v4156_v54 = vld [vmem:[%s8401_s4 + $0x1d8] sm:$0xff] }
 0xe94   :  { %5626 = vmatprep.subr.bf16.mxu0 %v5625_v8  ;;  %v5647_v8 = vpack.c.bf16 %v4157_v24, %v4153_v21  ;;  %v4351_v63 = vld [vmem:[%s8405_s6 + $0x18] sm:$0xff] }
 0xe95   :  { %v4355_v21 = vld [vmem:[%s8405_s6 + $0x38] sm:$0xff] }
 0xe96   :  { %5656 = vmatpush1.bf16.msra.mxu1 %v5655_v25  ;;  %v4160_v25 = vld [vmem:[%s8401_s4 + $0x1f8] sm:$0xff] }
 0xe97   :  { %5658 = vmatprep.subr.bf16.mxu1 %v7945_v6  ;;  %5628 = vmatpush1.bf16.msra.mxu0 %v5627_v41  ;;  %v5631_v6 = vpack.c.bf16 %v4125_v56, %v4121_v53  ;;  %v5677_v55 = vpack.c.bf16 %v4160_v25, %v4156_v54  ;;  %v4349_v41 = vld [vmem:[%s8405_s6 + $0x8] sm:$0xff]  ;;  %v8436_v56 = vld [vmem:[#allocation8_spill] sm:$0xff] }
 0xe98   :  { %5630 = vmatprep.subr.bf16.mxu0 %v5629_v51  ;;  %v5681_v52 = vpack.c.bf16 %v4349_v41, %v4348_v44  ;;  %v8435_v51 = vld [vmem:[#allocation7_spill] sm:$0xff]  ;;  %v4356_v54 = vld [vmem:[%s8405_s6 + $0x40] sm:$0xff]  ;;  %v4357_v25 = vld [vmem:[%s8405_s6 + $0x48] sm:$0xff] }
 0xe99   :  { %v271_v53 = vadd.f32 %v8435_v51, %v6704_v40  ;;  %v5697_v15 = vpack.c.bf16 %v4357_v25, %v4356_v54  ;;  %v4360_v44 = vld [vmem:[%s8405_s6 + $0x60] sm:$0xff]  ;;  %v4361_v41 = vld [vmem:[%s8405_s6 + $0x68] sm:$0xff]  ;;  %v4363_v51 = vld [vmem:[%s8405_s6 + $0x78] sm:$0xff] }
 0xe9a   :  { %5660 = vmatpush1.bf16.msra.mxu1 %v7953_v20  ;;  %v4133_v20 = vld [vmem:[%s8401_s4 + $0x120] sm:$0xff] }
 0xe9b   :  { %5662 = vmatprep.subr.bf16.mxu1 %v7963_v2  ;;  %5632 = vmatpush1.bf16.msra.mxu0 %v5631_v6  ;;  %v5635_v2 = vpack.c.bf16 %v4133_v20, %v4129_v14  ;;  %v273_v6 = vadd.f32 %v8436_v56, %v6702_v7  ;;  %v8438_v56 = vld [vmem:[#allocation12_spill] sm:$0xff] }
 0xe9c   :  { %5634 = vmatprep.subr.bf16.mxu0 %v5633_v10 }
 0xe9e   :  { %5664 = vmatpush1.bf16.msra.mxu1 %v7971_v12  ;;  %v4142_v12 = vld [vmem:[%s8401_s4 + $0x168] sm:$0xff] }
 0xe9f   :  { %5666 = vmatprep.subr.bf16.mxu1 %v7981_v26  ;;  %5636 = vmatpush1.bf16.msra.mxu0 %v5635_v2  ;;  %v5637_v60 = vpack.c.bf16 %v4142_v12, %v4138_v33  ;;  %v4140_v26 = vld [vmem:[%s8401_s4 + $0x158] sm:$0xff] }
 0xea0   :  { %v5669_v35 = vpack.c.bf16 %v4144_v5, %v4140_v26 }
 0xea1   :  { %5638 = vmatprep.subr.bf16.mxu0 %v5637_v60 }
 0xea2   :  { %5668 = vmatpush1.bf16.msra.mxu1 %v5667_v22 }
 0xea3   :  { %5640 = vmatpush1.bf16.msra.mxu0 %v5639_v0  ;;  %5670 = vmatprep.subr.bf16.mxu1 %v5669_v35 }
 0xea4   :  { %5642 = vmatprep.subr.bf16.mxu0 %v5641_v29 }
 0xea6   :  { %5672 = vmatpush1.bf16.msra.mxu1 %v5671_v16 }
 0xea7   :  { %5674 = vmatprep.subr.bf16.mxu1 %v5673_v13  ;;  %5644 = vmatpush1.bf16.msra.mxu0 %v5643_v46  ;;  %v4350_v46 = vld [vmem:[%s8405_s6 + $0x10] sm:$0xff] }
 0xea8   :  { %5646 = vmatprep.subr.bf16.mxu0 %v5645_v1  ;;  %v5685_v11 = vpack.c.bf16 %v4351_v63, %v4350_v46  ;;  %v4354_v1 = vld [vmem:[%s8405_s6 + $0x30] sm:$0xff] }
 0xea9   :  { %v5693_v24 = vpack.c.bf16 %v4355_v21, %v4354_v1 }
 0xeaa   :  { %5676 = vmatpush1.bf16.msra.mxu1 %v5675_v27 }
 0xeab   :  { %5678 = vmatprep.subr.bf16.mxu1 %v5677_v55  ;;  %5648 = vmatpush1.bf16.msra.mxu0 %v5647_v8  ;;  %v4359_v8 = vld [vmem:[%s8405_s6 + $0x58] sm:$0xff] }
 0xeac   :  { %5682 = vmatprep.subr.bf16.mxu0 %v5681_v52  ;;  %v5701_v55 = vpack.c.bf16 %v4359_v8, %v4358_v31 }
 0xeae   :  { %5680 = vmatpush1.bf16.msra.mxu1 %v5679_v37  ;;  %v4362_v37 = vld [vmem:[%s8405_s6 + $0x70] sm:$0xff] }
 0xf60   :  { %v3988_v32 = vpop.f32.mrb[28].mxu0  ;;  %v4059_v47 = vpop.f32.mrb[44].mxu1 }
 0xf61   :  { %v4064_v10 = vadd.f32 %v3988_v32, %v271_v53  ;;  %v3990_v14 = vpop.f32.mrb[29].mxu0  ;;  %v4061_v20 = vpop.f32.mrb[45].mxu1  ;;  %v5791_v9 = vadd.f32 %v4059_v47, %v6708_v39  ;;  %v5709_v53 = vpack.c.bf16 %v4363_v51, %v4362_v37  ;;  %v8440_v32 = vld [vmem:[#allocation14_spill] sm:$0xff]  ;;  %v8441_v47 = vld [vmem:[#allocation15_spill] sm:$0xff] }
 0xf62   :  { %v4065_v2 = vadd.f32 %v3990_v14, %v273_v6  ;;  %v5792_v12 = vadd.f32 %v4061_v20, %v6710_v61  ;;  %v8439_v6 = vld [vmem:[#allocation13_spill] sm:$0xff] }
 0xf63   :  { %v4068_v43 = vsub.f32 0.0, %v4064_v10  ;;  %v8442_v10 = vld [vmem:[#allocation16_spill] sm:$0xff]  ;;  %v8443_v14 = vld [vmem:[#allocation17_spill] sm:$0xff] }
 0xf64   :  { %v4074_v4 = vsub.f32 0.0, %v4065_v2  ;;  %v4081_v42 = vsub.f32 0.0, %v5792_v12  ;;  %v8444_v20 = vld [vmem:[#allocation9_spill] sm:$0xff] }
 0xf65   :  { %v4069_v22 = vmul.f32 1.442695, %v4068_v43  ;;  %v277_v2 = vadd.f32 %v8444_v20, %v6704_v40  ;;  %v8445_v43 = vld [vmem:[#allocation10_spill] sm:$0xff] }
 0xf66   :  { %v4075_v33 = vmul.f32 1.442695, %v4074_v4  ;;  %v4082_v60 = vmul.f32 1.442695, %v4081_v42  ;;  %v279_v4 = vadd.f32 %v8445_v43, %v6702_v7 }
 0xf67   :  { %6068 = vpow2.f32 %v4069_v22 }
 0xf68   :  { %6070 = vpow2.f32 %v4075_v33 }
 0xf69   :  { %6072 = vpow2.f32 %v4082_v60 }
 0xf6a   :  { %6074 = vtanh.f32 %v5791_v9 }
 0xf71   :  { %v6069_v26 = vpop.eup %6068 }
 0xf72   :  { %v6071_v5 = vpop.eup %6070  ;;  %v4071_v0 = vadd.f32 1.0, %v6069_v26 }
 0xf73   :  { %v4077_v35 = vadd.f32 1.0, %v6071_v5  ;;  %v6073_v17 = vpop.eup %6072 }
 0xf74   :  { %6076 = vrcp.f32 %v4071_v0  ;;  %v6075_v30 = vpop.eup %6074  ;;  %v4084_v3 = vadd.f32 1.0, %v6073_v17 }
 0xf75   :  { %6078 = vrcp.f32 %v4077_v35 }
 0xf76   :  { %6080 = vrcp.f32 %v4084_v3 }
 0xf7e   :  { %v6077_v49 = vpop.eup %6076 }
 0xf7f   :  { %v6079_v16 = vpop.eup %6078  ;;  %v4088_v57 = vmul.f32 %v6077_v49, %v6075_v30 }
 0xf80   :  { %v4087_v18 = vmul.f32 %v6079_v16, %v8093_v23  ;;  %v6081_v28 = vpop.eup %6080  ;;  %v4352_v23 = vld [vmem:[%s8405_s6 + $0x20] sm:$0xff] }
 0xf81   :  { %v5689_v27 = vpack.c.bf16 %v4353_v48, %v4352_v23 }
 0xf82   :  { %v8282_v29 = vadd.f32 %v4088_v57, %v4087_v18 }
 0xf84   :  { %6082 = vtanh.f32 %v8282_v29 }
 0xf8e   :  { %v6083_v50 = vpop.eup %6082 }
 0xf8f   :  { %v4091_v13 = vmul.f32 %v6083_v50, %v6081_v28 }
 0xf91   :  { %4226 = vmatmul.mubr.f32.vlgmr.msra.gmra.mrb[30].mxu0 %v4091_v13  ;;  %4297 = vmatmul.mubr.f32.vlgmr.msra.gmra.mrb[46].mxu1 %v4091_v13 }
 0xf92   :  { %5684 = vmatpush3.bf16.msra.mxu0 %v5681_v52  ;;  %4633 = vmatprep.mubr.f32.mxu0 %v8437_v62  ;;  %v5705_v52 = vpack.c.bf16 %v4361_v41, %v4360_v44 }
 0xf93   :  { %5686 = vmatprep.subr.bf16.mxu0 %v5685_v11 }
 0xf96   :  { %5688 = vmatpush3.bf16.msra.mxu0 %v5685_v11 }
 0xf97   :  { %5690 = vmatprep.subr.bf16.mxu0 %v5689_v27 }
 0xf9a   :  { %5692 = vmatpush3.bf16.msra.mxu0 %v5689_v27 }
 0xf9b   :  { %5694 = vmatprep.subr.bf16.mxu0 %v5693_v24 }
 0xf9e   :  { %5696 = vmatpush3.bf16.msra.mxu0 %v5693_v24 }
 0xf9f   :  { %5698 = vmatprep.subr.bf16.mxu0 %v5697_v15 }
 0xfa2   :  { %5700 = vmatpush3.bf16.msra.mxu0 %v5697_v15 }
 0xfa3   :  { %5702 = vmatprep.subr.bf16.mxu0 %v5701_v55 }
 0xfa6   :  { %5704 = vmatpush3.bf16.msra.mxu0 %v5701_v55 }
 0xfa7   :  { %5706 = vmatprep.subr.bf16.mxu0 %v5705_v52 }
 0xfaa   :  { %5708 = vmatpush3.bf16.msra.mxu0 %v5705_v52 }
 0xfab   :  { %5710 = vmatprep.subr.bf16.mxu0 %v5709_v53 }
 0xfae   :  { %5712 = vmatpush3.bf16.msra.mxu0 %v5709_v53 }
 0xfb1   :  { %4634 = vmatmul.mubr.f32.vlgmr.msra.gmra.mrb[32].mxu0 %v8438_v56 }
 0xfb2   :  { %4636 = vmatprep.mubr.f32.mxu0 %v8439_v6 }
 0xfb5   :  { %4637 = vmatmul.mubr.f32.gmra.mrb[34].mxu0 %v8440_v32 }
 0xfb6   :  { %4639 = vmatprep.mubr.f32.mxu0 %v8441_v47 }
 0xfb9   :  { %4640 = vmatmul.mubr.f32.gmra.mrb[36].mxu0 %v8442_v10 }
 0xfba   :  { %4642 = vmatprep.mubr.f32.mxu0 %v8443_v14 }
 0xfbd   :  { %4643 = vmatmul.mubr.f32.gmra.mrb[38].mxu0 %v7554_v45 }
 0xfbe   :  { %4645 = vmatprep.mubr.f32.mxu0 %v7602_v19 }
 0xfc1   :  { %4646 = vmatmul.mubr.f32.gmra.mrb[40].mxu0 %v7648_v36 }
 0xfc2   :  { %4648 = vmatprep.mubr.f32.mxu0 %v7914_v38 }
 0xfc5   :  { %4649 = vmatmul.mubr.f32.gmra.mrb[42].mxu0 %v8002_v59 }
 0xfc6   :  { %4651 = vmatprep.mubr.f32.mxu0 %v8050_v58 }
 0xfc9   :  { %4652 = vmatmul.mubr.f32.gmra.mrb[44].mxu0 %v8096_v34 }
 0xfca   :  { %4654 = vmatprep.mubr.f32.mxu0 %v4091_v13 }
0x1064   :  { %v4227_v45 = vpop.f32.mrb[30].mxu0  ;;  %v4298_v22 = vpop.f32.mrb[46].mxu1 }
0x1065   :  { %v4303_v19 = vadd.f32 %v4227_v45, %v277_v2  ;;  %v4229_v33 = vpop.f32.mrb[31].mxu0  ;;  %v4300_v36 = vpop.f32.mrb[47].mxu1  ;;  %v5793_v40 = vadd.f32 %v4298_v22, %v6708_v39 }
0x1066   :  { %v4304_v12 = vadd.f32 %v4229_v33, %v279_v4  ;;  %v5794_v58 = vadd.f32 %v4300_v36, %v6710_v61  ;;  %v4568_v61 = vld [vmem:[%s8406_s7] ss:$0 sm:$0xff] }
0x1067   :  { %v4307_v38 = vsub.f32 0.0, %v4303_v19 }
0x1068   :  { %v4313_v42 = vsub.f32 0.0, %v4304_v12  ;;  %v4320_v34 = vsub.f32 0.0, %v5794_v58 }
0x1069   :  { %v4308_v59 = vmul.f32 1.442695, %v4307_v38 }
0x106a   :  { %v4314_v60 = vmul.f32 1.442695, %v4313_v42  ;;  %v4321_v9 = vmul.f32 1.442695, %v4320_v34 }
0x106b   :  { %6084 = vpow2.f32 %v4308_v59 }
0x106c   :  { %6086 = vpow2.f32 %v4314_v60 }
0x106d   :  { %6088 = vpow2.f32 %v4321_v9 }
0x106e   :  { %6090 = vtanh.f32 %v5793_v40 }
0x1075   :  { %v6085_v26 = vpop.eup %6084 }
0x1076   :  { %v6087_v7 = vpop.eup %6086  ;;  %v4310_v5 = vadd.f32 1.0, %v6085_v26 }
0x1077   :  { %v4316_v0 = vadd.f32 1.0, %v6087_v7  ;;  %v6089_v35 = vpop.eup %6088 }
0x1078   :  { %6092 = vrcp.f32 %v4310_v5  ;;  %v6091_v17 = vpop.eup %6090  ;;  %v4323_v57 = vadd.f32 1.0, %v6089_v35 }
0x1079   :  { %6094 = vrcp.f32 %v4316_v0 }
0x107a   :  { %6096 = vrcp.f32 %v4323_v57 }
0x1082   :  { %v6093_v30 = vpop.eup %6092 }
0x1083   :  { %v6095_v49 = vpop.eup %6094  ;;  %v4327_v16 = vmul.f32 %v6093_v30, %v6091_v17 }
0x1084   :  { %v4326_v39 = vmul.f32 %v6095_v49, %v8282_v29  ;;  %v4635_v3 = vpop.f32.mrb[32].mxu0  ;;  %v6097_v21 = vpop.eup %6096 }
0x1085   :  { %v4443_v18 = vadd.f32 %v4635_v3, %v4568_v61  ;;  %v4437_v46 = vpop.f32.mrb[33].mxu0 }
0x1086   :  { %v4438_v63 = vadd.f32 %v4568_v61, %v4437_v46  ;;  %v4328_v28 = vadd.f32 %v4327_v16, %v4326_v39 }
0x1087   :  { %4517 = vst [vmem:[%s8407_s8 + $0x8] sm:$0xff] %v4443_v18 }
0x1088   :  { %4516 = vst [vmem:[%s8407_s8] sm:$0xff] %v4438_v63  ;;  %v4638_v50 = vpop.f32.mrb[34].mxu0  ;;  %6098 = vtanh.f32 %v4328_v28 }
0x1089   :  { %v4453_v13 = vadd.f32 %v4638_v50, %v4568_v61  ;;  %v4447_v11 = vpop.f32.mrb[35].mxu0 }
0x108a   :  { %v4448_v23 = vadd.f32 %v4568_v61, %v4447_v11 }
0x108b   :  { %4519 = vst [vmem:[%s8407_s8 + $0x18] sm:$0xff] %v4453_v13 }
0x108c   :  { %4518 = vst [vmem:[%s8407_s8 + $0x10] sm:$0xff] %v4448_v23  ;;  %v4641_v29 = vpop.f32.mrb[36].mxu0 }
0x108d   :  { %v4463_v48 = vadd.f32 %v4641_v29, %v4568_v61  ;;  %v4457_v62 = vpop.f32.mrb[37].mxu0 }
0x108e   :  { %v4458_v27 = vadd.f32 %v4568_v61, %v4457_v62 }
0x108f   :  { %4521 = vst [vmem:[%s8407_s8 + $0x28] sm:$0xff] %v4463_v48 }
0x1090   :  { %4520 = vst [vmem:[%s8407_s8 + $0x20] sm:$0xff] %v4458_v27  ;;  %v4644_v1 = vpop.f32.mrb[38].mxu0 }
0x1091   :  { %v4473_v24 = vadd.f32 %v4644_v1, %v4568_v61  ;;  %v4467_v54 = vpop.f32.mrb[39].mxu0 }
0x1092   :  { %v6099_v25 = vpop.eup %6098  ;;  %v4468_v15 = vadd.f32 %v4568_v61, %v4467_v54 }
0x1093   :  { %4523 = vst [vmem:[%s8407_s8 + $0x38] sm:$0xff] %v4473_v24  ;;  %v4330_v31 = vmul.f32 %v6099_v25, %v6097_v21 }
0x1094   :  { %4522 = vst [vmem:[%s8407_s8 + $0x30] sm:$0xff] %v4468_v15  ;;  %v4647_v8 = vpop.f32.mrb[40].mxu0 }
0x1095   :  { %v4483_v55 = vadd.f32 %v4647_v8, %v4568_v61  ;;  %v4477_v44 = vpop.f32.mrb[41].mxu0  ;;  %4655 = vmatmul.mubr.f32.gmra.mrb[46].mxu0 %v4330_v31 }
0x1096   :  { %v4478_v41 = vadd.f32 %v4568_v61, %v4477_v44 }
0x1097   :  { %4525 = vst [vmem:[%s8407_s8 + $0x48] sm:$0xff] %v4483_v55 }
0x1098   :  { %4524 = vst [vmem:[%s8407_s8 + $0x40] sm:$0xff] %v4478_v41  ;;  %v4650_v52 = vpop.f32.mrb[42].mxu0 }
0x1099   :  { %v4493_v37 = vadd.f32 %v4650_v52, %v4568_v61  ;;  %v4487_v51 = vpop.f32.mrb[43].mxu0 }
0x109a   :  { %v4488_v53 = vadd.f32 %v4568_v61, %v4487_v51 }
0x109b   :  { %4527 = vst [vmem:[%s8407_s8 + $0x58] sm:$0xff] %v4493_v37 }
0x109c   :  { %4526 = vst [vmem:[%s8407_s8 + $0x50] sm:$0xff] %v4488_v53  ;;  %v4653_v56 = vpop.f32.mrb[44].mxu0 }
0x109d   :  { %v4503_v6 = vadd.f32 %v4653_v56, %v4568_v61  ;;  %v4497_v32 = vpop.f32.mrb[45].mxu0 }
0x109e   :  { %v4498_v47 = vadd.f32 %v4568_v61, %v4497_v32 }
0x109f   :  { %4529 = vst [vmem:[%s8407_s8 + $0x68] sm:$0xff] %v4503_v6 }
0x10a0   :  { %4528 = vst [vmem:[%s8407_s8 + $0x60] sm:$0xff] %v4498_v47 }
0x1168   :  { %v4656_v10 = vpop.f32.mrb[46].mxu0 }
0x1169   :  { %v4513_v14 = vadd.f32 %v4656_v10, %v4568_v61  ;;  %v4507_v20 = vpop.f32.mrb[47].mxu0 }
0x116a   :  { %v4508_v2 = vadd.f32 %v4568_v61, %v4507_v20 }
0x116b   :  { %4531 = vst [vmem:[%s8407_s8 + $0x78] sm:$0xff] %v4513_v14 }
0x116c   :  { %4530 = vst [vmem:[%s8407_s8 + $0x70] sm:$0xff] %v4508_v2 }

</bundles_post_ra>
